<compile_context>
chip_gen: v7x
topology: tpu7x:2x2x1
jax: 0.10.0
libtpu: 0.0.40
codegen_flags: <defaults>
</compile_context>

<pallas_src>
import math
from functools import partial

import jax
import jax.numpy as jnp
from jax.experimental import pallas as pl
from jax.experimental.pallas import tpu as pltpu

# ----------------------------- configuration --------------------------------
D_MODEL = 32
D_K = 8
D_V = 8
H = 4
D_FF = 64
N_LAYERS = 1
N_REGIONS = 10
N_GRIDS = 16
BATCH = 2
DIM_G = 64            # geometry embedding dim (WGs = Linear(64, 1) per head)
LN_EPS = 1e-5
NEG_INF = -1e30       # stands in for masked_fill(-inf); avoids NaN in row-max
HK = H * D_K
HV = H * D_V


def _round_up(x, m):
    return ((x + m - 1) // m) * m


def _default_fold_batch():
    """Fold the batch into the kernel body on single-TensorCore chips."""
    try:
        kind = jax.devices()[0].device_kind.lower()
    except Exception:
        return False
    single_core = ("v5e", "v5 lite", "v5lite", "v6e", "v6 lite", "v6lite")
    return any(t in kind for t in single_core)


# ----------------------------- BlockSpec helpers -----------------------------
def _batch_spec(shape, bb):
    """bb batch elements per grid step, full extent on the remaining dims."""
    nd = len(shape)
    blk = (bb,) + tuple(shape[1:])
    return pl.BlockSpec(blk, lambda i, _n=nd: (i,) + (0,) * (_n - 1))


# ----------------------------- weight slab packing ---------------------------
def _pack_slab(entries):
    """Pack named 2-D arrays into one (rows, 128) f32 slab.

    Every entry starts on an 8-sublane-aligned row and occupies lanes [0:ncols].
    Returns (slab, layout) with layout[name] = (row0, nrows, col0, ncols)."""
    layout = {}
    blocks = []
    r = 0
    for name, a in entries:
        a = a.astype(jnp.float32)
        nr, nc = a.shape
        layout[name] = (r, nr, 0, nc)
        nr8 = _round_up(nr, 8)
        blocks.append(jnp.pad(a, ((0, nr8 - nr), (0, 128 - nc))))
        r += nr8
    return jnp.concatenate(blocks, axis=0), layout


def _pack_layer_slab(lp):
    """Pack one encoder layer (GOC + region SelfAtt + grid SelfAtt).

    The 1/sqrt(d_k) attention scale is folded into the Q projection weights
    here (one-time parameter transform), and Q||K, fc_o||fc_g, attmat-Q||K are
    concatenated so the kernel issues single matmuls for each."""
    scale = 1.0 / math.sqrt(D_K)
    entries = []

    def add_self_att(prefix, p):
        mh, ff = p['mhatt'], p['pwff']
        entries.extend([
            (prefix + 'wqk', jnp.concatenate([mh['wq'] * scale, mh['wk']], axis=1)),
            (prefix + 'wv', mh['wv']),
            (prefix + 'wo', mh['wo']),
            (prefix + 'w1', ff['w1']),
            (prefix + 'w2', ff['w2']),
            (prefix + 'bqk', jnp.concatenate([mh['bq'], mh['bk']], axis=1)),
            (prefix + 'bv', mh['bv']),
            (prefix + 'bo', mh['bo']),
            (prefix + 'mhg', mh['ln_g']), (prefix + 'mhb', mh['ln_b']),
            (prefix + 'lng', p['ln_g']), (prefix + 'lnb', p['ln_b']),
            (prefix + 'b1', ff['b1']), (prefix + 'b2', ff['b2']),
            (prefix + 'ffg', ff['ln_g']), (prefix + 'ffb', ff['ln_b']),
        ])

    g = lp['goc']
    mh, ff, am = g['mhatt'], g['pwff'], g['attmat']
    entries.extend([
        ('g.wq', mh['wq'] * scale), ('g.wk', mh['wk']), ('g.wv', mh['wv']),
        ('g.wog', jnp.concatenate([mh['wo'], mh['wg']], axis=1)),
        ('g.w1', ff['w1']), ('g.w2', ff['w2']),
        ('g.amwqk', jnp.concatenate([am['wq'] * scale, am['wk']], axis=1)),
        ('g.bq', mh['bq']), ('g.bk', mh['bk']), ('g.bv', mh['bv']),
        ('g.bog', jnp.concatenate([mh['bo'], mh['bg']], axis=1)),
        ('g.mhg', mh['ln_g']), ('g.mhb', mh['ln_b']),
        ('g.lng', g['ln_g']), ('g.lnb', g['ln_b']),
        ('g.b1', ff['b1']), ('g.b2', ff['b2']),
        ('g.ffg', ff['ln_g']), ('g.ffb', ff['ln_b']),
        ('g.ambqk', jnp.concatenate([am['bq'], am['bk']], axis=1)),
    ])
    add_self_att('r.', lp['sa'])      # region SelfAtt
    add_self_att('x.', lp['grid'])    # grid SelfAttWithBoxExtrAtt
    return _pack_slab(entries)


# ----------------------------- in-kernel helpers ------------------------------
def _layer_norm(y, g, b):
    mu = jnp.mean(y, axis=-1, keepdims=True)
    var = jnp.mean((y - mu) ** 2, axis=-1, keepdims=True)
    return (y - mu) * jax.lax.rsqrt(var + LN_EPS) * g + b


def _proj(x, w, b):
    # x: (n, D), w: (D, F), b: (1, F)  ->  (n, F); one head-concatenated matmul.
    return jnp.dot(x, w, preferred_element_type=jnp.float32) + b


def _pwff_ln(x, w1, b1, w2, b2, g, b):
    hid = jnp.maximum(jnp.dot(x, w1, preferred_element_type=jnp.float32) + b1, 0.0)
    out = jnp.dot(hid, w2, preferred_element_type=jnp.float32) + b2
    return _layer_norm(x + out, g, b)


def _mh_box_attention(qp, kp, vp, geo, bias, extra=None):
    """Box-biased multi-head attention on already-projected Q/K/V.

    qp: (nq, H*DK) (Q weights pre-scaled by 1/sqrt(dk)), kp: (nk, H*DK),
    vp: (nk, H*DV), geo: (H, nq, nk), bias: (1, nk) additive key mask,
    extra: optional per-head list of (nq, nk) (ExtrAtt, merged into one log).
    Returns the lane-concatenated per-head context (nq, H*DV)."""
    ctx = []
    for h in range(H):
        qh = qp[:, h * D_K:(h + 1) * D_K]
        kh = kp[:, h * D_K:(h + 1) * D_K]
        vh = vp[:, h * D_V:(h + 1) * D_V]
        s = jnp.einsum('qd,kd->qk', qh, kh, preferred_element_type=jnp.float32)
        g = jnp.maximum(geo[h], 1e-6)
        if extra is not None:
            g = g * jnp.maximum(extra[h], 1e-6)   # one merged log
        logits = jnp.log(g) + s + bias
        m = jnp.max(logits, axis=-1, keepdims=True)
        p = jnp.exp(logits - m)
        p = p / jnp.sum(p, axis=-1, keepdims=True)
        ctx.append(jnp.dot(p, vh, preferred_element_type=jnp.float32))
    return jnp.concatenate(ctx, axis=-1)


def _go_attention(amq, amk, r2r, bias_r, align, align_t):
    """AttMatrixByScaledDotProductWithBox + align bilinear form + softmax.

    Returns GOAtt as a per-head list of (NG, NG) arrays (never materialised as
    a (H, NG, NG) HBM tensor)."""
    outs = []
    for h in range(H):
        qh = amq[:, h * D_K:(h + 1) * D_K]
        kh = amk[:, h * D_K:(h + 1) * D_K]
        s = jnp.einsum('qd,kd->qk', qh, kh, preferred_element_type=jnp.float32)
        logits = jnp.log(jnp.maximum(r2r[h], 1e-6)) + s + bias_r
        m = jnp.max(logits, axis=-1, keepdims=True)
        p = jnp.exp(logits - m)
        p = p / jnp.sum(p, axis=-1, keepdims=True)            # object_att_h
        L = jnp.dot(p, align, preferred_element_type=jnp.float32)      # (NR, NG)
        o = jnp.dot(align_t, L, preferred_element_type=jnp.float32)    # (NG, NG)
        m2 = jnp.max(o, axis=-1, keepdims=True)
        e = jnp.exp(o - m2)
        outs.append(e / jnp.sum(e, axis=-1, keepdims=True))
    return outs


# ----------------------------- fused per-layer kernel -------------------------
def _encoder_layer_kernel(reg_ref, grd_ref, rpos_ref, gpos_ref,
                          r2g_ref, r2r_ref, g2g_ref,
                          align_ref, align_t_ref, bias_r_ref, bias_g_ref,
                          slab_ref, out_ref, *, layout, bb):
    def W(name):
        r0, nr, c0, nc = layout[name]
        return slab_ref[r0:r0 + nr, c0:c0 + nc]

    for bi in range(bb):                          # unrolled at trace time
        reg = reg_ref[bi]                         # (NR, D)
        grd = grd_ref[bi]                         # (NG, D)
        q_reg = reg + rpos_ref[bi]
        q_grd = grd + gpos_ref[bi]
        bias_r = bias_r_ref[bi]                   # (1, NR)
        bias_g = bias_g_ref[bi]                   # (1, NG)
        r2g = r2g_ref[bi]                         # (H, NR, NG)
        r2r = r2r_ref[bi]                         # (H, NR, NR)
        g2g = g2g_ref[bi]                         # (H, NG, NG)
        align = align_ref[bi]                     # (NR, NG)
        align_t = align_t_ref[bi]                 # (NG, NR)

        # ------------- GOC: MultiHeadAttentionGLU (region -> grid) -----------
        qp = _proj(q_reg, W('g.wq'), W('g.bq'))
        kp = _proj(q_grd, W('g.wk'), W('g.bk'))
        vp = _proj(grd, W('g.wv'), W('g.bv'))
        ctx = _mh_box_attention(qp, kp, vp, r2g, bias_g)
        og = _proj(ctx, W('g.wog'), W('g.bog'))   # fc_o || fc_g in one matmul
        # TODO(synk): MultiHeadAttentionGLU source unavailable; GLU gate
        # fc_o(att)*sigmoid(fc_g(att)) plus m2-style internal residual+LayerNorm
        # over its `queries` argument is assumed.
        att = og[:, :D_MODEL] * jax.nn.sigmoid(og[:, D_MODEL:])
        att = _layer_norm(q_reg + att, W('g.mhg'), W('g.mhb'))
        att = _layer_norm(reg + att, W('g.lng'), W('g.lnb'))      # GOC.lnorm
        ff = _pwff_ln(att, W('g.w1'), W('g.b1'), W('g.w2'), W('g.b2'),
                      W('g.ffg'), W('g.ffb'))
        am = _proj(ff, W('g.amwqk'), W('g.ambqk'))                # (NR, 2*H*DK)
        goatt = _go_attention(am[:, :HK], am[:, HK:], r2r, bias_r,
                              align, align_t)                     # H x (NG, NG)

        # ------------- SelfAtt over regions ----------------------------------
        qk = _proj(q_reg, W('r.wqk'), W('r.bqk'))                 # Q || K
        vv = _proj(reg, W('r.wv'), W('r.bv'))
        ctx = _mh_box_attention(qk[:, :HK], qk[:, HK:], vv, r2r, bias_r)
        att = _proj(ctx, W('r.wo'), W('r.bo'))
        # TODO(synk): MultiHeadAttention source unavailable; m2-style internal
        # residual+LayerNorm over `queries` is assumed.
        att = _layer_norm(q_reg + att, W('r.mhg'), W('r.mhb'))
        att = _layer_norm(reg + att, W('r.lng'), W('r.lnb'))
        new_region = _pwff_ln(att, W('r.w1'), W('r.b1'), W('r.w2'), W('r.b2'),
                              W('r.ffg'), W('r.ffb'))

        # ------------- SelfAttWithBoxExtrAtt over grids (ExtrAtt = GOAtt) ----
        qk = _proj(q_grd, W('x.wqk'), W('x.bqk'))
        vv = _proj(grd, W('x.wv'), W('x.bv'))
        ctx = _mh_box_attention(qk[:, :HK], qk[:, HK:], vv, g2g, bias_g,
                                extra=goatt)
        att = _proj(ctx, W('x.wo'), W('x.bo'))
        att = _layer_norm(q_grd + att, W('x.mhg'), W('x.mhb'))
        att = _layer_norm(grd + att, W('x.lng'), W('x.lnb'))
        new_grid = _pwff_ln(att, W('x.w1'), W('x.b1'), W('x.w2'), W('x.b2'),
                            W('x.ffg'), W('x.ffb'))

        out_ref[bi] = jnp.concatenate([new_region, new_grid], axis=0)


# ----------------------------- kernel wrapper ---------------------------------
def encoder_layer(lp, out_region, out_grid, rpos, gpos, r2g, r2r, g2g,
                  aligns, aligns_t, bias_r, bias_g, fold_batch):
    """One fused GOC + region-SelfAtt + grid-SelfAtt layer."""
    B, nrp, d = out_region.shape
    ngp = out_grid.shape[1]
    slab, layout = _pack_layer_slab(lp)
    bb = B if fold_batch else 1

    data = [out_region, out_grid, rpos, gpos, r2g, r2r, g2g,
            aligns, aligns_t, bias_r, bias_g]
    in_specs = [_batch_spec(a.shape, bb) for a in data]
    in_specs.append(pl.BlockSpec(slab.shape, lambda i: (0, 0)))

    out = pl.pallas_call(
        partial(_encoder_layer_kernel, layout=layout, bb=bb),
        out_shape=jax.ShapeDtypeStruct((B, nrp + ngp, d), jnp.float32),
        grid=(B // bb,),
        in_specs=in_specs,
        out_specs=_batch_spec((B, nrp + ngp, d), bb),
        compiler_params=pltpu.CompilerParams(
            dimension_semantics=("parallel",)),
    )(*data, slab)
    return out


# ----------------------------- geometry embedding (XLA glue) ------------------
def all_relational_embedding(boxes, dim_g=DIM_G, wave_len=1000.0):
    B, n, _ = boxes.shape
    x_min, y_min, x_max, y_max = jnp.split(boxes, 4, axis=-1)   # (B, n, 1) each
    cx = (x_min + x_max) * 0.5
    cy = (y_min + y_max) * 0.5
    w = (x_max - x_min) + 1.0
    h = (y_max - y_min) + 1.0
    delta_x = jnp.log(jnp.maximum(jnp.abs((cx - jnp.reshape(cx, (B, 1, -1))) / w), 1e-3))
    delta_y = jnp.log(jnp.maximum(jnp.abs((cy - jnp.reshape(cy, (B, 1, -1))) / h), 1e-3))
    delta_w = jnp.log(w / jnp.reshape(w, (B, 1, -1)))
    delta_h = jnp.log(h / jnp.reshape(h, (B, 1, -1)))
    pos = jnp.stack([delta_x, delta_y, delta_w, delta_h], axis=-1)   # (B, n, n, 4)
    feat_range = jnp.arange(dim_g // 8, dtype=jnp.float32)
    dim_mat = 1.0 / (wave_len ** (feat_range / (dim_g // 8)))
    mul = 100.0 * pos[..., None] * dim_mat                           # (B, n, n, 4, 8)
    mul = mul.reshape(B, n, n, -1)                                   # (B, n, n, 32)
    return jnp.concatenate([jnp.sin(mul), jnp.cos(mul)], axis=-1)    # (B, n, n, 64)


# ----------------------------- full encoder forward ---------------------------
def multi_level_encoder(params, regions, grids, boxes, aligns,
                        region_embed=None, grid_embed=None):
    B, nr, d = regions.shape
    ng = grids.shape[1]
    nr_pad = _round_up(nr, 8)
    ng_pad = _round_up(ng, 8)

    def pad_tokens(x, n_to):
        pad = n_to - x.shape[1]
        return x if pad == 0 else jnp.pad(x, ((0, 0), (0, pad), (0, 0)))

    if region_embed is None:
        region_embed = jnp.zeros_like(regions)
    if grid_embed is None:
        grid_embed = jnp.zeros_like(grids)

    regions_p = pad_tokens(regions, nr_pad)
    grids_p = pad_tokens(grids, ng_pad)
    rpos_p = pad_tokens(region_embed, nr_pad)
    gpos_p = pad_tokens(grid_embed, ng_pad)

    # Padding masks (token masked if any feature == 0); zero-padded rows are
    # masked automatically.  NEG_INF stands in for masked_fill(-inf).
    mask_region_p = (jnp.sum(regions_p == 0, axis=-1) != 0)          # (B, nr_pad)
    mask_grid_p = (jnp.sum(grids_p == 0, axis=-1) != 0)              # (B, ng_pad)
    bias_region = jnp.where(mask_region_p, NEG_INF, 0.0).astype(jnp.float32)[:, None, :]
    bias_grid = jnp.where(mask_grid_p, NEG_INF, 0.0).astype(jnp.float32)[:, None, :]

    # Relative geometry weights: relu(WGs(AllRelationalEmbedding(boxes))),
    # computed in plain XLA with a lane-dense (B, H, n, n) output.
    # TODO(synk): kept outside Pallas by design (one-off kilobyte matmul).
    boxes_p = jnp.concatenate([pad_tokens(boxes[:, :nr], nr_pad),
                               pad_tokens(boxes[:, nr:nr + ng], ng_pad)], axis=1)
    rel_emb = all_relational_embedding(boxes_p)                      # (B, np, np, 64)
    rgw = jax.nn.relu(jnp.einsum('bqkg,gh->bhqk', rel_emb, params['wg_w'])
                      + params['wg_b'][None, :, None, None])         # (B, H, np, np)
    region2region = rgw[:, :, :nr_pad, :nr_pad]
    grid2grid = rgw[:, :, nr_pad:, nr_pad:]
    region2grid = rgw[:, :, :nr_pad, nr_pad:]

    aligns_p = jnp.pad(aligns, ((0, 0), (0, nr_pad - nr), (0, ng_pad - ng)))
    aligns_t = jnp.transpose(aligns_p, (0, 2, 1))

    fold_batch = _default_fold_batch()

    out_region = regions_p
    out_grid = grids_p
    for lp in params['layers']:
        out = encoder_layer(lp, out_region, out_grid, rpos_p, gpos_p,
                            region2grid, region2region, grid2grid,
                            aligns_p, aligns_t, bias_region, bias_grid,
                            fold_batch)
        out_region = out[:, :nr_pad]
        out_grid = out[:, nr_pad:]

    out = jnp.concatenate([out_region[:, :nr], out_grid[:, :ng]], axis=1)
    attention_mask = jnp.concatenate([mask_region_p[:, :nr],
                                      mask_grid_p[:, :ng]], axis=-1)[:, None, None, :]
    return out, attention_mask


# ----------------------------- parameter init ---------------------------------
def _w(key, shape, scale=0.02):
    return (scale * jax.random.normal(key, shape)).astype(jnp.float32)


def init_mha(key, glu=False):
    ks = jax.random.split(key, 5)
    p = {'wq': _w(ks[0], (D_MODEL, HK)), 'bq': jnp.zeros((1, HK), jnp.float32),
         'wk': _w(ks[1], (D_MODEL, HK)), 'bk': jnp.zeros((1, HK), jnp.float32),
         'wv': _w(ks[2], (D_MODEL, HV)), 'bv': jnp.zeros((1, HV), jnp.float32),
         'wo': _w(ks[3], (HV, D_MODEL)), 'bo': jnp.zeros((1, D_MODEL), jnp.float32),
         'ln_g': jnp.ones((1, D_MODEL), jnp.float32),
         'ln_b': jnp.zeros((1, D_MODEL), jnp.float32)}
    if glu:
        p['wg'] = _w(ks[4], (HV, D_MODEL))
        p['bg'] = jnp.zeros((1, D_MODEL), jnp.float32)
    return p


def init_attmat(key):
    k1, k2 = jax.random.split(key)
    return {'wq': _w(k1, (D_MODEL, HK)), 'bq': jnp.zeros((1, HK), jnp.float32),
            'wk': _w(k2, (D_MODEL, HK)), 'bk': jnp.zeros((1, HK), jnp.float32)}


def init_pwff(key):
    k1, k2 = jax.random.split(key)
    return {'w1': _w(k1, (D_MODEL, D_FF)), 'b1': jnp.zeros((1, D_FF), jnp.float32),
            'w2': _w(k2, (D_FF, D_MODEL)), 'b2': jnp.zeros((1, D_MODEL), jnp.float32),
            'ln_g': jnp.ones((1, D_MODEL), jnp.float32),
            'ln_b': jnp.zeros((1, D_MODEL), jnp.float32)}


def init_self_att(key):
    k1, k2 = jax.random.split(key)
    return {'mhatt': init_mha(k1),
            'ln_g': jnp.ones((1, D_MODEL), jnp.float32),
            'ln_b': jnp.zeros((1, D_MODEL), jnp.float32),
            'pwff': init_pwff(k2)}


def init_goc(key):
    k1, k2, k3 = jax.random.split(key, 3)
    return {'mhatt': init_mha(k1, glu=True),
            'attmat': init_attmat(k2),
            'ln_g': jnp.ones((1, D_MODEL), jnp.float32),
            'ln_b': jnp.zeros((1, D_MODEL), jnp.float32),
            'pwff': init_pwff(k3)}


def init_encoder(key):
    keys = jax.random.split(key, N_LAYERS * 3 + 2)
    layers = []
    for li in range(N_LAYERS):
        layers.append({'sa': init_self_att(keys[3 * li]),
                       'grid': init_self_att(keys[3 * li + 1]),
                       'goc': init_goc(keys[3 * li + 2])})
    return {'layers': layers,
            'wg_w': _w(keys[-2], (DIM_G, H)),
            'wg_b': jnp.zeros((H,), jnp.float32)}


# ----------------------------- main --------------------------------------------
if __name__ == "__main__":
    key = jax.random.PRNGKey(0)
    k_par, k_reg, k_grd, k_b1, k_b2, k_al, k_re, k_ge = jax.random.split(key, 8)

    params = init_encoder(k_par)

    regions = jax.random.normal(k_reg, (BATCH, N_REGIONS, D_MODEL), jnp.float32)
    grids = jax.random.normal(k_grd, (BATCH, N_GRIDS, D_MODEL), jnp.float32)

    n_total = N_REGIONS + N_GRIDS
    xy_min = jax.random.uniform(k_b1, (BATCH, n_total, 2), minval=0.0, maxval=0.5)
    wh = jax.random.uniform(k_b2, (BATCH, n_total, 2), minval=0.05, maxval=0.5)
    boxes = jnp.concatenate([xy_min, xy_min + wh], axis=-1).astype(jnp.float32)

    aligns = (jax.random.uniform(k_al, (BATCH, N_REGIONS, N_GRIDS)) > 0.5).astype(jnp.float32)
    region_embed = jax.random.normal(k_re, (BATCH, N_REGIONS, D_MODEL), jnp.float32)
    grid_embed = jax.random.normal(k_ge, (BATCH, N_GRIDS, D_MODEL), jnp.float32)

    fwd = jax.jit(multi_level_encoder)
    out, attn_mask = fwd(params, regions, grids, boxes, aligns,
                         region_embed=region_embed, grid_embed=grid_embed)
    out = jax.block_until_ready(out)
    attn_mask = jax.block_until_ready(attn_mask)

    assert out.shape == (BATCH, N_REGIONS + N_GRIDS, D_MODEL)
    assert attn_mask.shape == (BATCH, 1, 1, N_REGIONS + N_GRIDS)
    assert bool(jnp.all(jnp.isfinite(out)))
    print("KERNEL_OK")
</pallas_src>

<mosaic_0001>
module attributes {stable_mosaic.version = 11 : i64} {
  func.func @_encoder_layer_kernel(%arg0: i32, %arg1: memref<1x16x32xf32, #tpu.memory_space<vmem>>, %arg2: memref<1x16x32xf32, #tpu.memory_space<vmem>>, %arg3: memref<1x16x32xf32, #tpu.memory_space<vmem>>, %arg4: memref<1x16x32xf32, #tpu.memory_space<vmem>>, %arg5: memref<1x4x16x16xf32, #tpu.memory_space<vmem>>, %arg6: memref<1x4x16x16xf32, #tpu.memory_space<vmem>>, %arg7: memref<1x4x16x16xf32, #tpu.memory_space<vmem>>, %arg8: memref<1x16x16xf32, #tpu.memory_space<vmem>>, %arg9: memref<1x16x16xf32, #tpu.memory_space<vmem>>, %arg10: memref<1x1x16xf32, #tpu.memory_space<vmem>>, %arg11: memref<1x1x16xf32, #tpu.memory_space<vmem>>, %arg12: memref<920x128xf32, #tpu.memory_space<vmem>>, %arg13: memref<1x32x32xf32, #tpu.memory_space<vmem>>) attributes {dimension_semantics = [#tpu.dimension_semantics<parallel>], iteration_bounds = array<i64: 2>, scalar_prefetch = 0 : i64, scratch_operands = 0 : i64, tpu.core_type = #tpu.core_type<tc>, window_params = [{transform_indices = @transform_0, window_bounds = array<i64: 1, 16, 32>}, {transform_indices = @transform_1, window_bounds = array<i64: 1, 16, 32>}, {transform_indices = @transform_2, window_bounds = array<i64: 1, 16, 32>}, {transform_indices = @transform_3, window_bounds = array<i64: 1, 16, 32>}, {transform_indices = @transform_4, window_bounds = array<i64: 1, 4, 16, 16>}, {transform_indices = @transform_5, window_bounds = array<i64: 1, 4, 16, 16>}, {transform_indices = @transform_6, window_bounds = array<i64: 1, 4, 16, 16>}, {transform_indices = @transform_7, window_bounds = array<i64: 1, 16, 16>}, {transform_indices = @transform_8, window_bounds = array<i64: 1, 16, 16>}, {transform_indices = @transform_9, window_bounds = array<i64: 1, 1, 16>}, {transform_indices = @transform_10, window_bounds = array<i64: 1, 1, 16>}, {pipeline_mode = #tpu.pipeline_mode<synchronous>, transform_indices = @transform_11, window_bounds = array<i64: 920, 128>}, {transform_indices = @transform_12, window_bounds = array<i64: 1, 32, 32>}]} {
    %c0 = arith.constant 0 : index
    %c0_0 = arith.constant 0 : index
    %c0_1 = arith.constant 0 : index
    %0 = vector.load %arg1[%c0, %c0_0, %c0_1] : memref<1x16x32xf32, #tpu.memory_space<vmem>>, vector<1x16x32xf32>
    %1 = vector.shape_cast %0 : vector<1x16x32xf32> to vector<16x32xf32>
    %c0_2 = arith.constant 0 : index
    %c0_3 = arith.constant 0 : index
    %c0_4 = arith.constant 0 : index
    %2 = vector.load %arg2[%c0_2, %c0_3, %c0_4] : memref<1x16x32xf32, #tpu.memory_space<vmem>>, vector<1x16x32xf32>
    %3 = vector.shape_cast %2 : vector<1x16x32xf32> to vector<16x32xf32>
    %c0_5 = arith.constant 0 : index
    %c0_6 = arith.constant 0 : index
    %c0_7 = arith.constant 0 : index
    %4 = vector.load %arg3[%c0_5, %c0_6, %c0_7] : memref<1x16x32xf32, #tpu.memory_space<vmem>>, vector<1x16x32xf32>
    %5 = vector.shape_cast %4 : vector<1x16x32xf32> to vector<16x32xf32>
    %6 = arith.addf %1, %5 : vector<16x32xf32>
    %c0_8 = arith.constant 0 : index
    %c0_9 = arith.constant 0 : index
    %c0_10 = arith.constant 0 : index
    %7 = vector.load %arg4[%c0_8, %c0_9, %c0_10] : memref<1x16x32xf32, #tpu.memory_space<vmem>>, vector<1x16x32xf32>
    %8 = vector.shape_cast %7 : vector<1x16x32xf32> to vector<16x32xf32>
    %9 = arith.addf %3, %8 : vector<16x32xf32>
    %c0_11 = arith.constant 0 : index
    %c0_12 = arith.constant 0 : index
    %c0_13 = arith.constant 0 : index
    %10 = vector.load %arg10[%c0_11, %c0_12, %c0_13] : memref<1x1x16xf32, #tpu.memory_space<vmem>>, vector<1x1x16xf32>
    %11 = vector.shape_cast %10 : vector<1x1x16xf32> to vector<1x16xf32>
    %c0_14 = arith.constant 0 : index
    %c0_15 = arith.constant 0 : index
    %c0_16 = arith.constant 0 : index
    %12 = vector.load %arg11[%c0_14, %c0_15, %c0_16] : memref<1x1x16xf32, #tpu.memory_space<vmem>>, vector<1x1x16xf32>
    %13 = vector.shape_cast %12 : vector<1x1x16xf32> to vector<1x16xf32>
    %c0_17 = arith.constant 0 : index
    %c0_18 = arith.constant 0 : index
    %c0_19 = arith.constant 0 : index
    %c0_20 = arith.constant 0 : index
    %14 = vector.load %arg5[%c0_17, %c0_18, %c0_19, %c0_20] : memref<1x4x16x16xf32, #tpu.memory_space<vmem>>, vector<1x4x16x16xf32>
    %15 = vector.shape_cast %14 : vector<1x4x16x16xf32> to vector<4x16x16xf32>
    %c0_21 = arith.constant 0 : index
    %c0_22 = arith.constant 0 : index
    %c0_23 = arith.constant 0 : index
    %c0_24 = arith.constant 0 : index
    %16 = vector.load %arg6[%c0_21, %c0_22, %c0_23, %c0_24] : memref<1x4x16x16xf32, #tpu.memory_space<vmem>>, vector<1x4x16x16xf32>
    %17 = vector.shape_cast %16 : vector<1x4x16x16xf32> to vector<4x16x16xf32>
    %c0_25 = arith.constant 0 : index
    %c0_26 = arith.constant 0 : index
    %c0_27 = arith.constant 0 : index
    %c0_28 = arith.constant 0 : index
    %18 = vector.load %arg7[%c0_25, %c0_26, %c0_27, %c0_28] : memref<1x4x16x16xf32, #tpu.memory_space<vmem>>, vector<1x4x16x16xf32>
    %19 = vector.shape_cast %18 : vector<1x4x16x16xf32> to vector<4x16x16xf32>
    %c0_29 = arith.constant 0 : index
    %c0_30 = arith.constant 0 : index
    %c0_31 = arith.constant 0 : index
    %20 = vector.load %arg8[%c0_29, %c0_30, %c0_31] : memref<1x16x16xf32, #tpu.memory_space<vmem>>, vector<1x16x16xf32>
    %21 = vector.shape_cast %20 : vector<1x16x16xf32> to vector<16x16xf32>
    %c0_32 = arith.constant 0 : index
    %c0_33 = arith.constant 0 : index
    %c0_34 = arith.constant 0 : index
    %22 = vector.load %arg9[%c0_32, %c0_33, %c0_34] : memref<1x16x16xf32, #tpu.memory_space<vmem>>, vector<1x16x16xf32>
    %23 = vector.shape_cast %22 : vector<1x16x16xf32> to vector<16x16xf32>
    %c0_35 = arith.constant 0 : index
    %c0_36 = arith.constant 0 : index
    %24 = vector.load %arg12[%c0_35, %c0_36] : memref<920x128xf32, #tpu.memory_space<vmem>>, vector<32x32xf32>
    %c256 = arith.constant 256 : index
    %c0_37 = arith.constant 0 : index
    %25 = vector.load %arg12[%c256, %c0_37] : memref<920x128xf32, #tpu.memory_space<vmem>>, vector<1x32xf32>
    %cst = arith.constant dense<0.000000e+00> : vector<16x32xf32>
    %26 = tpu.matmul %6, %24, %cst {dimension_numbers = #tpu.dot_dimension_numbers<[1], [0], [0], [1], [0, 0, 1, 1], [], []>} : vector<16x32xf32>, vector<32x32xf32>, vector<16x32xf32> -> vector<16x32xf32>
    %27 = vector.broadcast %25 : vector<1x32xf32> to vector<16x32xf32>
    %28 = arith.addf %26, %27 : vector<16x32xf32>
    %c32 = arith.constant 32 : index
    %c0_38 = arith.constant 0 : index
    %29 = vector.load %arg12[%c32, %c0_38] : memref<920x128xf32, #tpu.memory_space<vmem>>, vector<32x32xf32>
    %c264 = arith.constant 264 : index
    %c0_39 = arith.constant 0 : index
    %30 = vector.load %arg12[%c264, %c0_39] : memref<920x128xf32, #tpu.memory_space<vmem>>, vector<1x32xf32>
    %cst_40 = arith.constant dense<0.000000e+00> : vector<16x32xf32>
    %31 = tpu.matmul %9, %29, %cst_40 {dimension_numbers = #tpu.dot_dimension_numbers<[1], [0], [0], [1], [0, 0, 1, 1], [], []>} : vector<16x32xf32>, vector<32x32xf32>, vector<16x32xf32> -> vector<16x32xf32>
    %32 = vector.broadcast %30 : vector<1x32xf32> to vector<16x32xf32>
    %33 = arith.addf %31, %32 : vector<16x32xf32>
    %c64 = arith.constant 64 : index
    %c0_41 = arith.constant 0 : index
    %34 = vector.load %arg12[%c64, %c0_41] : memref<920x128xf32, #tpu.memory_space<vmem>>, vector<32x32xf32>
    %c272 = arith.constant 272 : index
    %c0_42 = arith.constant 0 : index
    %35 = vector.load %arg12[%c272, %c0_42] : memref<920x128xf32, #tpu.memory_space<vmem>>, vector<1x32xf32>
    %cst_43 = arith.constant dense<0.000000e+00> : vector<16x32xf32>
    %36 = tpu.matmul %3, %34, %cst_43 {dimension_numbers = #tpu.dot_dimension_numbers<[1], [0], [0], [1], [0, 0, 1, 1], [], []>} : vector<16x32xf32>, vector<32x32xf32>, vector<16x32xf32> -> vector<16x32xf32>
    %37 = vector.broadcast %35 : vector<1x32xf32> to vector<16x32xf32>
    %38 = arith.addf %36, %37 : vector<16x32xf32>
    %39 = vector.extract_strided_slice %28 {offsets = [0, 0], sizes = [16, 8], strides = [1, 1]} : vector<16x32xf32> to vector<16x8xf32>
    %40 = vector.extract_strided_slice %33 {offsets = [0, 0], sizes = [16, 8], strides = [1, 1]} : vector<16x32xf32> to vector<16x8xf32>
    %41 = vector.extract_strided_slice %38 {offsets = [0, 0], sizes = [16, 8], strides = [1, 1]} : vector<16x32xf32> to vector<16x8xf32>
    "tpu.trace_start"() <{level = 10 : i32, message = "qd,kd->qk"}> : () -> ()
    %cst_44 = arith.constant dense<0.000000e+00> : vector<16x16xf32>
    %42 = tpu.matmul %39, %40, %cst_44 {dimension_numbers = #tpu.dot_dimension_numbers<[1], [1], [0], [0], [0, 0, 1, 0], [], []>} : vector<16x8xf32>, vector<16x8xf32>, vector<16x16xf32> -> vector<16x16xf32>
    "tpu.trace_stop"() : () -> ()
    %43 = vector.extract_strided_slice %15 {offsets = [0, 0, 0], sizes = [1, 16, 16], strides = [1, 1, 1]} : vector<4x16x16xf32> to vector<1x16x16xf32>
    %44 = vector.shape_cast %43 : vector<1x16x16xf32> to vector<16x16xf32>
    %cst_45 = arith.constant 9.99999997E-7 : f32
    %45 = vector.broadcast %cst_45 : f32 to vector<16x16xf32>
    %46 = arith.maximumf %44, %45 : vector<16x16xf32>
    %47 = math.log %46 : vector<16x16xf32>
    %48 = arith.addf %47, %42 : vector<16x16xf32>
    %49 = vector.broadcast %13 : vector<1x16xf32> to vector<16x16xf32>
    %50 = arith.addf %48, %49 : vector<16x16xf32>
    %cst_46 = arith.constant dense<0xFF800000> : vector<16xf32>
    %51 = vector.multi_reduction <maximumf>, %50, %cst_46 [1] : vector<16x16xf32> to vector<16xf32>
    %52 = vector.shape_cast %51 : vector<16xf32> to vector<16x1xf32>
    %53 = vector.broadcast %52 : vector<16x1xf32> to vector<16x16xf32>
    %54 = arith.subf %50, %53 : vector<16x16xf32>
    %55 = math.exp %54 : vector<16x16xf32>
    %cst_47 = arith.constant dense<0.000000e+00> : vector<16xf32>
    %56 = vector.multi_reduction <add>, %55, %cst_47 [1] : vector<16x16xf32> to vector<16xf32>
    %57 = vector.shape_cast %56 : vector<16xf32> to vector<16x1xf32>
    %58 = vector.broadcast %57 : vector<16x1xf32> to vector<16x16xf32>
    %59 = arith.divf %55, %58 : vector<16x16xf32>
    %cst_48 = arith.constant dense<0.000000e+00> : vector<16x8xf32>
    %60 = tpu.matmul %59, %41, %cst_48 {dimension_numbers = #tpu.dot_dimension_numbers<[1], [0], [0], [1], [0, 0, 1, 1], [], []>} : vector<16x16xf32>, vector<16x8xf32>, vector<16x8xf32> -> vector<16x8xf32>
    %61 = vector.extract_strided_slice %28 {offsets = [0, 8], sizes = [16, 8], strides = [1, 1]} : vector<16x32xf32> to vector<16x8xf32>
    %62 = vector.extract_strided_slice %33 {offsets = [0, 8], sizes = [16, 8], strides = [1, 1]} : vector<16x32xf32> to vector<16x8xf32>
    %63 = vector.extract_strided_slice %38 {offsets = [0, 8], sizes = [16, 8], strides = [1, 1]} : vector<16x32xf32> to vector<16x8xf32>
    "tpu.trace_start"() <{level = 10 : i32, message = "qd,kd->qk"}> : () -> ()
    %cst_49 = arith.constant dense<0.000000e+00> : vector<16x16xf32>
    %64 = tpu.matmul %61, %62, %cst_49 {dimension_numbers = #tpu.dot_dimension_numbers<[1], [1], [0], [0], [0, 0, 1, 0], [], []>} : vector<16x8xf32>, vector<16x8xf32>, vector<16x16xf32> -> vector<16x16xf32>
    "tpu.trace_stop"() : () -> ()
    %65 = vector.extract_strided_slice %15 {offsets = [1, 0, 0], sizes = [1, 16, 16], strides = [1, 1, 1]} : vector<4x16x16xf32> to vector<1x16x16xf32>
    %66 = vector.shape_cast %65 : vector<1x16x16xf32> to vector<16x16xf32>
    %cst_50 = arith.constant 9.99999997E-7 : f32
    %67 = vector.broadcast %cst_50 : f32 to vector<16x16xf32>
    %68 = arith.maximumf %66, %67 : vector<16x16xf32>
    %69 = math.log %68 : vector<16x16xf32>
    %70 = arith.addf %69, %64 : vector<16x16xf32>
    %71 = vector.broadcast %13 : vector<1x16xf32> to vector<16x16xf32>
    %72 = arith.addf %70, %71 : vector<16x16xf32>
    %cst_51 = arith.constant dense<0xFF800000> : vector<16xf32>
    %73 = vector.multi_reduction <maximumf>, %72, %cst_51 [1] : vector<16x16xf32> to vector<16xf32>
    %74 = vector.shape_cast %73 : vector<16xf32> to vector<16x1xf32>
    %75 = vector.broadcast %74 : vector<16x1xf32> to vector<16x16xf32>
    %76 = arith.subf %72, %75 : vector<16x16xf32>
    %77 = math.exp %76 : vector<16x16xf32>
    %cst_52 = arith.constant dense<0.000000e+00> : vector<16xf32>
    %78 = vector.multi_reduction <add>, %77, %cst_52 [1] : vector<16x16xf32> to vector<16xf32>
    %79 = vector.shape_cast %78 : vector<16xf32> to vector<16x1xf32>
    %80 = vector.broadcast %79 : vector<16x1xf32> to vector<16x16xf32>
    %81 = arith.divf %77, %80 : vector<16x16xf32>
    %cst_53 = arith.constant dense<0.000000e+00> : vector<16x8xf32>
    %82 = tpu.matmul %81, %63, %cst_53 {dimension_numbers = #tpu.dot_dimension_numbers<[1], [0], [0], [1], [0, 0, 1, 1], [], []>} : vector<16x16xf32>, vector<16x8xf32>, vector<16x8xf32> -> vector<16x8xf32>
    %83 = vector.extract_strided_slice %28 {offsets = [0, 16], sizes = [16, 8], strides = [1, 1]} : vector<16x32xf32> to vector<16x8xf32>
    %84 = vector.extract_strided_slice %33 {offsets = [0, 16], sizes = [16, 8], strides = [1, 1]} : vector<16x32xf32> to vector<16x8xf32>
    %85 = vector.extract_strided_slice %38 {offsets = [0, 16], sizes = [16, 8], strides = [1, 1]} : vector<16x32xf32> to vector<16x8xf32>
    "tpu.trace_start"() <{level = 10 : i32, message = "qd,kd->qk"}> : () -> ()
    %cst_54 = arith.constant dense<0.000000e+00> : vector<16x16xf32>
    %86 = tpu.matmul %83, %84, %cst_54 {dimension_numbers = #tpu.dot_dimension_numbers<[1], [1], [0], [0], [0, 0, 1, 0], [], []>} : vector<16x8xf32>, vector<16x8xf32>, vector<16x16xf32> -> vector<16x16xf32>
    "tpu.trace_stop"() : () -> ()
    %87 = vector.extract_strided_slice %15 {offsets = [2, 0, 0], sizes = [1, 16, 16], strides = [1, 1, 1]} : vector<4x16x16xf32> to vector<1x16x16xf32>
    %88 = vector.shape_cast %87 : vector<1x16x16xf32> to vector<16x16xf32>
    %cst_55 = arith.constant 9.99999997E-7 : f32
    %89 = vector.broadcast %cst_55 : f32 to vector<16x16xf32>
    %90 = arith.maximumf %88, %89 : vector<16x16xf32>
    %91 = math.log %90 : vector<16x16xf32>
    %92 = arith.addf %91, %86 : vector<16x16xf32>
    %93 = vector.broadcast %13 : vector<1x16xf32> to vector<16x16xf32>
    %94 = arith.addf %92, %93 : vector<16x16xf32>
    %cst_56 = arith.constant dense<0xFF800000> : vector<16xf32>
    %95 = vector.multi_reduction <maximumf>, %94, %cst_56 [1] : vector<16x16xf32> to vector<16xf32>
    %96 = vector.shape_cast %95 : vector<16xf32> to vector<16x1xf32>
    %97 = vector.broadcast %96 : vector<16x1xf32> to vector<16x16xf32>
    %98 = arith.subf %94, %97 : vector<16x16xf32>
    %99 = math.exp %98 : vector<16x16xf32>
    %cst_57 = arith.constant dense<0.000000e+00> : vector<16xf32>
    %100 = vector.multi_reduction <add>, %99, %cst_57 [1] : vector<16x16xf32> to vector<16xf32>
    %101 = vector.shape_cast %100 : vector<16xf32> to vector<16x1xf32>
    %102 = vector.broadcast %101 : vector<16x1xf32> to vector<16x16xf32>
    %103 = arith.divf %99, %102 : vector<16x16xf32>
    %cst_58 = arith.constant dense<0.000000e+00> : vector<16x8xf32>
    %104 = tpu.matmul %103, %85, %cst_58 {dimension_numbers = #tpu.dot_dimension_numbers<[1], [0], [0], [1], [0, 0, 1, 1], [], []>} : vector<16x16xf32>, vector<16x8xf32>, vector<16x8xf32> -> vector<16x8xf32>
    %105 = vector.extract_strided_slice %28 {offsets = [0, 24], sizes = [16, 8], strides = [1, 1]} : vector<16x32xf32> to vector<16x8xf32>
    %106 = vector.extract_strided_slice %33 {offsets = [0, 24], sizes = [16, 8], strides = [1, 1]} : vector<16x32xf32> to vector<16x8xf32>
    %107 = vector.extract_strided_slice %38 {offsets = [0, 24], sizes = [16, 8], strides = [1, 1]} : vector<16x32xf32> to vector<16x8xf32>
    "tpu.trace_start"() <{level = 10 : i32, message = "qd,kd->qk"}> : () -> ()
    %cst_59 = arith.constant dense<0.000000e+00> : vector<16x16xf32>
    %108 = tpu.matmul %105, %106, %cst_59 {dimension_numbers = #tpu.dot_dimension_numbers<[1], [1], [0], [0], [0, 0, 1, 0], [], []>} : vector<16x8xf32>, vector<16x8xf32>, vector<16x16xf32> -> vector<16x16xf32>
    "tpu.trace_stop"() : () -> ()
    %109 = vector.extract_strided_slice %15 {offsets = [3, 0, 0], sizes = [1, 16, 16], strides = [1, 1, 1]} : vector<4x16x16xf32> to vector<1x16x16xf32>
    %110 = vector.shape_cast %109 : vector<1x16x16xf32> to vector<16x16xf32>
    %cst_60 = arith.constant 9.99999997E-7 : f32
    %111 = vector.broadcast %cst_60 : f32 to vector<16x16xf32>
    %112 = arith.maximumf %110, %111 : vector<16x16xf32>
    %113 = math.log %112 : vector<16x16xf32>
    %114 = arith.addf %113, %108 : vector<16x16xf32>
    %115 = vector.broadcast %13 : vector<1x16xf32> to vector<16x16xf32>
    %116 = arith.addf %114, %115 : vector<16x16xf32>
    %cst_61 = arith.constant dense<0xFF800000> : vector<16xf32>
    %117 = vector.multi_reduction <maximumf>, %116, %cst_61 [1] : vector<16x16xf32> to vector<16xf32>
    %118 = vector.shape_cast %117 : vector<16xf32> to vector<16x1xf32>
    %119 = vector.broadcast %118 : vector<16x1xf32> to vector<16x16xf32>
    %120 = arith.subf %116, %119 : vector<16x16xf32>
    %121 = math.exp %120 : vector<16x16xf32>
    %cst_62 = arith.constant dense<0.000000e+00> : vector<16xf32>
    %122 = vector.multi_reduction <add>, %121, %cst_62 [1] : vector<16x16xf32> to vector<16xf32>
    %123 = vector.shape_cast %122 : vector<16xf32> to vector<16x1xf32>
    %124 = vector.broadcast %123 : vector<16x1xf32> to vector<16x16xf32>
    %125 = arith.divf %121, %124 : vector<16x16xf32>
    %cst_63 = arith.constant dense<0.000000e+00> : vector<16x8xf32>
    %126 = tpu.matmul %125, %107, %cst_63 {dimension_numbers = #tpu.dot_dimension_numbers<[1], [0], [0], [1], [0, 0, 1, 1], [], []>} : vector<16x16xf32>, vector<16x8xf32>, vector<16x8xf32> -> vector<16x8xf32>
    %127 = tpu.concatenate %60, %82, %104, %126 in 1 : vector<16x8xf32>, vector<16x8xf32>, vector<16x8xf32>, vector<16x8xf32> -> vector<16x32xf32>
    %c96 = arith.constant 96 : index
    %c0_64 = arith.constant 0 : index
    %128 = vector.load %arg12[%c96, %c0_64] : memref<920x128xf32, #tpu.memory_space<vmem>>, vector<32x64xf32>
    %c280 = arith.constant 280 : index
    %c0_65 = arith.constant 0 : index
    %129 = vector.load %arg12[%c280, %c0_65] : memref<920x128xf32, #tpu.memory_space<vmem>>, vector<1x64xf32>
    %cst_66 = arith.constant dense<0.000000e+00> : vector<16x64xf32>
    %130 = tpu.matmul %127, %128, %cst_66 {dimension_numbers = #tpu.dot_dimension_numbers<[1], [0], [0], [1], [0, 0, 1, 1], [], []>} : vector<16x32xf32>, vector<32x64xf32>, vector<16x64xf32> -> vector<16x64xf32>
    %131 = vector.broadcast %129 : vector<1x64xf32> to vector<16x64xf32>
    %132 = arith.addf %130, %131 : vector<16x64xf32>
    %133 = vector.extract_strided_slice %132 {offsets = [0, 0], sizes = [16, 32], strides = [1, 1]} : vector<16x64xf32> to vector<16x32xf32>
    %134 = vector.extract_strided_slice %132 {offsets = [0, 32], sizes = [16, 32], strides = [1, 1]} : vector<16x64xf32> to vector<16x32xf32>
    %135 = arith.negf %134 : vector<16x32xf32>
    %136 = math.exp %135 : vector<16x32xf32>
    %cst_67 = arith.constant 1.000000e+00 : f32
    %137 = vector.broadcast %cst_67 : f32 to vector<16x32xf32>
    %138 = arith.addf %137, %136 : vector<16x32xf32>
    %139 = arith.divf %137, %138 : vector<16x32xf32>
    %140 = arith.mulf %133, %139 : vector<16x32xf32>
    %141 = arith.addf %6, %140 : vector<16x32xf32>
    %c288 = arith.constant 288 : index
    %c0_68 = arith.constant 0 : index
    %142 = vector.load %arg12[%c288, %c0_68] : memref<920x128xf32, #tpu.memory_space<vmem>>, vector<1x32xf32>
    %c296 = arith.constant 296 : index
    %c0_69 = arith.constant 0 : index
    %143 = vector.load %arg12[%c296, %c0_69] : memref<920x128xf32, #tpu.memory_space<vmem>>, vector<1x32xf32>
    %cst_70 = arith.constant dense<0.000000e+00> : vector<16xf32>
    %144 = vector.multi_reduction <add>, %141, %cst_70 [1] : vector<16x32xf32> to vector<16xf32>
    %145 = vector.shape_cast %144 : vector<16xf32> to vector<16x1xf32>
    %cst_71 = arith.constant 3.200000e+01 : f32
    %146 = vector.broadcast %cst_71 : f32 to vector<16x1xf32>
    %147 = arith.divf %145, %146 : vector<16x1xf32>
    %148 = vector.broadcast %147 : vector<16x1xf32> to vector<16x32xf32>
    %149 = arith.subf %141, %148 : vector<16x32xf32>
    %150 = arith.mulf %149, %149 : vector<16x32xf32>
    %cst_72 = arith.constant dense<0.000000e+00> : vector<16xf32>
    %151 = vector.multi_reduction <add>, %150, %cst_72 [1] : vector<16x32xf32> to vector<16xf32>
    %152 = vector.shape_cast %151 : vector<16xf32> to vector<16x1xf32>
    %cst_73 = arith.constant 3.200000e+01 : f32
    %153 = vector.broadcast %cst_73 : f32 to vector<16x1xf32>
    %154 = arith.divf %152, %153 : vector<16x1xf32>
    %155 = vector.broadcast %147 : vector<16x1xf32> to vector<16x32xf32>
    %156 = arith.subf %141, %155 : vector<16x32xf32>
    %cst_74 = arith.constant 9.99999974E-6 : f32
    %157 = vector.broadcast %cst_74 : f32 to vector<16x1xf32>
    %158 = arith.addf %154, %157 : vector<16x1xf32>
    %159 = math.rsqrt %158 : vector<16x1xf32>
    %160 = vector.broadcast %159 : vector<16x1xf32> to vector<16x32xf32>
    %161 = arith.mulf %156, %160 : vector<16x32xf32>
    %162 = vector.broadcast %142 : vector<1x32xf32> to vector<16x32xf32>
    %163 = arith.mulf %161, %162 : vector<16x32xf32>
    %164 = vector.broadcast %143 : vector<1x32xf32> to vector<16x32xf32>
    %165 = arith.addf %163, %164 : vector<16x32xf32>
    %166 = arith.addf %1, %165 : vector<16x32xf32>
    %c304 = arith.constant 304 : index
    %c0_75 = arith.constant 0 : index
    %167 = vector.load %arg12[%c304, %c0_75] : memref<920x128xf32, #tpu.memory_space<vmem>>, vector<1x32xf32>
    %c312 = arith.constant 312 : index
    %c0_76 = arith.constant 0 : index
    %168 = vector.load %arg12[%c312, %c0_76] : memref<920x128xf32, #tpu.memory_space<vmem>>, vector<1x32xf32>
    %cst_77 = arith.constant dense<0.000000e+00> : vector<16xf32>
    %169 = vector.multi_reduction <add>, %166, %cst_77 [1] : vector<16x32xf32> to vector<16xf32>
    %170 = vector.shape_cast %169 : vector<16xf32> to vector<16x1xf32>
    %cst_78 = arith.constant 3.200000e+01 : f32
    %171 = vector.broadcast %cst_78 : f32 to vector<16x1xf32>
    %172 = arith.divf %170, %171 : vector<16x1xf32>
    %173 = vector.broadcast %172 : vector<16x1xf32> to vector<16x32xf32>
    %174 = arith.subf %166, %173 : vector<16x32xf32>
    %175 = arith.mulf %174, %174 : vector<16x32xf32>
    %cst_79 = arith.constant dense<0.000000e+00> : vector<16xf32>
    %176 = vector.multi_reduction <add>, %175, %cst_79 [1] : vector<16x32xf32> to vector<16xf32>
    %177 = vector.shape_cast %176 : vector<16xf32> to vector<16x1xf32>
    %cst_80 = arith.constant 3.200000e+01 : f32
    %178 = vector.broadcast %cst_80 : f32 to vector<16x1xf32>
    %179 = arith.divf %177, %178 : vector<16x1xf32>
    %180 = vector.broadcast %172 : vector<16x1xf32> to vector<16x32xf32>
    %181 = arith.subf %166, %180 : vector<16x32xf32>
    %cst_81 = arith.constant 9.99999974E-6 : f32
    %182 = vector.broadcast %cst_81 : f32 to vector<16x1xf32>
    %183 = arith.addf %179, %182 : vector<16x1xf32>
    %184 = math.rsqrt %183 : vector<16x1xf32>
    %185 = vector.broadcast %184 : vector<16x1xf32> to vector<16x32xf32>
    %186 = arith.mulf %181, %185 : vector<16x32xf32>
    %187 = vector.broadcast %167 : vector<1x32xf32> to vector<16x32xf32>
    %188 = arith.mulf %186, %187 : vector<16x32xf32>
    %189 = vector.broadcast %168 : vector<1x32xf32> to vector<16x32xf32>
    %190 = arith.addf %188, %189 : vector<16x32xf32>
    %c128 = arith.constant 128 : index
    %c0_82 = arith.constant 0 : index
    %191 = vector.load %arg12[%c128, %c0_82] : memref<920x128xf32, #tpu.memory_space<vmem>>, vector<32x64xf32>
    %c320 = arith.constant 320 : index
    %c0_83 = arith.constant 0 : index
    %192 = vector.load %arg12[%c320, %c0_83] : memref<920x128xf32, #tpu.memory_space<vmem>>, vector<1x64xf32>
    %c160 = arith.constant 160 : index
    %c0_84 = arith.constant 0 : index
    %193 = vector.load %arg12[%c160, %c0_84] : memref<920x128xf32, #tpu.memory_space<vmem>>, vector<64x32xf32>
    %c328 = arith.constant 328 : index
    %c0_85 = arith.constant 0 : index
    %194 = vector.load %arg12[%c328, %c0_85] : memref<920x128xf32, #tpu.memory_space<vmem>>, vector<1x32xf32>
    %c336 = arith.constant 336 : index
    %c0_86 = arith.constant 0 : index
    %195 = vector.load %arg12[%c336, %c0_86] : memref<920x128xf32, #tpu.memory_space<vmem>>, vector<1x32xf32>
    %c344 = arith.constant 344 : index
    %c0_87 = arith.constant 0 : index
    %196 = vector.load %arg12[%c344, %c0_87] : memref<920x128xf32, #tpu.memory_space<vmem>>, vector<1x32xf32>
    %cst_88 = arith.constant dense<0.000000e+00> : vector<16x64xf32>
    %197 = tpu.matmul %190, %191, %cst_88 {dimension_numbers = #tpu.dot_dimension_numbers<[1], [0], [0], [1], [0, 0, 1, 1], [], []>} : vector<16x32xf32>, vector<32x64xf32>, vector<16x64xf32> -> vector<16x64xf32>
    %198 = vector.broadcast %192 : vector<1x64xf32> to vector<16x64xf32>
    %199 = arith.addf %197, %198 : vector<16x64xf32>
    %cst_89 = arith.constant 0.000000e+00 : f32
    %200 = vector.broadcast %cst_89 : f32 to vector<16x64xf32>
    %201 = arith.maximumf %199, %200 : vector<16x64xf32>
    %cst_90 = arith.constant dense<0.000000e+00> : vector<16x32xf32>
    %202 = tpu.matmul %201, %193, %cst_90 {dimension_numbers = #tpu.dot_dimension_numbers<[1], [0], [0], [1], [0, 0, 1, 1], [], []>} : vector<16x64xf32>, vector<64x32xf32>, vector<16x32xf32> -> vector<16x32xf32>
    %203 = vector.broadcast %194 : vector<1x32xf32> to vector<16x32xf32>
    %204 = arith.addf %202, %203 : vector<16x32xf32>
    %205 = arith.addf %190, %204 : vector<16x32xf32>
    %cst_91 = arith.constant dense<0.000000e+00> : vector<16xf32>
    %206 = vector.multi_reduction <add>, %205, %cst_91 [1] : vector<16x32xf32> to vector<16xf32>
    %207 = vector.shape_cast %206 : vector<16xf32> to vector<16x1xf32>
    %cst_92 = arith.constant 3.200000e+01 : f32
    %208 = vector.broadcast %cst_92 : f32 to vector<16x1xf32>
    %209 = arith.divf %207, %208 : vector<16x1xf32>
    %210 = vector.broadcast %209 : vector<16x1xf32> to vector<16x32xf32>
    %211 = arith.subf %205, %210 : vector<16x32xf32>
    %212 = arith.mulf %211, %211 : vector<16x32xf32>
    %cst_93 = arith.constant dense<0.000000e+00> : vector<16xf32>
    %213 = vector.multi_reduction <add>, %212, %cst_93 [1] : vector<16x32xf32> to vector<16xf32>
    %214 = vector.shape_cast %213 : vector<16xf32> to vector<16x1xf32>
    %cst_94 = arith.constant 3.200000e+01 : f32
    %215 = vector.broadcast %cst_94 : f32 to vector<16x1xf32>
    %216 = arith.divf %214, %215 : vector<16x1xf32>
    %217 = vector.broadcast %209 : vector<16x1xf32> to vector<16x32xf32>
    %218 = arith.subf %205, %217 : vector<16x32xf32>
    %cst_95 = arith.constant 9.99999974E-6 : f32
    %219 = vector.broadcast %cst_95 : f32 to vector<16x1xf32>
    %220 = arith.addf %216, %219 : vector<16x1xf32>
    %221 = math.rsqrt %220 : vector<16x1xf32>
    %222 = vector.broadcast %221 : vector<16x1xf32> to vector<16x32xf32>
    %223 = arith.mulf %218, %222 : vector<16x32xf32>
    %224 = vector.broadcast %195 : vector<1x32xf32> to vector<16x32xf32>
    %225 = arith.mulf %223, %224 : vector<16x32xf32>
    %226 = vector.broadcast %196 : vector<1x32xf32> to vector<16x32xf32>
    %227 = arith.addf %225, %226 : vector<16x32xf32>
    %c224 = arith.constant 224 : index
    %c0_96 = arith.constant 0 : index
    %228 = vector.load %arg12[%c224, %c0_96] : memref<920x128xf32, #tpu.memory_space<vmem>>, vector<32x64xf32>
    %c352 = arith.constant 352 : index
    %c0_97 = arith.constant 0 : index
    %229 = vector.load %arg12[%c352, %c0_97] : memref<920x128xf32, #tpu.memory_space<vmem>>, vector<1x64xf32>
    %cst_98 = arith.constant dense<0.000000e+00> : vector<16x64xf32>
    %230 = tpu.matmul %227, %228, %cst_98 {dimension_numbers = #tpu.dot_dimension_numbers<[1], [0], [0], [1], [0, 0, 1, 1], [], []>} : vector<16x32xf32>, vector<32x64xf32>, vector<16x64xf32> -> vector<16x64xf32>
    %231 = vector.broadcast %229 : vector<1x64xf32> to vector<16x64xf32>
    %232 = arith.addf %230, %231 : vector<16x64xf32>
    %233 = vector.extract_strided_slice %232 {offsets = [0, 0], sizes = [16, 32], strides = [1, 1]} : vector<16x64xf32> to vector<16x32xf32>
    %234 = vector.extract_strided_slice %232 {offsets = [0, 32], sizes = [16, 32], strides = [1, 1]} : vector<16x64xf32> to vector<16x32xf32>
    %235 = vector.extract_strided_slice %233 {offsets = [0, 0], sizes = [16, 8], strides = [1, 1]} : vector<16x32xf32> to vector<16x8xf32>
    %236 = vector.extract_strided_slice %234 {offsets = [0, 0], sizes = [16, 8], strides = [1, 1]} : vector<16x32xf32> to vector<16x8xf32>
    "tpu.trace_start"() <{level = 10 : i32, message = "qd,kd->qk"}> : () -> ()
    %cst_99 = arith.constant dense<0.000000e+00> : vector<16x16xf32>
    %237 = tpu.matmul %235, %236, %cst_99 {dimension_numbers = #tpu.dot_dimension_numbers<[1], [1], [0], [0], [0, 0, 1, 0], [], []>} : vector<16x8xf32>, vector<16x8xf32>, vector<16x16xf32> -> vector<16x16xf32>
    "tpu.trace_stop"() : () -> ()
    %238 = vector.extract_strided_slice %17 {offsets = [0, 0, 0], sizes = [1, 16, 16], strides = [1, 1, 1]} : vector<4x16x16xf32> to vector<1x16x16xf32>
    %239 = vector.shape_cast %238 : vector<1x16x16xf32> to vector<16x16xf32>
    %cst_100 = arith.constant 9.99999997E-7 : f32
    %240 = vector.broadcast %cst_100 : f32 to vector<16x16xf32>
    %241 = arith.maximumf %239, %240 : vector<16x16xf32>
    %242 = math.log %241 : vector<16x16xf32>
    %243 = arith.addf %242, %237 : vector<16x16xf32>
    %244 = vector.broadcast %11 : vector<1x16xf32> to vector<16x16xf32>
    %245 = arith.addf %243, %244 : vector<16x16xf32>
    %cst_101 = arith.constant dense<0xFF800000> : vector<16xf32>
    %246 = vector.multi_reduction <maximumf>, %245, %cst_101 [1] : vector<16x16xf32> to vector<16xf32>
    %247 = vector.shape_cast %246 : vector<16xf32> to vector<16x1xf32>
    %248 = vector.broadcast %247 : vector<16x1xf32> to vector<16x16xf32>
    %249 = arith.subf %245, %248 : vector<16x16xf32>
    %250 = math.exp %249 : vector<16x16xf32>
    %cst_102 = arith.constant dense<0.000000e+00> : vector<16xf32>
    %251 = vector.multi_reduction <add>, %250, %cst_102 [1] : vector<16x16xf32> to vector<16xf32>
    %252 = vector.shape_cast %251 : vector<16xf32> to vector<16x1xf32>
    %253 = vector.broadcast %252 : vector<16x1xf32> to vector<16x16xf32>
    %254 = arith.divf %250, %253 : vector<16x16xf32>
    %cst_103 = arith.constant dense<0.000000e+00> : vector<16x16xf32>
    %255 = tpu.matmul %254, %21, %cst_103 {dimension_numbers = #tpu.dot_dimension_numbers<[1], [0], [0], [1], [0, 0, 1, 1], [], []>} : vector<16x16xf32>, vector<16x16xf32>, vector<16x16xf32> -> vector<16x16xf32>
    %cst_104 = arith.constant dense<0.000000e+00> : vector<16x16xf32>
    %256 = tpu.matmul %23, %255, %cst_104 {dimension_numbers = #tpu.dot_dimension_numbers<[1], [0], [0], [1], [0, 0, 1, 1], [], []>} : vector<16x16xf32>, vector<16x16xf32>, vector<16x16xf32> -> vector<16x16xf32>
    %cst_105 = arith.constant dense<0xFF800000> : vector<16xf32>
    %257 = vector.multi_reduction <maximumf>, %256, %cst_105 [1] : vector<16x16xf32> to vector<16xf32>
    %258 = vector.shape_cast %257 : vector<16xf32> to vector<16x1xf32>
    %259 = vector.broadcast %258 : vector<16x1xf32> to vector<16x16xf32>
    %260 = arith.subf %256, %259 : vector<16x16xf32>
    %261 = math.exp %260 : vector<16x16xf32>
    %cst_106 = arith.constant dense<0.000000e+00> : vector<16xf32>
    %262 = vector.multi_reduction <add>, %261, %cst_106 [1] : vector<16x16xf32> to vector<16xf32>
    %263 = vector.shape_cast %262 : vector<16xf32> to vector<16x1xf32>
    %264 = vector.broadcast %263 : vector<16x1xf32> to vector<16x16xf32>
    %265 = arith.divf %261, %264 : vector<16x16xf32>
    %266 = vector.extract_strided_slice %233 {offsets = [0, 8], sizes = [16, 8], strides = [1, 1]} : vector<16x32xf32> to vector<16x8xf32>
    %267 = vector.extract_strided_slice %234 {offsets = [0, 8], sizes = [16, 8], strides = [1, 1]} : vector<16x32xf32> to vector<16x8xf32>
    "tpu.trace_start"() <{level = 10 : i32, message = "qd,kd->qk"}> : () -> ()
    %cst_107 = arith.constant dense<0.000000e+00> : vector<16x16xf32>
    %268 = tpu.matmul %266, %267, %cst_107 {dimension_numbers = #tpu.dot_dimension_numbers<[1], [1], [0], [0], [0, 0, 1, 0], [], []>} : vector<16x8xf32>, vector<16x8xf32>, vector<16x16xf32> -> vector<16x16xf32>
    "tpu.trace_stop"() : () -> ()
    %269 = vector.extract_strided_slice %17 {offsets = [1, 0, 0], sizes = [1, 16, 16], strides = [1, 1, 1]} : vector<4x16x16xf32> to vector<1x16x16xf32>
    %270 = vector.shape_cast %269 : vector<1x16x16xf32> to vector<16x16xf32>
    %cst_108 = arith.constant 9.99999997E-7 : f32
    %271 = vector.broadcast %cst_108 : f32 to vector<16x16xf32>
    %272 = arith.maximumf %270, %271 : vector<16x16xf32>
    %273 = math.log %272 : vector<16x16xf32>
    %274 = arith.addf %273, %268 : vector<16x16xf32>
    %275 = vector.broadcast %11 : vector<1x16xf32> to vector<16x16xf32>
    %276 = arith.addf %274, %275 : vector<16x16xf32>
    %cst_109 = arith.constant dense<0xFF800000> : vector<16xf32>
    %277 = vector.multi_reduction <maximumf>, %276, %cst_109 [1] : vector<16x16xf32> to vector<16xf32>
    %278 = vector.shape_cast %277 : vector<16xf32> to vector<16x1xf32>
    %279 = vector.broadcast %278 : vector<16x1xf32> to vector<16x16xf32>
    %280 = arith.subf %276, %279 : vector<16x16xf32>
    %281 = math.exp %280 : vector<16x16xf32>
    %cst_110 = arith.constant dense<0.000000e+00> : vector<16xf32>
    %282 = vector.multi_reduction <add>, %281, %cst_110 [1] : vector<16x16xf32> to vector<16xf32>
    %283 = vector.shape_cast %282 : vector<16xf32> to vector<16x1xf32>
    %284 = vector.broadcast %283 : vector<16x1xf32> to vector<16x16xf32>
    %285 = arith.divf %281, %284 : vector<16x16xf32>
    %cst_111 = arith.constant dense<0.000000e+00> : vector<16x16xf32>
    %286 = tpu.matmul %285, %21, %cst_111 {dimension_numbers = #tpu.dot_dimension_numbers<[1], [0], [0], [1], [0, 0, 1, 1], [], []>} : vector<16x16xf32>, vector<16x16xf32>, vector<16x16xf32> -> vector<16x16xf32>
    %cst_112 = arith.constant dense<0.000000e+00> : vector<16x16xf32>
    %287 = tpu.matmul %23, %286, %cst_112 {dimension_numbers = #tpu.dot_dimension_numbers<[1], [0], [0], [1], [0, 0, 1, 1], [], []>} : vector<16x16xf32>, vector<16x16xf32>, vector<16x16xf32> -> vector<16x16xf32>
    %cst_113 = arith.constant dense<0xFF800000> : vector<16xf32>
    %288 = vector.multi_reduction <maximumf>, %287, %cst_113 [1] : vector<16x16xf32> to vector<16xf32>
    %289 = vector.shape_cast %288 : vector<16xf32> to vector<16x1xf32>
    %290 = vector.broadcast %289 : vector<16x1xf32> to vector<16x16xf32>
    %291 = arith.subf %287, %290 : vector<16x16xf32>
    %292 = math.exp %291 : vector<16x16xf32>
    %cst_114 = arith.constant dense<0.000000e+00> : vector<16xf32>
    %293 = vector.multi_reduction <add>, %292, %cst_114 [1] : vector<16x16xf32> to vector<16xf32>
    %294 = vector.shape_cast %293 : vector<16xf32> to vector<16x1xf32>
    %295 = vector.broadcast %294 : vector<16x1xf32> to vector<16x16xf32>
    %296 = arith.divf %292, %295 : vector<16x16xf32>
    %297 = vector.extract_strided_slice %233 {offsets = [0, 16], sizes = [16, 8], strides = [1, 1]} : vector<16x32xf32> to vector<16x8xf32>
    %298 = vector.extract_strided_slice %234 {offsets = [0, 16], sizes = [16, 8], strides = [1, 1]} : vector<16x32xf32> to vector<16x8xf32>
    "tpu.trace_start"() <{level = 10 : i32, message = "qd,kd->qk"}> : () -> ()
    %cst_115 = arith.constant dense<0.000000e+00> : vector<16x16xf32>
    %299 = tpu.matmul %297, %298, %cst_115 {dimension_numbers = #tpu.dot_dimension_numbers<[1], [1], [0], [0], [0, 0, 1, 0], [], []>} : vector<16x8xf32>, vector<16x8xf32>, vector<16x16xf32> -> vector<16x16xf32>
    "tpu.trace_stop"() : () -> ()
    %300 = vector.extract_strided_slice %17 {offsets = [2, 0, 0], sizes = [1, 16, 16], strides = [1, 1, 1]} : vector<4x16x16xf32> to vector<1x16x16xf32>
    %301 = vector.shape_cast %300 : vector<1x16x16xf32> to vector<16x16xf32>
    %cst_116 = arith.constant 9.99999997E-7 : f32
    %302 = vector.broadcast %cst_116 : f32 to vector<16x16xf32>
    %303 = arith.maximumf %301, %302 : vector<16x16xf32>
    %304 = math.log %303 : vector<16x16xf32>
    %305 = arith.addf %304, %299 : vector<16x16xf32>
    %306 = vector.broadcast %11 : vector<1x16xf32> to vector<16x16xf32>
    %307 = arith.addf %305, %306 : vector<16x16xf32>
    %cst_117 = arith.constant dense<0xFF800000> : vector<16xf32>
    %308 = vector.multi_reduction <maximumf>, %307, %cst_117 [1] : vector<16x16xf32> to vector<16xf32>
    %309 = vector.shape_cast %308 : vector<16xf32> to vector<16x1xf32>
    %310 = vector.broadcast %309 : vector<16x1xf32> to vector<16x16xf32>
    %311 = arith.subf %307, %310 : vector<16x16xf32>
    %312 = math.exp %311 : vector<16x16xf32>
    %cst_118 = arith.constant dense<0.000000e+00> : vector<16xf32>
    %313 = vector.multi_reduction <add>, %312, %cst_118 [1] : vector<16x16xf32> to vector<16xf32>
    %314 = vector.shape_cast %313 : vector<16xf32> to vector<16x1xf32>
    %315 = vector.broadcast %314 : vector<16x1xf32> to vector<16x16xf32>
    %316 = arith.divf %312, %315 : vector<16x16xf32>
    %cst_119 = arith.constant dense<0.000000e+00> : vector<16x16xf32>
    %317 = tpu.matmul %316, %21, %cst_119 {dimension_numbers = #tpu.dot_dimension_numbers<[1], [0], [0], [1], [0, 0, 1, 1], [], []>} : vector<16x16xf32>, vector<16x16xf32>, vector<16x16xf32> -> vector<16x16xf32>
    %cst_120 = arith.constant dense<0.000000e+00> : vector<16x16xf32>
    %318 = tpu.matmul %23, %317, %cst_120 {dimension_numbers = #tpu.dot_dimension_numbers<[1], [0], [0], [1], [0, 0, 1, 1], [], []>} : vector<16x16xf32>, vector<16x16xf32>, vector<16x16xf32> -> vector<16x16xf32>
    %cst_121 = arith.constant dense<0xFF800000> : vector<16xf32>
    %319 = vector.multi_reduction <maximumf>, %318, %cst_121 [1] : vector<16x16xf32> to vector<16xf32>
    %320 = vector.shape_cast %319 : vector<16xf32> to vector<16x1xf32>
    %321 = vector.broadcast %320 : vector<16x1xf32> to vector<16x16xf32>
    %322 = arith.subf %318, %321 : vector<16x16xf32>
    %323 = math.exp %322 : vector<16x16xf32>
    %cst_122 = arith.constant dense<0.000000e+00> : vector<16xf32>
    %324 = vector.multi_reduction <add>, %323, %cst_122 [1] : vector<16x16xf32> to vector<16xf32>
    %325 = vector.shape_cast %324 : vector<16xf32> to vector<16x1xf32>
    %326 = vector.broadcast %325 : vector<16x1xf32> to vector<16x16xf32>
    %327 = arith.divf %323, %326 : vector<16x16xf32>
    %328 = vector.extract_strided_slice %233 {offsets = [0, 24], sizes = [16, 8], strides = [1, 1]} : vector<16x32xf32> to vector<16x8xf32>
    %329 = vector.extract_strided_slice %234 {offsets = [0, 24], sizes = [16, 8], strides = [1, 1]} : vector<16x32xf32> to vector<16x8xf32>
    "tpu.trace_start"() <{level = 10 : i32, message = "qd,kd->qk"}> : () -> ()
    %cst_123 = arith.constant dense<0.000000e+00> : vector<16x16xf32>
    %330 = tpu.matmul %328, %329, %cst_123 {dimension_numbers = #tpu.dot_dimension_numbers<[1], [1], [0], [0], [0, 0, 1, 0], [], []>} : vector<16x8xf32>, vector<16x8xf32>, vector<16x16xf32> -> vector<16x16xf32>
    "tpu.trace_stop"() : () -> ()
    %331 = vector.extract_strided_slice %17 {offsets = [3, 0, 0], sizes = [1, 16, 16], strides = [1, 1, 1]} : vector<4x16x16xf32> to vector<1x16x16xf32>
    %332 = vector.shape_cast %331 : vector<1x16x16xf32> to vector<16x16xf32>
    %cst_124 = arith.constant 9.99999997E-7 : f32
    %333 = vector.broadcast %cst_124 : f32 to vector<16x16xf32>
    %334 = arith.maximumf %332, %333 : vector<16x16xf32>
    %335 = math.log %334 : vector<16x16xf32>
    %336 = arith.addf %335, %330 : vector<16x16xf32>
    %337 = vector.broadcast %11 : vector<1x16xf32> to vector<16x16xf32>
    %338 = arith.addf %336, %337 : vector<16x16xf32>
    %cst_125 = arith.constant dense<0xFF800000> : vector<16xf32>
    %339 = vector.multi_reduction <maximumf>, %338, %cst_125 [1] : vector<16x16xf32> to vector<16xf32>
    %340 = vector.shape_cast %339 : vector<16xf32> to vector<16x1xf32>
    %341 = vector.broadcast %340 : vector<16x1xf32> to vector<16x16xf32>
    %342 = arith.subf %338, %341 : vector<16x16xf32>
    %343 = math.exp %342 : vector<16x16xf32>
    %cst_126 = arith.constant dense<0.000000e+00> : vector<16xf32>
    %344 = vector.multi_reduction <add>, %343, %cst_126 [1] : vector<16x16xf32> to vector<16xf32>
    %345 = vector.shape_cast %344 : vector<16xf32> to vector<16x1xf32>
    %346 = vector.broadcast %345 : vector<16x1xf32> to vector<16x16xf32>
    %347 = arith.divf %343, %346 : vector<16x16xf32>
    %cst_127 = arith.constant dense<0.000000e+00> : vector<16x16xf32>
    %348 = tpu.matmul %347, %21, %cst_127 {dimension_numbers = #tpu.dot_dimension_numbers<[1], [0], [0], [1], [0, 0, 1, 1], [], []>} : vector<16x16xf32>, vector<16x16xf32>, vector<16x16xf32> -> vector<16x16xf32>
    %cst_128 = arith.constant dense<0.000000e+00> : vector<16x16xf32>
    %349 = tpu.matmul %23, %348, %cst_128 {dimension_numbers = #tpu.dot_dimension_numbers<[1], [0], [0], [1], [0, 0, 1, 1], [], []>} : vector<16x16xf32>, vector<16x16xf32>, vector<16x16xf32> -> vector<16x16xf32>
    %cst_129 = arith.constant dense<0xFF800000> : vector<16xf32>
    %350 = vector.multi_reduction <maximumf>, %349, %cst_129 [1] : vector<16x16xf32> to vector<16xf32>
    %351 = vector.shape_cast %350 : vector<16xf32> to vector<16x1xf32>
    %352 = vector.broadcast %351 : vector<16x1xf32> to vector<16x16xf32>
    %353 = arith.subf %349, %352 : vector<16x16xf32>
    %354 = math.exp %353 : vector<16x16xf32>
    %cst_130 = arith.constant dense<0.000000e+00> : vector<16xf32>
    %355 = vector.multi_reduction <add>, %354, %cst_130 [1] : vector<16x16xf32> to vector<16xf32>
    %356 = vector.shape_cast %355 : vector<16xf32> to vector<16x1xf32>
    %357 = vector.broadcast %356 : vector<16x1xf32> to vector<16x16xf32>
    %358 = arith.divf %354, %357 : vector<16x16xf32>
    %c360 = arith.constant 360 : index
    %c0_131 = arith.constant 0 : index
    %359 = vector.load %arg12[%c360, %c0_131] : memref<920x128xf32, #tpu.memory_space<vmem>>, vector<32x64xf32>
    %c552 = arith.constant 552 : index
    %c0_132 = arith.constant 0 : index
    %360 = vector.load %arg12[%c552, %c0_132] : memref<920x128xf32, #tpu.memory_space<vmem>>, vector<1x64xf32>
    %cst_133 = arith.constant dense<0.000000e+00> : vector<16x64xf32>
    %361 = tpu.matmul %6, %359, %cst_133 {dimension_numbers = #tpu.dot_dimension_numbers<[1], [0], [0], [1], [0, 0, 1, 1], [], []>} : vector<16x32xf32>, vector<32x64xf32>, vector<16x64xf32> -> vector<16x64xf32>
    %362 = vector.broadcast %360 : vector<1x64xf32> to vector<16x64xf32>
    %363 = arith.addf %361, %362 : vector<16x64xf32>
    %c392 = arith.constant 392 : index
    %c0_134 = arith.constant 0 : index
    %364 = vector.load %arg12[%c392, %c0_134] : memref<920x128xf32, #tpu.memory_space<vmem>>, vector<32x32xf32>
    %c560 = arith.constant 560 : index
    %c0_135 = arith.constant 0 : index
    %365 = vector.load %arg12[%c560, %c0_135] : memref<920x128xf32, #tpu.memory_space<vmem>>, vector<1x32xf32>
    %cst_136 = arith.constant dense<0.000000e+00> : vector<16x32xf32>
    %366 = tpu.matmul %1, %364, %cst_136 {dimension_numbers = #tpu.dot_dimension_numbers<[1], [0], [0], [1], [0, 0, 1, 1], [], []>} : vector<16x32xf32>, vector<32x32xf32>, vector<16x32xf32> -> vector<16x32xf32>
    %367 = vector.broadcast %365 : vector<1x32xf32> to vector<16x32xf32>
    %368 = arith.addf %366, %367 : vector<16x32xf32>
    %369 = vector.extract_strided_slice %363 {offsets = [0, 0], sizes = [16, 32], strides = [1, 1]} : vector<16x64xf32> to vector<16x32xf32>
    %370 = vector.extract_strided_slice %363 {offsets = [0, 32], sizes = [16, 32], strides = [1, 1]} : vector<16x64xf32> to vector<16x32xf32>
    %371 = vector.extract_strided_slice %369 {offsets = [0, 0], sizes = [16, 8], strides = [1, 1]} : vector<16x32xf32> to vector<16x8xf32>
    %372 = vector.extract_strided_slice %370 {offsets = [0, 0], sizes = [16, 8], strides = [1, 1]} : vector<16x32xf32> to vector<16x8xf32>
    %373 = vector.extract_strided_slice %368 {offsets = [0, 0], sizes = [16, 8], strides = [1, 1]} : vector<16x32xf32> to vector<16x8xf32>
    "tpu.trace_start"() <{level = 10 : i32, message = "qd,kd->qk"}> : () -> ()
    %cst_137 = arith.constant dense<0.000000e+00> : vector<16x16xf32>
    %374 = tpu.matmul %371, %372, %cst_137 {dimension_numbers = #tpu.dot_dimension_numbers<[1], [1], [0], [0], [0, 0, 1, 0], [], []>} : vector<16x8xf32>, vector<16x8xf32>, vector<16x16xf32> -> vector<16x16xf32>
    "tpu.trace_stop"() : () -> ()
    %375 = vector.extract_strided_slice %17 {offsets = [0, 0, 0], sizes = [1, 16, 16], strides = [1, 1, 1]} : vector<4x16x16xf32> to vector<1x16x16xf32>
    %376 = vector.shape_cast %375 : vector<1x16x16xf32> to vector<16x16xf32>
    %cst_138 = arith.constant 9.99999997E-7 : f32
    %377 = vector.broadcast %cst_138 : f32 to vector<16x16xf32>
    %378 = arith.maximumf %376, %377 : vector<16x16xf32>
    %379 = math.log %378 : vector<16x16xf32>
    %380 = arith.addf %379, %374 : vector<16x16xf32>
    %381 = vector.broadcast %11 : vector<1x16xf32> to vector<16x16xf32>
    %382 = arith.addf %380, %381 : vector<16x16xf32>
    %cst_139 = arith.constant dense<0xFF800000> : vector<16xf32>
    %383 = vector.multi_reduction <maximumf>, %382, %cst_139 [1] : vector<16x16xf32> to vector<16xf32>
    %384 = vector.shape_cast %383 : vector<16xf32> to vector<16x1xf32>
    %385 = vector.broadcast %384 : vector<16x1xf32> to vector<16x16xf32>
    %386 = arith.subf %382, %385 : vector<16x16xf32>
    %387 = math.exp %386 : vector<16x16xf32>
    %cst_140 = arith.constant dense<0.000000e+00> : vector<16xf32>
    %388 = vector.multi_reduction <add>, %387, %cst_140 [1] : vector<16x16xf32> to vector<16xf32>
    %389 = vector.shape_cast %388 : vector<16xf32> to vector<16x1xf32>
    %390 = vector.broadcast %389 : vector<16x1xf32> to vector<16x16xf32>
    %391 = arith.divf %387, %390 : vector<16x16xf32>
    %cst_141 = arith.constant dense<0.000000e+00> : vector<16x8xf32>
    %392 = tpu.matmul %391, %373, %cst_141 {dimension_numbers = #tpu.dot_dimension_numbers<[1], [0], [0], [1], [0, 0, 1, 1], [], []>} : vector<16x16xf32>, vector<16x8xf32>, vector<16x8xf32> -> vector<16x8xf32>
    %393 = vector.extract_strided_slice %369 {offsets = [0, 8], sizes = [16, 8], strides = [1, 1]} : vector<16x32xf32> to vector<16x8xf32>
    %394 = vector.extract_strided_slice %370 {offsets = [0, 8], sizes = [16, 8], strides = [1, 1]} : vector<16x32xf32> to vector<16x8xf32>
    %395 = vector.extract_strided_slice %368 {offsets = [0, 8], sizes = [16, 8], strides = [1, 1]} : vector<16x32xf32> to vector<16x8xf32>
    "tpu.trace_start"() <{level = 10 : i32, message = "qd,kd->qk"}> : () -> ()
    %cst_142 = arith.constant dense<0.000000e+00> : vector<16x16xf32>
    %396 = tpu.matmul %393, %394, %cst_142 {dimension_numbers = #tpu.dot_dimension_numbers<[1], [1], [0], [0], [0, 0, 1, 0], [], []>} : vector<16x8xf32>, vector<16x8xf32>, vector<16x16xf32> -> vector<16x16xf32>
    "tpu.trace_stop"() : () -> ()
    %397 = vector.extract_strided_slice %17 {offsets = [1, 0, 0], sizes = [1, 16, 16], strides = [1, 1, 1]} : vector<4x16x16xf32> to vector<1x16x16xf32>
    %398 = vector.shape_cast %397 : vector<1x16x16xf32> to vector<16x16xf32>
    %cst_143 = arith.constant 9.99999997E-7 : f32
    %399 = vector.broadcast %cst_143 : f32 to vector<16x16xf32>
    %400 = arith.maximumf %398, %399 : vector<16x16xf32>
    %401 = math.log %400 : vector<16x16xf32>
    %402 = arith.addf %401, %396 : vector<16x16xf32>
    %403 = vector.broadcast %11 : vector<1x16xf32> to vector<16x16xf32>
    %404 = arith.addf %402, %403 : vector<16x16xf32>
    %cst_144 = arith.constant dense<0xFF800000> : vector<16xf32>
    %405 = vector.multi_reduction <maximumf>, %404, %cst_144 [1] : vector<16x16xf32> to vector<16xf32>
    %406 = vector.shape_cast %405 : vector<16xf32> to vector<16x1xf32>
    %407 = vector.broadcast %406 : vector<16x1xf32> to vector<16x16xf32>
    %408 = arith.subf %404, %407 : vector<16x16xf32>
    %409 = math.exp %408 : vector<16x16xf32>
    %cst_145 = arith.constant dense<0.000000e+00> : vector<16xf32>
    %410 = vector.multi_reduction <add>, %409, %cst_145 [1] : vector<16x16xf32> to vector<16xf32>
    %411 = vector.shape_cast %410 : vector<16xf32> to vector<16x1xf32>
    %412 = vector.broadcast %411 : vector<16x1xf32> to vector<16x16xf32>
    %413 = arith.divf %409, %412 : vector<16x16xf32>
    %cst_146 = arith.constant dense<0.000000e+00> : vector<16x8xf32>
    %414 = tpu.matmul %413, %395, %cst_146 {dimension_numbers = #tpu.dot_dimension_numbers<[1], [0], [0], [1], [0, 0, 1, 1], [], []>} : vector<16x16xf32>, vector<16x8xf32>, vector<16x8xf32> -> vector<16x8xf32>
    %415 = vector.extract_strided_slice %369 {offsets = [0, 16], sizes = [16, 8], strides = [1, 1]} : vector<16x32xf32> to vector<16x8xf32>
    %416 = vector.extract_strided_slice %370 {offsets = [0, 16], sizes = [16, 8], strides = [1, 1]} : vector<16x32xf32> to vector<16x8xf32>
    %417 = vector.extract_strided_slice %368 {offsets = [0, 16], sizes = [16, 8], strides = [1, 1]} : vector<16x32xf32> to vector<16x8xf32>
    "tpu.trace_start"() <{level = 10 : i32, message = "qd,kd->qk"}> : () -> ()
    %cst_147 = arith.constant dense<0.000000e+00> : vector<16x16xf32>
    %418 = tpu.matmul %415, %416, %cst_147 {dimension_numbers = #tpu.dot_dimension_numbers<[1], [1], [0], [0], [0, 0, 1, 0], [], []>} : vector<16x8xf32>, vector<16x8xf32>, vector<16x16xf32> -> vector<16x16xf32>
    "tpu.trace_stop"() : () -> ()
    %419 = vector.extract_strided_slice %17 {offsets = [2, 0, 0], sizes = [1, 16, 16], strides = [1, 1, 1]} : vector<4x16x16xf32> to vector<1x16x16xf32>
    %420 = vector.shape_cast %419 : vector<1x16x16xf32> to vector<16x16xf32>
    %cst_148 = arith.constant 9.99999997E-7 : f32
    %421 = vector.broadcast %cst_148 : f32 to vector<16x16xf32>
    %422 = arith.maximumf %420, %421 : vector<16x16xf32>
    %423 = math.log %422 : vector<16x16xf32>
    %424 = arith.addf %423, %418 : vector<16x16xf32>
    %425 = vector.broadcast %11 : vector<1x16xf32> to vector<16x16xf32>
    %426 = arith.addf %424, %425 : vector<16x16xf32>
    %cst_149 = arith.constant dense<0xFF800000> : vector<16xf32>
    %427 = vector.multi_reduction <maximumf>, %426, %cst_149 [1] : vector<16x16xf32> to vector<16xf32>
    %428 = vector.shape_cast %427 : vector<16xf32> to vector<16x1xf32>
    %429 = vector.broadcast %428 : vector<16x1xf32> to vector<16x16xf32>
    %430 = arith.subf %426, %429 : vector<16x16xf32>
    %431 = math.exp %430 : vector<16x16xf32>
    %cst_150 = arith.constant dense<0.000000e+00> : vector<16xf32>
    %432 = vector.multi_reduction <add>, %431, %cst_150 [1] : vector<16x16xf32> to vector<16xf32>
    %433 = vector.shape_cast %432 : vector<16xf32> to vector<16x1xf32>
    %434 = vector.broadcast %433 : vector<16x1xf32> to vector<16x16xf32>
    %435 = arith.divf %431, %434 : vector<16x16xf32>
    %cst_151 = arith.constant dense<0.000000e+00> : vector<16x8xf32>
    %436 = tpu.matmul %435, %417, %cst_151 {dimension_numbers = #tpu.dot_dimension_numbers<[1], [0], [0], [1], [0, 0, 1, 1], [], []>} : vector<16x16xf32>, vector<16x8xf32>, vector<16x8xf32> -> vector<16x8xf32>
    %437 = vector.extract_strided_slice %369 {offsets = [0, 24], sizes = [16, 8], strides = [1, 1]} : vector<16x32xf32> to vector<16x8xf32>
    %438 = vector.extract_strided_slice %370 {offsets = [0, 24], sizes = [16, 8], strides = [1, 1]} : vector<16x32xf32> to vector<16x8xf32>
    %439 = vector.extract_strided_slice %368 {offsets = [0, 24], sizes = [16, 8], strides = [1, 1]} : vector<16x32xf32> to vector<16x8xf32>
    "tpu.trace_start"() <{level = 10 : i32, message = "qd,kd->qk"}> : () -> ()
    %cst_152 = arith.constant dense<0.000000e+00> : vector<16x16xf32>
    %440 = tpu.matmul %437, %438, %cst_152 {dimension_numbers = #tpu.dot_dimension_numbers<[1], [1], [0], [0], [0, 0, 1, 0], [], []>} : vector<16x8xf32>, vector<16x8xf32>, vector<16x16xf32> -> vector<16x16xf32>
    "tpu.trace_stop"() : () -> ()
    %441 = vector.extract_strided_slice %17 {offsets = [3, 0, 0], sizes = [1, 16, 16], strides = [1, 1, 1]} : vector<4x16x16xf32> to vector<1x16x16xf32>
    %442 = vector.shape_cast %441 : vector<1x16x16xf32> to vector<16x16xf32>
    %cst_153 = arith.constant 9.99999997E-7 : f32
    %443 = vector.broadcast %cst_153 : f32 to vector<16x16xf32>
    %444 = arith.maximumf %442, %443 : vector<16x16xf32>
    %445 = math.log %444 : vector<16x16xf32>
    %446 = arith.addf %445, %440 : vector<16x16xf32>
    %447 = vector.broadcast %11 : vector<1x16xf32> to vector<16x16xf32>
    %448 = arith.addf %446, %447 : vector<16x16xf32>
    %cst_154 = arith.constant dense<0xFF800000> : vector<16xf32>
    %449 = vector.multi_reduction <maximumf>, %448, %cst_154 [1] : vector<16x16xf32> to vector<16xf32>
    %450 = vector.shape_cast %449 : vector<16xf32> to vector<16x1xf32>
    %451 = vector.broadcast %450 : vector<16x1xf32> to vector<16x16xf32>
    %452 = arith.subf %448, %451 : vector<16x16xf32>
    %453 = math.exp %452 : vector<16x16xf32>
    %cst_155 = arith.constant dense<0.000000e+00> : vector<16xf32>
    %454 = vector.multi_reduction <add>, %453, %cst_155 [1] : vector<16x16xf32> to vector<16xf32>
    %455 = vector.shape_cast %454 : vector<16xf32> to vector<16x1xf32>
    %456 = vector.broadcast %455 : vector<16x1xf32> to vector<16x16xf32>
    %457 = arith.divf %453, %456 : vector<16x16xf32>
    %cst_156 = arith.constant dense<0.000000e+00> : vector<16x8xf32>
    %458 = tpu.matmul %457, %439, %cst_156 {dimension_numbers = #tpu.dot_dimension_numbers<[1], [0], [0], [1], [0, 0, 1, 1], [], []>} : vector<16x16xf32>, vector<16x8xf32>, vector<16x8xf32> -> vector<16x8xf32>
    %459 = tpu.concatenate %392, %414, %436, %458 in 1 : vector<16x8xf32>, vector<16x8xf32>, vector<16x8xf32>, vector<16x8xf32> -> vector<16x32xf32>
    %c424 = arith.constant 424 : index
    %c0_157 = arith.constant 0 : index
    %460 = vector.load %arg12[%c424, %c0_157] : memref<920x128xf32, #tpu.memory_space<vmem>>, vector<32x32xf32>
    %c568 = arith.constant 568 : index
    %c0_158 = arith.constant 0 : index
    %461 = vector.load %arg12[%c568, %c0_158] : memref<920x128xf32, #tpu.memory_space<vmem>>, vector<1x32xf32>
    %cst_159 = arith.constant dense<0.000000e+00> : vector<16x32xf32>
    %462 = tpu.matmul %459, %460, %cst_159 {dimension_numbers = #tpu.dot_dimension_numbers<[1], [0], [0], [1], [0, 0, 1, 1], [], []>} : vector<16x32xf32>, vector<32x32xf32>, vector<16x32xf32> -> vector<16x32xf32>
    %463 = vector.broadcast %461 : vector<1x32xf32> to vector<16x32xf32>
    %464 = arith.addf %462, %463 : vector<16x32xf32>
    %465 = arith.addf %6, %464 : vector<16x32xf32>
    %c576 = arith.constant 576 : index
    %c0_160 = arith.constant 0 : index
    %466 = vector.load %arg12[%c576, %c0_160] : memref<920x128xf32, #tpu.memory_space<vmem>>, vector<1x32xf32>
    %c584 = arith.constant 584 : index
    %c0_161 = arith.constant 0 : index
    %467 = vector.load %arg12[%c584, %c0_161] : memref<920x128xf32, #tpu.memory_space<vmem>>, vector<1x32xf32>
    %cst_162 = arith.constant dense<0.000000e+00> : vector<16xf32>
    %468 = vector.multi_reduction <add>, %465, %cst_162 [1] : vector<16x32xf32> to vector<16xf32>
    %469 = vector.shape_cast %468 : vector<16xf32> to vector<16x1xf32>
    %cst_163 = arith.constant 3.200000e+01 : f32
    %470 = vector.broadcast %cst_163 : f32 to vector<16x1xf32>
    %471 = arith.divf %469, %470 : vector<16x1xf32>
    %472 = vector.broadcast %471 : vector<16x1xf32> to vector<16x32xf32>
    %473 = arith.subf %465, %472 : vector<16x32xf32>
    %474 = arith.mulf %473, %473 : vector<16x32xf32>
    %cst_164 = arith.constant dense<0.000000e+00> : vector<16xf32>
    %475 = vector.multi_reduction <add>, %474, %cst_164 [1] : vector<16x32xf32> to vector<16xf32>
    %476 = vector.shape_cast %475 : vector<16xf32> to vector<16x1xf32>
    %cst_165 = arith.constant 3.200000e+01 : f32
    %477 = vector.broadcast %cst_165 : f32 to vector<16x1xf32>
    %478 = arith.divf %476, %477 : vector<16x1xf32>
    %479 = vector.broadcast %471 : vector<16x1xf32> to vector<16x32xf32>
    %480 = arith.subf %465, %479 : vector<16x32xf32>
    %cst_166 = arith.constant 9.99999974E-6 : f32
    %481 = vector.broadcast %cst_166 : f32 to vector<16x1xf32>
    %482 = arith.addf %478, %481 : vector<16x1xf32>
    %483 = math.rsqrt %482 : vector<16x1xf32>
    %484 = vector.broadcast %483 : vector<16x1xf32> to vector<16x32xf32>
    %485 = arith.mulf %480, %484 : vector<16x32xf32>
    %486 = vector.broadcast %466 : vector<1x32xf32> to vector<16x32xf32>
    %487 = arith.mulf %485, %486 : vector<16x32xf32>
    %488 = vector.broadcast %467 : vector<1x32xf32> to vector<16x32xf32>
    %489 = arith.addf %487, %488 : vector<16x32xf32>
    %490 = arith.addf %1, %489 : vector<16x32xf32>
    %c592 = arith.constant 592 : index
    %c0_167 = arith.constant 0 : index
    %491 = vector.load %arg12[%c592, %c0_167] : memref<920x128xf32, #tpu.memory_space<vmem>>, vector<1x32xf32>
    %c600 = arith.constant 600 : index
    %c0_168 = arith.constant 0 : index
    %492 = vector.load %arg12[%c600, %c0_168] : memref<920x128xf32, #tpu.memory_space<vmem>>, vector<1x32xf32>
    %cst_169 = arith.constant dense<0.000000e+00> : vector<16xf32>
    %493 = vector.multi_reduction <add>, %490, %cst_169 [1] : vector<16x32xf32> to vector<16xf32>
    %494 = vector.shape_cast %493 : vector<16xf32> to vector<16x1xf32>
    %cst_170 = arith.constant 3.200000e+01 : f32
    %495 = vector.broadcast %cst_170 : f32 to vector<16x1xf32>
    %496 = arith.divf %494, %495 : vector<16x1xf32>
    %497 = vector.broadcast %496 : vector<16x1xf32> to vector<16x32xf32>
    %498 = arith.subf %490, %497 : vector<16x32xf32>
    %499 = arith.mulf %498, %498 : vector<16x32xf32>
    %cst_171 = arith.constant dense<0.000000e+00> : vector<16xf32>
    %500 = vector.multi_reduction <add>, %499, %cst_171 [1] : vector<16x32xf32> to vector<16xf32>
    %501 = vector.shape_cast %500 : vector<16xf32> to vector<16x1xf32>
    %cst_172 = arith.constant 3.200000e+01 : f32
    %502 = vector.broadcast %cst_172 : f32 to vector<16x1xf32>
    %503 = arith.divf %501, %502 : vector<16x1xf32>
    %504 = vector.broadcast %496 : vector<16x1xf32> to vector<16x32xf32>
    %505 = arith.subf %490, %504 : vector<16x32xf32>
    %cst_173 = arith.constant 9.99999974E-6 : f32
    %506 = vector.broadcast %cst_173 : f32 to vector<16x1xf32>
    %507 = arith.addf %503, %506 : vector<16x1xf32>
    %508 = math.rsqrt %507 : vector<16x1xf32>
    %509 = vector.broadcast %508 : vector<16x1xf32> to vector<16x32xf32>
    %510 = arith.mulf %505, %509 : vector<16x32xf32>
    %511 = vector.broadcast %491 : vector<1x32xf32> to vector<16x32xf32>
    %512 = arith.mulf %510, %511 : vector<16x32xf32>
    %513 = vector.broadcast %492 : vector<1x32xf32> to vector<16x32xf32>
    %514 = arith.addf %512, %513 : vector<16x32xf32>
    %c456 = arith.constant 456 : index
    %c0_174 = arith.constant 0 : index
    %515 = vector.load %arg12[%c456, %c0_174] : memref<920x128xf32, #tpu.memory_space<vmem>>, vector<32x64xf32>
    %c608 = arith.constant 608 : index
    %c0_175 = arith.constant 0 : index
    %516 = vector.load %arg12[%c608, %c0_175] : memref<920x128xf32, #tpu.memory_space<vmem>>, vector<1x64xf32>
    %c488 = arith.constant 488 : index
    %c0_176 = arith.constant 0 : index
    %517 = vector.load %arg12[%c488, %c0_176] : memref<920x128xf32, #tpu.memory_space<vmem>>, vector<64x32xf32>
    %c616 = arith.constant 616 : index
    %c0_177 = arith.constant 0 : index
    %518 = vector.load %arg12[%c616, %c0_177] : memref<920x128xf32, #tpu.memory_space<vmem>>, vector<1x32xf32>
    %c624 = arith.constant 624 : index
    %c0_178 = arith.constant 0 : index
    %519 = vector.load %arg12[%c624, %c0_178] : memref<920x128xf32, #tpu.memory_space<vmem>>, vector<1x32xf32>
    %c632 = arith.constant 632 : index
    %c0_179 = arith.constant 0 : index
    %520 = vector.load %arg12[%c632, %c0_179] : memref<920x128xf32, #tpu.memory_space<vmem>>, vector<1x32xf32>
    %cst_180 = arith.constant dense<0.000000e+00> : vector<16x64xf32>
    %521 = tpu.matmul %514, %515, %cst_180 {dimension_numbers = #tpu.dot_dimension_numbers<[1], [0], [0], [1], [0, 0, 1, 1], [], []>} : vector<16x32xf32>, vector<32x64xf32>, vector<16x64xf32> -> vector<16x64xf32>
    %522 = vector.broadcast %516 : vector<1x64xf32> to vector<16x64xf32>
    %523 = arith.addf %521, %522 : vector<16x64xf32>
    %cst_181 = arith.constant 0.000000e+00 : f32
    %524 = vector.broadcast %cst_181 : f32 to vector<16x64xf32>
    %525 = arith.maximumf %523, %524 : vector<16x64xf32>
    %cst_182 = arith.constant dense<0.000000e+00> : vector<16x32xf32>
    %526 = tpu.matmul %525, %517, %cst_182 {dimension_numbers = #tpu.dot_dimension_numbers<[1], [0], [0], [1], [0, 0, 1, 1], [], []>} : vector<16x64xf32>, vector<64x32xf32>, vector<16x32xf32> -> vector<16x32xf32>
    %527 = vector.broadcast %518 : vector<1x32xf32> to vector<16x32xf32>
    %528 = arith.addf %526, %527 : vector<16x32xf32>
    %529 = arith.addf %514, %528 : vector<16x32xf32>
    %cst_183 = arith.constant dense<0.000000e+00> : vector<16xf32>
    %530 = vector.multi_reduction <add>, %529, %cst_183 [1] : vector<16x32xf32> to vector<16xf32>
    %531 = vector.shape_cast %530 : vector<16xf32> to vector<16x1xf32>
    %cst_184 = arith.constant 3.200000e+01 : f32
    %532 = vector.broadcast %cst_184 : f32 to vector<16x1xf32>
    %533 = arith.divf %531, %532 : vector<16x1xf32>
    %534 = vector.broadcast %533 : vector<16x1xf32> to vector<16x32xf32>
    %535 = arith.subf %529, %534 : vector<16x32xf32>
    %536 = arith.mulf %535, %535 : vector<16x32xf32>
    %cst_185 = arith.constant dense<0.000000e+00> : vector<16xf32>
    %537 = vector.multi_reduction <add>, %536, %cst_185 [1] : vector<16x32xf32> to vector<16xf32>
    %538 = vector.shape_cast %537 : vector<16xf32> to vector<16x1xf32>
    %cst_186 = arith.constant 3.200000e+01 : f32
    %539 = vector.broadcast %cst_186 : f32 to vector<16x1xf32>
    %540 = arith.divf %538, %539 : vector<16x1xf32>
    %541 = vector.broadcast %533 : vector<16x1xf32> to vector<16x32xf32>
    %542 = arith.subf %529, %541 : vector<16x32xf32>
    %cst_187 = arith.constant 9.99999974E-6 : f32
    %543 = vector.broadcast %cst_187 : f32 to vector<16x1xf32>
    %544 = arith.addf %540, %543 : vector<16x1xf32>
    %545 = math.rsqrt %544 : vector<16x1xf32>
    %546 = vector.broadcast %545 : vector<16x1xf32> to vector<16x32xf32>
    %547 = arith.mulf %542, %546 : vector<16x32xf32>
    %548 = vector.broadcast %519 : vector<1x32xf32> to vector<16x32xf32>
    %549 = arith.mulf %547, %548 : vector<16x32xf32>
    %550 = vector.broadcast %520 : vector<1x32xf32> to vector<16x32xf32>
    %551 = arith.addf %549, %550 : vector<16x32xf32>
    %c640 = arith.constant 640 : index
    %c0_188 = arith.constant 0 : index
    %552 = vector.load %arg12[%c640, %c0_188] : memref<920x128xf32, #tpu.memory_space<vmem>>, vector<32x64xf32>
    %c832 = arith.constant 832 : index
    %c0_189 = arith.constant 0 : index
    %553 = vector.load %arg12[%c832, %c0_189] : memref<920x128xf32, #tpu.memory_space<vmem>>, vector<1x64xf32>
    %cst_190 = arith.constant dense<0.000000e+00> : vector<16x64xf32>
    %554 = tpu.matmul %9, %552, %cst_190 {dimension_numbers = #tpu.dot_dimension_numbers<[1], [0], [0], [1], [0, 0, 1, 1], [], []>} : vector<16x32xf32>, vector<32x64xf32>, vector<16x64xf32> -> vector<16x64xf32>
    %555 = vector.broadcast %553 : vector<1x64xf32> to vector<16x64xf32>
    %556 = arith.addf %554, %555 : vector<16x64xf32>
    %c672 = arith.constant 672 : index
    %c0_191 = arith.constant 0 : index
    %557 = vector.load %arg12[%c672, %c0_191] : memref<920x128xf32, #tpu.memory_space<vmem>>, vector<32x32xf32>
    %c840 = arith.constant 840 : index
    %c0_192 = arith.constant 0 : index
    %558 = vector.load %arg12[%c840, %c0_192] : memref<920x128xf32, #tpu.memory_space<vmem>>, vector<1x32xf32>
    %cst_193 = arith.constant dense<0.000000e+00> : vector<16x32xf32>
    %559 = tpu.matmul %3, %557, %cst_193 {dimension_numbers = #tpu.dot_dimension_numbers<[1], [0], [0], [1], [0, 0, 1, 1], [], []>} : vector<16x32xf32>, vector<32x32xf32>, vector<16x32xf32> -> vector<16x32xf32>
    %560 = vector.broadcast %558 : vector<1x32xf32> to vector<16x32xf32>
    %561 = arith.addf %559, %560 : vector<16x32xf32>
    %562 = vector.extract_strided_slice %556 {offsets = [0, 0], sizes = [16, 32], strides = [1, 1]} : vector<16x64xf32> to vector<16x32xf32>
    %563 = vector.extract_strided_slice %556 {offsets = [0, 32], sizes = [16, 32], strides = [1, 1]} : vector<16x64xf32> to vector<16x32xf32>
    %564 = vector.extract_strided_slice %562 {offsets = [0, 0], sizes = [16, 8], strides = [1, 1]} : vector<16x32xf32> to vector<16x8xf32>
    %565 = vector.extract_strided_slice %563 {offsets = [0, 0], sizes = [16, 8], strides = [1, 1]} : vector<16x32xf32> to vector<16x8xf32>
    %566 = vector.extract_strided_slice %561 {offsets = [0, 0], sizes = [16, 8], strides = [1, 1]} : vector<16x32xf32> to vector<16x8xf32>
    "tpu.trace_start"() <{level = 10 : i32, message = "qd,kd->qk"}> : () -> ()
    %cst_194 = arith.constant dense<0.000000e+00> : vector<16x16xf32>
    %567 = tpu.matmul %564, %565, %cst_194 {dimension_numbers = #tpu.dot_dimension_numbers<[1], [1], [0], [0], [0, 0, 1, 0], [], []>} : vector<16x8xf32>, vector<16x8xf32>, vector<16x16xf32> -> vector<16x16xf32>
    "tpu.trace_stop"() : () -> ()
    %568 = vector.extract_strided_slice %19 {offsets = [0, 0, 0], sizes = [1, 16, 16], strides = [1, 1, 1]} : vector<4x16x16xf32> to vector<1x16x16xf32>
    %569 = vector.shape_cast %568 : vector<1x16x16xf32> to vector<16x16xf32>
    %cst_195 = arith.constant 9.99999997E-7 : f32
    %570 = vector.broadcast %cst_195 : f32 to vector<16x16xf32>
    %571 = arith.maximumf %569, %570 : vector<16x16xf32>
    %cst_196 = arith.constant 9.99999997E-7 : f32
    %572 = vector.broadcast %cst_196 : f32 to vector<16x16xf32>
    %573 = arith.maximumf %265, %572 : vector<16x16xf32>
    %574 = arith.mulf %571, %573 : vector<16x16xf32>
    %575 = math.log %574 : vector<16x16xf32>
    %576 = arith.addf %575, %567 : vector<16x16xf32>
    %577 = vector.broadcast %13 : vector<1x16xf32> to vector<16x16xf32>
    %578 = arith.addf %576, %577 : vector<16x16xf32>
    %cst_197 = arith.constant dense<0xFF800000> : vector<16xf32>
    %579 = vector.multi_reduction <maximumf>, %578, %cst_197 [1] : vector<16x16xf32> to vector<16xf32>
    %580 = vector.shape_cast %579 : vector<16xf32> to vector<16x1xf32>
    %581 = vector.broadcast %580 : vector<16x1xf32> to vector<16x16xf32>
    %582 = arith.subf %578, %581 : vector<16x16xf32>
    %583 = math.exp %582 : vector<16x16xf32>
    %cst_198 = arith.constant dense<0.000000e+00> : vector<16xf32>
    %584 = vector.multi_reduction <add>, %583, %cst_198 [1] : vector<16x16xf32> to vector<16xf32>
    %585 = vector.shape_cast %584 : vector<16xf32> to vector<16x1xf32>
    %586 = vector.broadcast %585 : vector<16x1xf32> to vector<16x16xf32>
    %587 = arith.divf %583, %586 : vector<16x16xf32>
    %cst_199 = arith.constant dense<0.000000e+00> : vector<16x8xf32>
    %588 = tpu.matmul %587, %566, %cst_199 {dimension_numbers = #tpu.dot_dimension_numbers<[1], [0], [0], [1], [0, 0, 1, 1], [], []>} : vector<16x16xf32>, vector<16x8xf32>, vector<16x8xf32> -> vector<16x8xf32>
    %589 = vector.extract_strided_slice %562 {offsets = [0, 8], sizes = [16, 8], strides = [1, 1]} : vector<16x32xf32> to vector<16x8xf32>
    %590 = vector.extract_strided_slice %563 {offsets = [0, 8], sizes = [16, 8], strides = [1, 1]} : vector<16x32xf32> to vector<16x8xf32>
    %591 = vector.extract_strided_slice %561 {offsets = [0, 8], sizes = [16, 8], strides = [1, 1]} : vector<16x32xf32> to vector<16x8xf32>
    "tpu.trace_start"() <{level = 10 : i32, message = "qd,kd->qk"}> : () -> ()
    %cst_200 = arith.constant dense<0.000000e+00> : vector<16x16xf32>
    %592 = tpu.matmul %589, %590, %cst_200 {dimension_numbers = #tpu.dot_dimension_numbers<[1], [1], [0], [0], [0, 0, 1, 0], [], []>} : vector<16x8xf32>, vector<16x8xf32>, vector<16x16xf32> -> vector<16x16xf32>
    "tpu.trace_stop"() : () -> ()
    %593 = vector.extract_strided_slice %19 {offsets = [1, 0, 0], sizes = [1, 16, 16], strides = [1, 1, 1]} : vector<4x16x16xf32> to vector<1x16x16xf32>
    %594 = vector.shape_cast %593 : vector<1x16x16xf32> to vector<16x16xf32>
    %cst_201 = arith.constant 9.99999997E-7 : f32
    %595 = vector.broadcast %cst_201 : f32 to vector<16x16xf32>
    %596 = arith.maximumf %594, %595 : vector<16x16xf32>
    %cst_202 = arith.constant 9.99999997E-7 : f32
    %597 = vector.broadcast %cst_202 : f32 to vector<16x16xf32>
    %598 = arith.maximumf %296, %597 : vector<16x16xf32>
    %599 = arith.mulf %596, %598 : vector<16x16xf32>
    %600 = math.log %599 : vector<16x16xf32>
    %601 = arith.addf %600, %592 : vector<16x16xf32>
    %602 = vector.broadcast %13 : vector<1x16xf32> to vector<16x16xf32>
    %603 = arith.addf %601, %602 : vector<16x16xf32>
    %cst_203 = arith.constant dense<0xFF800000> : vector<16xf32>
    %604 = vector.multi_reduction <maximumf>, %603, %cst_203 [1] : vector<16x16xf32> to vector<16xf32>
    %605 = vector.shape_cast %604 : vector<16xf32> to vector<16x1xf32>
    %606 = vector.broadcast %605 : vector<16x1xf32> to vector<16x16xf32>
    %607 = arith.subf %603, %606 : vector<16x16xf32>
    %608 = math.exp %607 : vector<16x16xf32>
    %cst_204 = arith.constant dense<0.000000e+00> : vector<16xf32>
    %609 = vector.multi_reduction <add>, %608, %cst_204 [1] : vector<16x16xf32> to vector<16xf32>
    %610 = vector.shape_cast %609 : vector<16xf32> to vector<16x1xf32>
    %611 = vector.broadcast %610 : vector<16x1xf32> to vector<16x16xf32>
    %612 = arith.divf %608, %611 : vector<16x16xf32>
    %cst_205 = arith.constant dense<0.000000e+00> : vector<16x8xf32>
    %613 = tpu.matmul %612, %591, %cst_205 {dimension_numbers = #tpu.dot_dimension_numbers<[1], [0], [0], [1], [0, 0, 1, 1], [], []>} : vector<16x16xf32>, vector<16x8xf32>, vector<16x8xf32> -> vector<16x8xf32>
    %614 = vector.extract_strided_slice %562 {offsets = [0, 16], sizes = [16, 8], strides = [1, 1]} : vector<16x32xf32> to vector<16x8xf32>
    %615 = vector.extract_strided_slice %563 {offsets = [0, 16], sizes = [16, 8], strides = [1, 1]} : vector<16x32xf32> to vector<16x8xf32>
    %616 = vector.extract_strided_slice %561 {offsets = [0, 16], sizes = [16, 8], strides = [1, 1]} : vector<16x32xf32> to vector<16x8xf32>
    "tpu.trace_start"() <{level = 10 : i32, message = "qd,kd->qk"}> : () -> ()
    %cst_206 = arith.constant dense<0.000000e+00> : vector<16x16xf32>
    %617 = tpu.matmul %614, %615, %cst_206 {dimension_numbers = #tpu.dot_dimension_numbers<[1], [1], [0], [0], [0, 0, 1, 0], [], []>} : vector<16x8xf32>, vector<16x8xf32>, vector<16x16xf32> -> vector<16x16xf32>
    "tpu.trace_stop"() : () -> ()
    %618 = vector.extract_strided_slice %19 {offsets = [2, 0, 0], sizes = [1, 16, 16], strides = [1, 1, 1]} : vector<4x16x16xf32> to vector<1x16x16xf32>
    %619 = vector.shape_cast %618 : vector<1x16x16xf32> to vector<16x16xf32>
    %cst_207 = arith.constant 9.99999997E-7 : f32
    %620 = vector.broadcast %cst_207 : f32 to vector<16x16xf32>
    %621 = arith.maximumf %619, %620 : vector<16x16xf32>
    %cst_208 = arith.constant 9.99999997E-7 : f32
    %622 = vector.broadcast %cst_208 : f32 to vector<16x16xf32>
    %623 = arith.maximumf %327, %622 : vector<16x16xf32>
    %624 = arith.mulf %621, %623 : vector<16x16xf32>
    %625 = math.log %624 : vector<16x16xf32>
    %626 = arith.addf %625, %617 : vector<16x16xf32>
    %627 = vector.broadcast %13 : vector<1x16xf32> to vector<16x16xf32>
    %628 = arith.addf %626, %627 : vector<16x16xf32>
    %cst_209 = arith.constant dense<0xFF800000> : vector<16xf32>
    %629 = vector.multi_reduction <maximumf>, %628, %cst_209 [1] : vector<16x16xf32> to vector<16xf32>
    %630 = vector.shape_cast %629 : vector<16xf32> to vector<16x1xf32>
    %631 = vector.broadcast %630 : vector<16x1xf32> to vector<16x16xf32>
    %632 = arith.subf %628, %631 : vector<16x16xf32>
    %633 = math.exp %632 : vector<16x16xf32>
    %cst_210 = arith.constant dense<0.000000e+00> : vector<16xf32>
    %634 = vector.multi_reduction <add>, %633, %cst_210 [1] : vector<16x16xf32> to vector<16xf32>
    %635 = vector.shape_cast %634 : vector<16xf32> to vector<16x1xf32>
    %636 = vector.broadcast %635 : vector<16x1xf32> to vector<16x16xf32>
    %637 = arith.divf %633, %636 : vector<16x16xf32>
    %cst_211 = arith.constant dense<0.000000e+00> : vector<16x8xf32>
    %638 = tpu.matmul %637, %616, %cst_211 {dimension_numbers = #tpu.dot_dimension_numbers<[1], [0], [0], [1], [0, 0, 1, 1], [], []>} : vector<16x16xf32>, vector<16x8xf32>, vector<16x8xf32> -> vector<16x8xf32>
    %639 = vector.extract_strided_slice %562 {offsets = [0, 24], sizes = [16, 8], strides = [1, 1]} : vector<16x32xf32> to vector<16x8xf32>
    %640 = vector.extract_strided_slice %563 {offsets = [0, 24], sizes = [16, 8], strides = [1, 1]} : vector<16x32xf32> to vector<16x8xf32>
    %641 = vector.extract_strided_slice %561 {offsets = [0, 24], sizes = [16, 8], strides = [1, 1]} : vector<16x32xf32> to vector<16x8xf32>
    "tpu.trace_start"() <{level = 10 : i32, message = "qd,kd->qk"}> : () -> ()
    %cst_212 = arith.constant dense<0.000000e+00> : vector<16x16xf32>
    %642 = tpu.matmul %639, %640, %cst_212 {dimension_numbers = #tpu.dot_dimension_numbers<[1], [1], [0], [0], [0, 0, 1, 0], [], []>} : vector<16x8xf32>, vector<16x8xf32>, vector<16x16xf32> -> vector<16x16xf32>
    "tpu.trace_stop"() : () -> ()
    %643 = vector.extract_strided_slice %19 {offsets = [3, 0, 0], sizes = [1, 16, 16], strides = [1, 1, 1]} : vector<4x16x16xf32> to vector<1x16x16xf32>
    %644 = vector.shape_cast %643 : vector<1x16x16xf32> to vector<16x16xf32>
    %cst_213 = arith.constant 9.99999997E-7 : f32
    %645 = vector.broadcast %cst_213 : f32 to vector<16x16xf32>
    %646 = arith.maximumf %644, %645 : vector<16x16xf32>
    %cst_214 = arith.constant 9.99999997E-7 : f32
    %647 = vector.broadcast %cst_214 : f32 to vector<16x16xf32>
    %648 = arith.maximumf %358, %647 : vector<16x16xf32>
    %649 = arith.mulf %646, %648 : vector<16x16xf32>
    %650 = math.log %649 : vector<16x16xf32>
    %651 = arith.addf %650, %642 : vector<16x16xf32>
    %652 = vector.broadcast %13 : vector<1x16xf32> to vector<16x16xf32>
    %653 = arith.addf %651, %652 : vector<16x16xf32>
    %cst_215 = arith.constant dense<0xFF800000> : vector<16xf32>
    %654 = vector.multi_reduction <maximumf>, %653, %cst_215 [1] : vector<16x16xf32> to vector<16xf32>
    %655 = vector.shape_cast %654 : vector<16xf32> to vector<16x1xf32>
    %656 = vector.broadcast %655 : vector<16x1xf32> to vector<16x16xf32>
    %657 = arith.subf %653, %656 : vector<16x16xf32>
    %658 = math.exp %657 : vector<16x16xf32>
    %cst_216 = arith.constant dense<0.000000e+00> : vector<16xf32>
    %659 = vector.multi_reduction <add>, %658, %cst_216 [1] : vector<16x16xf32> to vector<16xf32>
    %660 = vector.shape_cast %659 : vector<16xf32> to vector<16x1xf32>
    %661 = vector.broadcast %660 : vector<16x1xf32> to vector<16x16xf32>
    %662 = arith.divf %658, %661 : vector<16x16xf32>
    %cst_217 = arith.constant dense<0.000000e+00> : vector<16x8xf32>
    %663 = tpu.matmul %662, %641, %cst_217 {dimension_numbers = #tpu.dot_dimension_numbers<[1], [0], [0], [1], [0, 0, 1, 1], [], []>} : vector<16x16xf32>, vector<16x8xf32>, vector<16x8xf32> -> vector<16x8xf32>
    %664 = tpu.concatenate %588, %613, %638, %663 in 1 : vector<16x8xf32>, vector<16x8xf32>, vector<16x8xf32>, vector<16x8xf32> -> vector<16x32xf32>
    %c704 = arith.constant 704 : index
    %c0_218 = arith.constant 0 : index
    %665 = vector.load %arg12[%c704, %c0_218] : memref<920x128xf32, #tpu.memory_space<vmem>>, vector<32x32xf32>
    %c848 = arith.constant 848 : index
    %c0_219 = arith.constant 0 : index
    %666 = vector.load %arg12[%c848, %c0_219] : memref<920x128xf32, #tpu.memory_space<vmem>>, vector<1x32xf32>
    %cst_220 = arith.constant dense<0.000000e+00> : vector<16x32xf32>
    %667 = tpu.matmul %664, %665, %cst_220 {dimension_numbers = #tpu.dot_dimension_numbers<[1], [0], [0], [1], [0, 0, 1, 1], [], []>} : vector<16x32xf32>, vector<32x32xf32>, vector<16x32xf32> -> vector<16x32xf32>
    %668 = vector.broadcast %666 : vector<1x32xf32> to vector<16x32xf32>
    %669 = arith.addf %667, %668 : vector<16x32xf32>
    %670 = arith.addf %9, %669 : vector<16x32xf32>
    %c856 = arith.constant 856 : index
    %c0_221 = arith.constant 0 : index
    %671 = vector.load %arg12[%c856, %c0_221] : memref<920x128xf32, #tpu.memory_space<vmem>>, vector<1x32xf32>
    %c864 = arith.constant 864 : index
    %c0_222 = arith.constant 0 : index
    %672 = vector.load %arg12[%c864, %c0_222] : memref<920x128xf32, #tpu.memory_space<vmem>>, vector<1x32xf32>
    %cst_223 = arith.constant dense<0.000000e+00> : vector<16xf32>
    %673 = vector.multi_reduction <add>, %670, %cst_223 [1] : vector<16x32xf32> to vector<16xf32>
    %674 = vector.shape_cast %673 : vector<16xf32> to vector<16x1xf32>
    %cst_224 = arith.constant 3.200000e+01 : f32
    %675 = vector.broadcast %cst_224 : f32 to vector<16x1xf32>
    %676 = arith.divf %674, %675 : vector<16x1xf32>
    %677 = vector.broadcast %676 : vector<16x1xf32> to vector<16x32xf32>
    %678 = arith.subf %670, %677 : vector<16x32xf32>
    %679 = arith.mulf %678, %678 : vector<16x32xf32>
    %cst_225 = arith.constant dense<0.000000e+00> : vector<16xf32>
    %680 = vector.multi_reduction <add>, %679, %cst_225 [1] : vector<16x32xf32> to vector<16xf32>
    %681 = vector.shape_cast %680 : vector<16xf32> to vector<16x1xf32>
    %cst_226 = arith.constant 3.200000e+01 : f32
    %682 = vector.broadcast %cst_226 : f32 to vector<16x1xf32>
    %683 = arith.divf %681, %682 : vector<16x1xf32>
    %684 = vector.broadcast %676 : vector<16x1xf32> to vector<16x32xf32>
    %685 = arith.subf %670, %684 : vector<16x32xf32>
    %cst_227 = arith.constant 9.99999974E-6 : f32
    %686 = vector.broadcast %cst_227 : f32 to vector<16x1xf32>
    %687 = arith.addf %683, %686 : vector<16x1xf32>
    %688 = math.rsqrt %687 : vector<16x1xf32>
    %689 = vector.broadcast %688 : vector<16x1xf32> to vector<16x32xf32>
    %690 = arith.mulf %685, %689 : vector<16x32xf32>
    %691 = vector.broadcast %671 : vector<1x32xf32> to vector<16x32xf32>
    %692 = arith.mulf %690, %691 : vector<16x32xf32>
    %693 = vector.broadcast %672 : vector<1x32xf32> to vector<16x32xf32>
    %694 = arith.addf %692, %693 : vector<16x32xf32>
    %695 = arith.addf %3, %694 : vector<16x32xf32>
    %c872 = arith.constant 872 : index
    %c0_228 = arith.constant 0 : index
    %696 = vector.load %arg12[%c872, %c0_228] : memref<920x128xf32, #tpu.memory_space<vmem>>, vector<1x32xf32>
    %c880 = arith.constant 880 : index
    %c0_229 = arith.constant 0 : index
    %697 = vector.load %arg12[%c880, %c0_229] : memref<920x128xf32, #tpu.memory_space<vmem>>, vector<1x32xf32>
    %cst_230 = arith.constant dense<0.000000e+00> : vector<16xf32>
    %698 = vector.multi_reduction <add>, %695, %cst_230 [1] : vector<16x32xf32> to vector<16xf32>
    %699 = vector.shape_cast %698 : vector<16xf32> to vector<16x1xf32>
    %cst_231 = arith.constant 3.200000e+01 : f32
    %700 = vector.broadcast %cst_231 : f32 to vector<16x1xf32>
    %701 = arith.divf %699, %700 : vector<16x1xf32>
    %702 = vector.broadcast %701 : vector<16x1xf32> to vector<16x32xf32>
    %703 = arith.subf %695, %702 : vector<16x32xf32>
    %704 = arith.mulf %703, %703 : vector<16x32xf32>
    %cst_232 = arith.constant dense<0.000000e+00> : vector<16xf32>
    %705 = vector.multi_reduction <add>, %704, %cst_232 [1] : vector<16x32xf32> to vector<16xf32>
    %706 = vector.shape_cast %705 : vector<16xf32> to vector<16x1xf32>
    %cst_233 = arith.constant 3.200000e+01 : f32
    %707 = vector.broadcast %cst_233 : f32 to vector<16x1xf32>
    %708 = arith.divf %706, %707 : vector<16x1xf32>
    %709 = vector.broadcast %701 : vector<16x1xf32> to vector<16x32xf32>
    %710 = arith.subf %695, %709 : vector<16x32xf32>
    %cst_234 = arith.constant 9.99999974E-6 : f32
    %711 = vector.broadcast %cst_234 : f32 to vector<16x1xf32>
    %712 = arith.addf %708, %711 : vector<16x1xf32>
    %713 = math.rsqrt %712 : vector<16x1xf32>
    %714 = vector.broadcast %713 : vector<16x1xf32> to vector<16x32xf32>
    %715 = arith.mulf %710, %714 : vector<16x32xf32>
    %716 = vector.broadcast %696 : vector<1x32xf32> to vector<16x32xf32>
    %717 = arith.mulf %715, %716 : vector<16x32xf32>
    %718 = vector.broadcast %697 : vector<1x32xf32> to vector<16x32xf32>
    %719 = arith.addf %717, %718 : vector<16x32xf32>
    %c736 = arith.constant 736 : index
    %c0_235 = arith.constant 0 : index
    %720 = vector.load %arg12[%c736, %c0_235] : memref<920x128xf32, #tpu.memory_space<vmem>>, vector<32x64xf32>
    %c888 = arith.constant 888 : index
    %c0_236 = arith.constant 0 : index
    %721 = vector.load %arg12[%c888, %c0_236] : memref<920x128xf32, #tpu.memory_space<vmem>>, vector<1x64xf32>
    %c768 = arith.constant 768 : index
    %c0_237 = arith.constant 0 : index
    %722 = vector.load %arg12[%c768, %c0_237] : memref<920x128xf32, #tpu.memory_space<vmem>>, vector<64x32xf32>
    %c896 = arith.constant 896 : index
    %c0_238 = arith.constant 0 : index
    %723 = vector.load %arg12[%c896, %c0_238] : memref<920x128xf32, #tpu.memory_space<vmem>>, vector<1x32xf32>
    %c904 = arith.constant 904 : index
    %c0_239 = arith.constant 0 : index
    %724 = vector.load %arg12[%c904, %c0_239] : memref<920x128xf32, #tpu.memory_space<vmem>>, vector<1x32xf32>
    %c912 = arith.constant 912 : index
    %c0_240 = arith.constant 0 : index
    %725 = vector.load %arg12[%c912, %c0_240] : memref<920x128xf32, #tpu.memory_space<vmem>>, vector<1x32xf32>
    %cst_241 = arith.constant dense<0.000000e+00> : vector<16x64xf32>
    %726 = tpu.matmul %719, %720, %cst_241 {dimension_numbers = #tpu.dot_dimension_numbers<[1], [0], [0], [1], [0, 0, 1, 1], [], []>} : vector<16x32xf32>, vector<32x64xf32>, vector<16x64xf32> -> vector<16x64xf32>
    %727 = vector.broadcast %721 : vector<1x64xf32> to vector<16x64xf32>
    %728 = arith.addf %726, %727 : vector<16x64xf32>
    %cst_242 = arith.constant 0.000000e+00 : f32
    %729 = vector.broadcast %cst_242 : f32 to vector<16x64xf32>
    %730 = arith.maximumf %728, %729 : vector<16x64xf32>
    %cst_243 = arith.constant dense<0.000000e+00> : vector<16x32xf32>
    %731 = tpu.matmul %730, %722, %cst_243 {dimension_numbers = #tpu.dot_dimension_numbers<[1], [0], [0], [1], [0, 0, 1, 1], [], []>} : vector<16x64xf32>, vector<64x32xf32>, vector<16x32xf32> -> vector<16x32xf32>
    %732 = vector.broadcast %723 : vector<1x32xf32> to vector<16x32xf32>
    %733 = arith.addf %731, %732 : vector<16x32xf32>
    %734 = arith.addf %719, %733 : vector<16x32xf32>
    %cst_244 = arith.constant dense<0.000000e+00> : vector<16xf32>
    %735 = vector.multi_reduction <add>, %734, %cst_244 [1] : vector<16x32xf32> to vector<16xf32>
    %736 = vector.shape_cast %735 : vector<16xf32> to vector<16x1xf32>
    %cst_245 = arith.constant 3.200000e+01 : f32
    %737 = vector.broadcast %cst_245 : f32 to vector<16x1xf32>
    %738 = arith.divf %736, %737 : vector<16x1xf32>
    %739 = vector.broadcast %738 : vector<16x1xf32> to vector<16x32xf32>
    %740 = arith.subf %734, %739 : vector<16x32xf32>
    %741 = arith.mulf %740, %740 : vector<16x32xf32>
    %cst_246 = arith.constant dense<0.000000e+00> : vector<16xf32>
    %742 = vector.multi_reduction <add>, %741, %cst_246 [1] : vector<16x32xf32> to vector<16xf32>
    %743 = vector.shape_cast %742 : vector<16xf32> to vector<16x1xf32>
    %cst_247 = arith.constant 3.200000e+01 : f32
    %744 = vector.broadcast %cst_247 : f32 to vector<16x1xf32>
    %745 = arith.divf %743, %744 : vector<16x1xf32>
    %746 = vector.broadcast %738 : vector<16x1xf32> to vector<16x32xf32>
    %747 = arith.subf %734, %746 : vector<16x32xf32>
    %cst_248 = arith.constant 9.99999974E-6 : f32
    %748 = vector.broadcast %cst_248 : f32 to vector<16x1xf32>
    %749 = arith.addf %745, %748 : vector<16x1xf32>
    %750 = math.rsqrt %749 : vector<16x1xf32>
    %751 = vector.broadcast %750 : vector<16x1xf32> to vector<16x32xf32>
    %752 = arith.mulf %747, %751 : vector<16x32xf32>
    %753 = vector.broadcast %724 : vector<1x32xf32> to vector<16x32xf32>
    %754 = arith.mulf %752, %753 : vector<16x32xf32>
    %755 = vector.broadcast %725 : vector<1x32xf32> to vector<16x32xf32>
    %756 = arith.addf %754, %755 : vector<16x32xf32>
    %757 = tpu.concatenate %551, %756 in 0 : vector<16x32xf32>, vector<16x32xf32> -> vector<32x32xf32>
    %c0_249 = arith.constant 0 : index
    %c0_250 = arith.constant 0 : index
    %c0_251 = arith.constant 0 : index
    %758 = vector.load %arg13[%c0_249, %c0_250, %c0_251] : memref<1x32x32xf32, #tpu.memory_space<vmem>>, vector<1x32x32xf32>
    %759 = vector.shape_cast %758 : vector<1x32x32xf32> to vector<32x32xf32>
    %760 = vector.shape_cast %757 : vector<32x32xf32> to vector<1x32x32xf32>
    tpu.vector_store %arg13[%c0_249, %c0_250, %c0_251], %760 {strides = array<i32>} : memref<1x32x32xf32, #tpu.memory_space<vmem>>, vector<1x32x32xf32>,
    return
  }
  func.func @transform_0(%arg0: i32) -> (i32, i32, i32) {
    %c0_i32 = arith.constant 0 : i32
    %c0_i32_0 = arith.constant 0 : i32
    %c0_i32_1 = arith.constant 0 : i32
    return %arg0, %c0_i32, %c0_i32_0 : i32, i32, i32
  }
  func.func @transform_1(%arg0: i32) -> (i32, i32, i32) {
    %c0_i32 = arith.constant 0 : i32
    %c0_i32_0 = arith.constant 0 : i32
    %c0_i32_1 = arith.constant 0 : i32
    return %arg0, %c0_i32, %c0_i32_0 : i32, i32, i32
  }
  func.func @transform_2(%arg0: i32) -> (i32, i32, i32) {
    %c0_i32 = arith.constant 0 : i32
    %c0_i32_0 = arith.constant 0 : i32
    %c0_i32_1 = arith.constant 0 : i32
    return %arg0, %c0_i32, %c0_i32_0 : i32, i32, i32
  }
  func.func @transform_3(%arg0: i32) -> (i32, i32, i32) {
    %c0_i32 = arith.constant 0 : i32
    %c0_i32_0 = arith.constant 0 : i32
    %c0_i32_1 = arith.constant 0 : i32
    return %arg0, %c0_i32, %c0_i32_0 : i32, i32, i32
  }
  func.func @transform_4(%arg0: i32) -> (i32, i32, i32, i32) {
    %c0_i32 = arith.constant 0 : i32
    %c0_i32_0 = arith.constant 0 : i32
    %c0_i32_1 = arith.constant 0 : i32
    %c0_i32_2 = arith.constant 0 : i32
    return %arg0, %c0_i32, %c0_i32_0, %c0_i32_1 : i32, i32, i32, i32
  }
  func.func @transform_5(%arg0: i32) -> (i32, i32, i32, i32) {
    %c0_i32 = arith.constant 0 : i32
    %c0_i32_0 = arith.constant 0 : i32
    %c0_i32_1 = arith.constant 0 : i32
    %c0_i32_2 = arith.constant 0 : i32
    return %arg0, %c0_i32, %c0_i32_0, %c0_i32_1 : i32, i32, i32, i32
  }
  func.func @transform_6(%arg0: i32) -> (i32, i32, i32, i32) {
    %c0_i32 = arith.constant 0 : i32
    %c0_i32_0 = arith.constant 0 : i32
    %c0_i32_1 = arith.constant 0 : i32
    %c0_i32_2 = arith.constant 0 : i32
    return %arg0, %c0_i32, %c0_i32_0, %c0_i32_1 : i32, i32, i32, i32
  }
  func.func @transform_7(%arg0: i32) -> (i32, i32, i32) {
    %c0_i32 = arith.constant 0 : i32
    %c0_i32_0 = arith.constant 0 : i32
    %c0_i32_1 = arith.constant 0 : i32
    return %arg0, %c0_i32, %c0_i32_0 : i32, i32, i32
  }
  func.func @transform_8(%arg0: i32) -> (i32, i32, i32) {
    %c0_i32 = arith.constant 0 : i32
    %c0_i32_0 = arith.constant 0 : i32
    %c0_i32_1 = arith.constant 0 : i32
    return %arg0, %c0_i32, %c0_i32_0 : i32, i32, i32
  }
  func.func @transform_9(%arg0: i32) -> (i32, i32, i32) {
    %c0_i32 = arith.constant 0 : i32
    %c0_i32_0 = arith.constant 0 : i32
    %c0_i32_1 = arith.constant 0 : i32
    return %arg0, %c0_i32, %c0_i32_0 : i32, i32, i32
  }
  func.func @transform_10(%arg0: i32) -> (i32, i32, i32) {
    %c0_i32 = arith.constant 0 : i32
    %c0_i32_0 = arith.constant 0 : i32
    %c0_i32_1 = arith.constant 0 : i32
    return %arg0, %c0_i32, %c0_i32_0 : i32, i32, i32
  }
  func.func @transform_11(%arg0: i32) -> (i32, i32) {
    %c0_i32 = arith.constant 0 : i32
    %c0_i32_0 = arith.constant 0 : i32
    %c0_i32_1 = arith.constant 0 : i32
    return %c0_i32, %c0_i32_0 : i32, i32
  }
  func.func @transform_12(%arg0: i32) -> (i32, i32, i32) {
    %c0_i32 = arith.constant 0 : i32
    %c0_i32_0 = arith.constant 0 : i32
    %c0_i32_1 = arith.constant 0 : i32
    return %arg0, %c0_i32, %c0_i32_0 : i32, i32, i32
  }
}

</mosaic_0001>

<bundles_post_ra>
// kernel: multi_level_encoder.1
= control target key start
LH: loop header
LB: loop body
LE: loop exit
PB: predicated region body
PF: predicated region fallthrough
CT: control target
= control target key end

     0   :  { %s8304_s21 = smov 0   ;;  %s9472_s0 = inlined_call_operand.vmem [shape: f32[2,16,32], index: 0, kind: input, shape index: {}]   ;;  %s9473_s1 = inlined_call_operand.vmem [shape: f32[2,16,32], index: 1, kind: input, shape index: {}]   ;;  %s9474_s2 = inlined_call_operand.vmem [shape: f32[2,16,32], index: 2, kind: input, shape index: {}]   ;;  %s9475_s3 = inlined_call_operand.vmem [shape: f32[2,16,32], index: 3, kind: input, shape index: {}]   ;;  %s9476_s4 = inlined_call_operand.vmem [shape: f32[2,4,16,16], index: 4, kind: input, shape index: {}]   ;;  %s9477_s5 = inlined_call_operand.vmem [shape: f32[2,4,16,16], index: 5, kind: input, shape index: {}]   ;;  %s9478_s6 = inlined_call_operand.vmem [shape: f32[2,4,16,16], index: 6, kind: input, shape index: {}]   ;;  %s9479_s7 = inlined_call_operand.vmem [shape: f32[2,16,16], index: 7, kind: input, shape index: {}]   ;;  %s9480_s8 = inlined_call_operand.vmem [shape: f32[2,16,16], index: 8, kind: input, shape index: {}]   ;;  %s9481_s9 = inlined_call_operand.vmem [shape: f32[2,1,16], index: 9, kind: input, shape index: {}]   ;;  %s9482_s10 = inlined_call_operand.vmem [shape: f32[2,1,16], index: 10, kind: input, shape index: {}]   ;;  %s9483_s11 = inlined_call_operand.vmem [shape: f32[920,128], index: 11, kind: input, shape index: {}]   ;;  %s9484_s12 = inlined_call_operand.vmem [shape: f32[2,32,32], index: 12, kind: output, shape index: {}]  }
   0x1   :  { %9502 = sst [smem:[#allocation2_spill]] %s9472_s0 }
   0x2   :  { %9503 = sst [smem:[#allocation3_spill]] %s9473_s1 }
   0x3   :  { %9504 = sst [smem:[#allocation4_spill]] %s9474_s2 }
   0x4   :  { %9505 = sst [smem:[#allocation5_spill]] %s9475_s3 }
   0x5 LB: > { %s6555_s22 = sadd.s32 4294967295, %s8227_s21   ;;  %p6559_p0 = scmp.ge.s32.totalorder %s8227_s21, 1  ;;  %s8227_s21 = sphi %s8304_s21, %s22_s21  }
   0x6   : > { %p458_p1 = scmp.lt.s32.totalorder %s8227_s21, 3 }
   0x8   : > { %p459_p2 = pnand %p6559_p0, %p458_p1 }
   0x9   : > { %v644_v0 = vld [vmem:[%s9483_s11] sm:$0xff] (!%p459_p2)  ;;  %v645_v1 = vld [vmem:[%s9483_s11 + $0x8] sm:$0xff] (!%p459_p2)  ;;  %v646_v2 = vld [vmem:[%s9483_s11 + $0x10] sm:$0xff] (!%p459_p2)  ;;  %p546_p3 = scmp.lt.s32.totalorder (!%p459_p2), %s6555_s22, 1  ;;  %s9506_s0 = sld [smem:[#allocation2_spill]] (!%p459_p2)  ;;  %vm653_vm0 = vcmask (!%p459_p2), 261120  }
   0xa   : > { %462 = sbr.rel (%p459_p2) target bundleno = 13836 (0x360c), region = 68  ;;  %v7490_v3 = vpack.c.bf16 (!%p459_p2), %v645_v1, %v644_v0  ;;  %v647_v4 = vld [vmem:[%s9483_s11 + $0x18] sm:$0xff] (!%p459_p2)  ;;  %v735_v6 = vld [vmem:[%s9483_s11 + $0x20] sm:$0xff] (!%p459_p2)  ;;  %v736_v7 = vld [vmem:[%s9483_s11 + $0x28] sm:$0xff] (!%p459_p2)  ;;  %s9507_s2 = sld [smem:[#allocation4_spill]] (!%p459_p2)  ;;  %vm915_vm1 = vcmask (!%p459_p2), 64512  }
   0xb   : > { %v7494_v5 = vpack.c.bf16 (!%p459_p2), %v647_v4, %v646_v2  ;;  %v7498_v8 = vpack.c.bf16 (!%p459_p2), %v736_v7, %v735_v6  ;;  %v737_v9 = vld [vmem:[%s9483_s11 + $0x30] sm:$0xff] (!%p459_p2)  ;;  %v738_v10 = vld [vmem:[%s9483_s11 + $0x38] sm:$0xff] (!%p459_p2)  ;;  %s9508_s1 = sld [smem:[#allocation3_spill]] (!%p459_p2)  ;;  %s9509_s3 = sld [smem:[#allocation5_spill]] (!%p459_p2)  ;;  %v6580_v24 = vld [vmem:[%s9483_s11 + $0x100] ss:$0 sm:$0xff] (!%p459_p2) }
   0xc   : > { %7491 = vmatprep.subr.bf16.mxu1 (!%p459_p2), %v7490_v3  ;;  %v7502_v18 = vpack.c.bf16 (!%p459_p2), %v738_v10, %v737_v9  ;;  %s9495_s24 = smov (!%p459_p2), 120   ;;  %v6583_v29 = vld [vmem:[%s9483_s11 + $0x108] ss:$0 sm:$0xff] (!%p459_p2)  ;;  %vm8404_vm2 = vmpackc.low (!%p459_p2), %vm915_vm1, %vm915_vm1  ;;  %v825_v37 = vld [vmem:[%s9483_s11 + $0x40] sm:$0xff] (!%p459_p2)  ;;  %vm1019_vm3 = vcmask (!%p459_p2), 130048   ;;  %s9493_s15 = smov (!%p459_p2), 112  }
   0xd   : > { %7493 = vmatpush3.bf16.msra.mxu1 (!%p459_p2), %v7490_v3  ;;  %v826_v38 = vld [vmem:[%s9483_s11 + $0x48] sm:$0xff] (!%p459_p2)  ;;  %v827_v39 = vld [vmem:[%s9483_s11 + $0x50] sm:$0xff] (!%p459_p2)  ;;  %v828_v41 = vld [vmem:[%s9483_s11 + $0x58] sm:$0xff] (!%p459_p2)  ;;  %s9491_s16 = smov (!%p459_p2), 104   ;;  %s9485_s23 = smov (!%p459_p2), 16   ;;  %vm1783_vm4 = vcmask (!%p459_p2), 195584  }
   0xe   : > { %7495 = vmatprep.subr.bf16.mxu1 (!%p459_p2), %v7494_v5  ;;  %v7506_v40 = vpack.c.bf16 (!%p459_p2), %v826_v38, %v825_v37  ;;  %v7510_v42 = vpack.c.bf16 (!%p459_p2), %v828_v41, %v827_v39  ;;  %v6586_v39 = vld [vmem:[%s9483_s11 + $0x110] ss:$0 sm:$0xff] (!%p459_p2)  ;;  %vm2090_vm5 = vcmask (!%p459_p2), 523264   ;;  %s9513_s27 = smov (!%p459_p2), 112   ;;  %s9514_s28 = smov (!%p459_p2), 104  }
   0xf   : > { %s9517_s30 = smov (!%p459_p2), 16  }
  0x10   : > { %7507 = vmatprep.subr.bf16.mxu0 (!%p459_p2), %v7506_v40 }
  0x11   : > { %s9523_s22 = smov (!%p546_p3, %s6555_s22), 1  ;;  %7497 = vmatpush3.bf16.msra.mxu1 %v7494_v5  ;;  %7509 = vmatpush3.bf16.msra.mxu0 %v7506_v40 }
  0x12   : > { %s8333_s17 = sshll.u32 %s9523_s22, 4  ;;  %7499 = vmatprep.subr.bf16.mxu1 %v7498_v8  ;;  %7511 = vmatprep.subr.bf16.mxu0 %v7510_v42  ;;  %s8440_s19 = sshll.u32 %s9523_s22, 6 }
  0x13   : > { %s8339_s20 = scalar_lea.vmem %s9506_s0, %s8333_s17  ;;  %s560_s25 = scalar_lea.vmem %s9507_s2, %s8333_s17 }
  0x14   : > { %v8352_v11 = vld [vmem:[%s8339_s20] sm:$0xff]  ;;  %v8355_v13 = vld [vmem:[%s8339_s20 + $0x8] sm:$0xff]  ;;  %s8364_s14 = scalar_lea.vmem %s9508_s1, %s8333_s17  ;;  %s565_s18 = scalar_lea.vmem %s9509_s3, %s8333_s17 }
  0x15   : > { %v606_v12 = vld [vmem:[%s560_s25] sm:$0xff]  ;;  %v607_v15 = vld [vmem:[%s560_s25 + $0x8] sm:$0xff]  ;;  %7513 = vmatpush3.bf16.msra.mxu0 %v7510_v42  ;;  %s8446_s26 = scalar_lea.vmem %s9476_s4, %s8440_s19  ;;  %s8454_s29 = scalar_lea.vmem %s9482_s10, %s9523_s22 }
  0x16   : > { %v8358_v14 = vadd.f32 %v606_v12, %v8352_v11  ;;  %v604_v16 = vld [vmem:[%s8364_s14] sm:$0xff]  ;;  %v8374_v17 = vadd.f32 %v607_v15, %v8355_v13  ;;  %v605_v21 = vld [vmem:[%s8364_s14 + $0x8] sm:$0xff]  ;;  %v619_v2 = vld [vmem:[%s8446_s26 + $0x18] sm:$0xff]  ;;  %s9489_s25 = smov 24   ;;  %s8714_s13 = scalar_lea.vmem %s9477_s5, %s8440_s19 }
  0x17   : > { %v610_v19 = vld [vmem:[%s565_s18] sm:$0xff]  ;;  %7057 = vmatprep.mubr.msk.f32.mxu0 %vm653_vm0, %v604_v16  ;;  %v611_v22 = vld [vmem:[%s565_s18 + $0x8] sm:$0xff]  ;;  %v618_v3 = vld [vmem:[%s8446_s26 + $0x10] sm:$0xff]  ;;  %v1215_v4 = vmax.f32 %v619_v2, 1e-06  ;;  %s9487_s18 = smov 8  }
  0x18   : > { %7035 = vmatprep.mubr.msk.f32.mxu1 %vm653_vm0, %v8358_v14  ;;  %v8376_v20 = vadd.f32 %v610_v19, %v604_v16  ;;  %v8384_v23 = vadd.f32 %v611_v22, %v605_v21  ;;  %7058 = vmatmul.mubr.msk.f32.vlgmr.msra.gmra.mrb[0].mxu0 %vm653_vm0, %v605_v21  ;;  %v617_v49 = vld [vmem:[%s8446_s26 + $0x8] sm:$0xff]  ;;  %v616_v50 = vld [vmem:[%s8446_s26] sm:$0xff]  ;;  %v1214_v5 = vmax.f32 %v618_v3, 1e-06  ;;  %s9519_s1 = smov 96   ;;  %s6768_s2 = sshll.u32 %s9523_s22, 5 }
  0x19   : > { %7036 = vmatmul.mubr.msk.f32.vlgmr.msra.gmra.mrb[0].mxu1 %vm653_vm0, %v8374_v17  ;;  %v1004_v51 = vmax.f32 %v617_v49, 1e-06  ;;  %v1003_v52 = vmax.f32 %v616_v50, 1e-06  ;;  %v8457_v57 = vld [vmem:[%s8454_s29] ss:$0 sm:$0xff] }
  0x1a   : > { %7501 = vmatpush3.bf16.msra.mxu1 %v7498_v8  ;;  %7046 = vmatprep.mubr.msk.f32.mxu1 %vm653_vm0, %v8376_v20 }
  0x1b   : > { %7503 = vmatprep.subr.bf16.mxu1 %v7502_v18  ;;  %7964 = vlog2.f32 %v1004_v51 }
  0x1c   : > { %7966 = vlog2.f32 %v1003_v52 }
  0x1d   : > { %7968 = vlog2.f32 %v1215_v4 }
  0x1e   : > { %7505 = vmatpush3.bf16.msra.mxu1 %v7502_v18  ;;  %7970 = vlog2.f32 %v1214_v5 }
  0x21   : > { %7047 = vmatmul.mubr.msk.f32.vlgmr.msra.gmra.mrb[2].mxu1 %vm653_vm0, %v8384_v23 }
  0x25   : > { %v7965_v53 = vpop.eup %7964 }
  0x26   : > { %v7967_v54 = vpop.eup %7966  ;;  %v1008_v55 = vmul.f32 0.6931472, %v7965_v53 }
  0x27   : > { %v1006_v56 = vmul.f32 0.6931472, %v7967_v54  ;;  %v7969_v6 = vpop.eup %7968 }
  0x28   : > { %v7971_v7 = vpop.eup %7970  ;;  %v1219_v8 = vmul.f32 0.6931472, %v7969_v6 }
  0x29   : > { %v1217_v9 = vmul.f32 0.6931472, %v7971_v7 }
  0xec   : > { %v7037_v25 = vpop.f32.mrb[0].mxu1 }
  0xed   : > { %v8391_v26 = vadd.f32 %v7037_v25, %v6580_v24  ;;  %v726_v27 = vpop.f32.mrb[1].mxu1 }
  0xee   : > { %v8393_v28 = vadd.f32 %v6580_v24, %v726_v27 }
  0xef   : > { %1125 = vrot.lane.b32.xlu1 %v8391_v26, %s9495_s24 }
  0xf0   : > { %7064 = vmatprep.mubr.msk.f32.mxu1 %vm915_vm1, %v8393_v28 }
  0xf4   : > { %v7048_v30 = vpop.f32.mrb[2].mxu1 }
  0xf5   : > { %v822_v31 = vadd.f32 %v7048_v30, %v6583_v29  ;;  %v816_v32 = vpop.f32.mrb[3].mxu1 }
  0xf6   : > { %v817_v33 = vadd.f32 %v6583_v29, %v816_v32  ;;  %v7059_v32 = vpop.f32.mrb[0].mxu0 }
  0xf7   : > { %v912_v40 = vadd.f32 %v7059_v32, %v6586_v39  ;;  %v906_v41 = vpop.f32.mrb[1].mxu0 }
  0xf8   : > { %v8408_v35 = vpack.i.bf16 %v822_v31, %v817_v33  ;;  %v7514_v36 = vpack.c.bf16 %v822_v31, %v817_v33  ;;  %v907_v42 = vadd.f32 %v6586_v39, %v906_v41 }
  0xfa   : > { %7845 = vrot.lane.b32.xlu0 %v8408_v35, %s9495_s24  ;;  %7516 = vmatprep.subr.msk.bf16.mxu1 %vm8404_vm2, %v7514_v36 }
  0xfb   : > { %7519 = vmatpush3.bf16.xpose.msk.msra.mxu1 %vm8404_vm2, %v7514_v36 }
  0xfe   : > { %1123 = vrot.lane.b32.xlu0 %v8393_v28, %s9495_s24 }
 0x102   : > { %7065 = vmatmul.mubr.msk.f32.vlgmr.msra.gmra.mrb[4].mxu1 %vm915_vm1, %v8391_v26 }
 0x161   : > { %v1126_v48 = vpop.permute.xlu1 %1125 }
 0x16c   : > { %v7846_v43 = vpop.permute.xlu0 %7845 }
 0x16d   : > { %v7848_v44 = vunpack.i.h.bf16 %v7846_v43  ;;  %v7847_v45 = vunpack.i.l.bf16 %v7846_v43  ;;  %v8474_v43 = vpack.i.bf16 %v912_v40, %v907_v42 }
 0x16f   : > { %v7524_v46 = vpack.c.bf16 %v7848_v44, %v7847_v45  ;;  %v7520_v44 = vpack.c.bf16 %v912_v40, %v907_v42 }
 0x170   : > { %v1124_v47 = vpop.permute.xlu0 %1123 }
 0x171   : > { %7526 = vmatprep.subr.msk.bf16.mxu1 %vm8404_vm2, %v7524_v46  ;;  %7078 = vmatprep.mubr.msk.f32.mxu1 %vm915_vm1, %v1124_v47 }
 0x172   : > { %7529 = vmatpush3.bf16.xpose.msk.msra.mxu1 %vm8404_vm2, %v7524_v46  ;;  %7521 = vmatprep.subr.bf16.mxu0 %v7520_v44 }
 0x173   : > { %7523 = vmatpush3.bf16.msra.mxu0 %v7520_v44 }
 0x179   : > { %7079 = vmatmul.mubr.msk.f32.vlgmr.msra.gmra.mrb[6].mxu1 %vm915_vm1, %v1126_v48 }
 0x1d5   : > { %v7066_v58 = vpop.f32.mrb[4].mxu1 }
 0x1d6   : > { %v1010_v59 = vadd.f32 %v7066_v58, %v1008_v55  ;;  %v994_v60 = vpop.f32.mrb[5].mxu1 }
 0x1d7   : > { %v1009_v61 = vadd.f32 %v1006_v56, %v994_v60 }
 0x1d8   : > { %v1018_v62 = vadd.f32 %v8457_v57, %v1010_v59 }
 0x1d9   : > { %v1017_v63 = vadd.f32 %v8457_v57, %v1009_v61 }
 0x1da   : > { %v1023_v0 = vsel %vm1019_vm3, %v1018_v62, -inf }
 0x1db   : > { %1024 = vmax.xlane.f32.xlu0 %v1023_v0  ;;  %v1020_v1 = vsel %vm1019_vm3, %v1017_v63, -inf }
 0x1dc   : > { %1021 = vmax.xlane.f32.xlu1 %v1020_v1 }
 0x24c   : > { %v7080_v10 = vpop.f32.mrb[6].mxu1 }
 0x24d   : > { %v1221_v12 = vadd.f32 %v7080_v10, %v1219_v8  ;;  %v1205_v15 = vpop.f32.mrb[7].mxu1 }
 0x24e   : > { %v1220_v16 = vadd.f32 %v1217_v9, %v1205_v15 }
 0x24f   : > { %v1223_v18 = vadd.f32 %v8457_v57, %v1221_v12 }
 0x250   : > { %v1222_v19 = vadd.f32 %v8457_v57, %v1220_v16 }
 0x251   : > { %v1227_v21 = vsel %vm1019_vm3, %v1223_v18, -inf }
 0x252   : > { %1228 = vmax.xlane.f32.xlu1 %v1227_v21  ;;  %v1224_v22 = vsel %vm1019_vm3, %v1222_v19, -inf  ;;  %v621_v21 = vld [vmem:[%s8446_s26 + $0x28] sm:$0xff] }
 0x253   : > { %1225 = vmax.xlane.f32.xlu0 %v1224_v22  ;;  %v620_v22 = vld [vmem:[%s8446_s26 + $0x20] sm:$0xff] }
 0x268   : > { %v1025_v24 = vpop.xlane.xlu0 %1024 }
 0x269   : > { %v1027_v25 = vsub.f32 %v1018_v62, %v1025_v24  ;;  %v1022_v27 = vpop.xlane.xlu1 %1021  ;;  %v1427_v24 = vmax.f32 %v621_v21, 1e-06 }
 0x26a   : > { %v1026_v29 = vsub.f32 %v1017_v63, %v1022_v27 }
 0x26b   : > { %v1030_v30 = vmul.f32 1.442695, %v1027_v25  ;;  %v1426_v25 = vmax.f32 %v620_v22, 1e-06 }
 0x26c   : > { %v1028_v31 = vmul.f32 1.442695, %v1026_v29 }
 0x26d   : > { %7972 = vpow2.f32 %v1030_v30 }
 0x26e   : > { %7974 = vpow2.f32 %v1028_v31 }
 0x277   : > { %v7973_v33 = vpop.eup %7972 }
 0x278   : > { %v7975_v36 = vpop.eup %7974  ;;  %v1035_v37 = vsel %vm1019_vm3, %v7973_v33, 0.0 }
 0x279   : > { %1036 = vadd.xlane.f32.xlu1 %v1035_v37  ;;  %v1032_v38 = vsel %vm1019_vm3, %v7975_v36, 0.0 }
 0x27a   : > { %1033 = vadd.xlane.f32.xlu0 %v1032_v38 }
 0x2df   : > { %v1229_v45 = vpop.xlane.xlu1 %1228 }
 0x2e0   : > { %v1231_v46 = vsub.f32 %v1223_v18, %v1229_v45  ;;  %v1226_v47 = vpop.xlane.xlu0 %1225 }
 0x2e1   : > { %v1230_v48 = vsub.f32 %v1222_v19, %v1226_v47 }
 0x2e2   : > { %v1234_v49 = vmul.f32 1.442695, %v1231_v46 }
 0x2e3   : > { %v1232_v50 = vmul.f32 1.442695, %v1230_v48 }
 0x2e4   : > { %7976 = vpow2.f32 %v1234_v49 }
 0x2e5   : > { %7978 = vpow2.f32 %v1232_v50 }
 0x2ee   : > { %v7977_v51 = vpop.eup %7976 }
 0x2ef   : > { %v7979_v52 = vpop.eup %7978  ;;  %v1239_v53 = vsel %vm1019_vm3, %v7977_v51, 0.0 }
 0x2f0   : > { %1240 = vadd.xlane.f32.xlu1 %v1239_v53  ;;  %v1236_v54 = vsel %vm1019_vm3, %v7979_v52, 0.0 }
 0x2f1   : > { %1237 = vadd.xlane.f32.xlu0 %v1236_v54 }
 0x301   : > { %7855 = vrot.lane.b32.xlu1 %v8408_v35, %s9493_s15 }
 0x305   : > { %1335 = vrot.lane.b32.xlu1 %v8393_v28, %s9493_s15 }
 0x306   : > { %v1037_v55 = vpop.xlane.xlu1 %1036 }
 0x307   : > { %7980 = vrcp.f32 %v1037_v55  ;;  %7850 = vrot.lane.b32.xlu0 %v8474_v43, %s9495_s24  ;;  %v1034_v56 = vpop.xlane.xlu0 %1033  ;;  %s9512_s24 = smov 120  }
 0x308   : > { %7982 = vrcp.f32 %v1034_v56 }
 0x30b   : > { %1337 = vrot.lane.b32.xlu0 %v8391_v26, %s9493_s15 }
 0x311   : > { %v7981_v58 = vpop.eup %7980 }
 0x312   : > { %v7983_v59 = vpop.eup %7982  ;;  %v1041_v61 = vmul.f32 %v7981_v58, %v7973_v33 }
 0x313   : > { %v1039_v60 = vmul.f32 %v7983_v59, %v7975_v36 }
 0x315   : > { %7071 = vmatprep.mubr.msk.f32.mxu0 %vm1019_vm3, %v1039_v60 }
 0x316   : > { %7072 = vmatmul.mubr.msk.f32.vlgmr.msra.gmra.mrb[2].mxu0 %vm1019_vm3, %v1041_v61 }
 0x37d   : > { %v1241_v62 = vpop.xlane.xlu1 %1240 }
 0x37e   : > { %7984 = vrcp.f32 %v1241_v62  ;;  %v1238_v63 = vpop.xlane.xlu0 %1237 }
 0x37f   : > { %7986 = vrcp.f32 %v1238_v63 }
 0x380   : > { %7988 = vlog2.f32 %v1427_v24 }
 0x381   : > { %v7856_v0 = vpop.permute.xlu1 %7855  ;;  %7990 = vlog2.f32 %v1426_v25 }
 0x382   : > { %v7851_v1 = vpop.permute.xlu0 %7850  ;;  %v7858_v2 = vunpack.i.h.bf16 %v7856_v0  ;;  %v7857_v3 = vunpack.i.l.bf16 %v7856_v0 }
 0x383   : > { %v7853_v4 = vunpack.i.h.bf16 %v7851_v1  ;;  %v7852_v5 = vunpack.i.l.bf16 %v7851_v1 }
 0x384   : > { %v7534_v7 = vpack.c.bf16 %v7858_v2, %v7857_v3 }
 0x385   : > { %v7530_v6 = vpack.c.bf16 %v7853_v4, %v7852_v5  ;;  %v1336_v15 = vpop.permute.xlu1 %1335  ;;  %v623_v5 = vld [vmem:[%s8446_s26 + $0x38] sm:$0xff] }
 0x386   : > { %v1338_v16 = vpop.permute.xlu0 %1337 }
 0x387   : > { %7531 = vmatprep.subr.bf16.mxu0 %v7530_v6 }
 0x388   : > { %v7985_v8 = vpop.eup %7984  ;;  %7533 = vmatpush3.bf16.msra.mxu0 %v7530_v6  ;;  %v622_v6 = vld [vmem:[%s8446_s26 + $0x30] sm:$0xff]  ;;  %s9498_s26 = smov 96  }
 0x389   : > { %v7987_v9 = vpop.eup %7986  ;;  %7536 = vmatprep.subr.msk.bf16.mxu0 %vm8404_vm2, %v7534_v7  ;;  %v1245_v12 = vmul.f32 %v7985_v8, %v7977_v51  ;;  %v1636_v8 = vmax.f32 %v622_v6, 1e-06 }
 0x38a   : > { %v1243_v10 = vmul.f32 %v7987_v9, %v7979_v52  ;;  %v7989_v30 = vpop.eup %7988 }
 0x38b   : > { %v7991_v31 = vpop.eup %7990  ;;  %v1431_v32 = vmul.f32 0.6931472, %v7989_v30 }
 0x38c   : > { %7085 = vmatprep.mubr.msk.f32.mxu0 %vm1019_vm3, %v1243_v10  ;;  %v1429_v33 = vmul.f32 0.6931472, %v7991_v31 }
 0x38d   : > { %7086 = vmatmul.mubr.msk.f32.vlgmr.msra.gmra.mrb[4].mxu0 %vm1019_vm3, %v1245_v12 }
 0x38e   : > { %7092 = vmatprep.mubr.msk.f32.mxu0 %vm915_vm1, %v1336_v15 }
 0x391   : > { %7539 = vmatpush3.bf16.xpose.msk.msra.mxu0 %vm8404_vm2, %v7534_v7  ;;  %v1637_v7 = vmax.f32 %v623_v5, 1e-06 }
 0x398   : > { %7093 = vmatmul.mubr.msk.f32.vlgmr.msra.gmra.mrb[6].mxu0 %vm915_vm1, %v1338_v16 }
 0x3e9   : > { %v8496_v18 = vpop.f32.mrb[2].mxu0 }
 0x3ea   : > { %v8498_v19 = vpop.f32.mrb[3].mxu0 }
 0x460   : > { %v8502_v27 = vpop.f32.mrb[4].mxu0 }
 0x461   : > { %v8504_v29 = vpop.f32.mrb[5].mxu0 }
 0x46b   : > { %v7094_v36 = vpop.f32.mrb[6].mxu0 }
 0x46c   : > { %v1433_v37 = vadd.f32 %v7094_v36, %v1431_v32  ;;  %v1417_v38 = vpop.f32.mrb[7].mxu0 }
 0x46d   : > { %v1432_v39 = vadd.f32 %v1429_v33, %v1417_v38 }
 0x46e   : > { %v1435_v40 = vadd.f32 %v8457_v57, %v1433_v37 }
 0x46f   : > { %v1434_v41 = vadd.f32 %v8457_v57, %v1432_v39 }
 0x470   : > { %v1439_v42 = vsel %vm1019_vm3, %v1435_v40, -inf }
 0x471   : > { %1440 = vmax.xlane.f32.xlu0 %v1439_v42  ;;  %v1436_v44 = vsel %vm1019_vm3, %v1434_v41, -inf }
 0x472   : > { %1437 = vmax.xlane.f32.xlu1 %v1436_v44 }
 0x4fe   : > { %v1441_v45 = vpop.xlane.xlu0 %1440 }
 0x4ff   : > { %v1443_v46 = vsub.f32 %v1435_v40, %v1441_v45  ;;  %v1438_v47 = vpop.xlane.xlu1 %1437 }
 0x500   : > { %v1442_v48 = vsub.f32 %v1434_v41, %v1438_v47 }
 0x501   : > { %v1446_v49 = vmul.f32 1.442695, %v1443_v46 }
 0x502   : > { %v1444_v50 = vmul.f32 1.442695, %v1442_v48 }
 0x503   : > { %7992 = vpow2.f32 %v1446_v49 }
 0x504   : > { %7994 = vpow2.f32 %v1444_v50 }
 0x50d   : > { %v7993_v51 = vpop.eup %7992 }
 0x50e   : > { %v7995_v52 = vpop.eup %7994  ;;  %v1451_v53 = vsel %vm1019_vm3, %v7993_v51, 0.0 }
 0x50f   : > { %1452 = vadd.xlane.f32.xlu1 %v1451_v53  ;;  %v1448_v54 = vsel %vm1019_vm3, %v7995_v52, 0.0 }
 0x510   : > { %1449 = vadd.xlane.f32.xlu0 %v1448_v54 }
 0x520   : > { %7865 = vrot.lane.b32.xlu1 %v8408_v35, %s9491_s16 }
 0x524   : > { %1545 = vrot.lane.b32.xlu1 %v8393_v28, %s9491_s16 }
 0x526   : > { %7860 = vrot.lane.b32.xlu0 %v8474_v43, %s9493_s15  ;;  %s9501_s15 = smov 80  }
 0x52a   : > { %1547 = vrot.lane.b32.xlu0 %v8391_v26, %s9491_s16 }
 0x59c   : > { %v1453_v55 = vpop.xlane.xlu1 %1452 }
 0x59d   : > { %7996 = vrcp.f32 %v1453_v55  ;;  %v1450_v56 = vpop.xlane.xlu0 %1449  ;;  %v1787_v55 = vld [vmem:[%s9483_s11 + $0x68] sm:$0xff] }
 0x59e   : > { %7998 = vrcp.f32 %v1450_v56  ;;  %v1788_v56 = vld [vmem:[%s9483_s11 + $0x70] sm:$0xff] }
 0x59f   : > { %8000 = vlog2.f32 %v1637_v7 }
 0x5a0   : > { %v7866_v58 = vpop.permute.xlu1 %7865  ;;  %8002 = vlog2.f32 %v1636_v8 }
 0x5a1   : > { %v7861_v59 = vpop.permute.xlu0 %7860  ;;  %v7868_v60 = vunpack.i.h.bf16 %v7866_v58  ;;  %v7867_v61 = vunpack.i.l.bf16 %v7866_v58 }
 0x5a2   : > { %v7863_v62 = vunpack.i.h.bf16 %v7861_v59  ;;  %v7862_v63 = vunpack.i.l.bf16 %v7861_v59  ;;  %v1789_v59 = vld [vmem:[%s9483_s11 + $0x78] sm:$0xff] }
 0x5a3   : > { %v7544_v0 = vpack.c.bf16 %v7868_v60, %v7867_v61  ;;  %v7558_v60 = vpack.c.bf16 %v1789_v59, %v1788_v56 }
 0x5a4   : > { %v7540_v35 = vpack.c.bf16 %v7863_v62, %v7862_v63  ;;  %v1546_v3 = vpop.permute.xlu1 %1545 }
 0x5a5   : > { %v1548_v4 = vpop.permute.xlu0 %1547 }
 0x5a6   : > { %7541 = vmatprep.subr.bf16.mxu1 %v7540_v35 }
 0x5a7   : > { %v7997_v28 = vpop.eup %7996  ;;  %7543 = vmatpush3.bf16.msra.mxu1 %v7540_v35 }
 0x5a8   : > { %v7999_v1 = vpop.eup %7998  ;;  %7546 = vmatprep.subr.msk.bf16.mxu1 %vm8404_vm2, %v7544_v0  ;;  %v1457_v2 = vmul.f32 %v7997_v28, %v7993_v51 }
 0x5a9   : > { %v1455_v26 = vmul.f32 %v7999_v1, %v7995_v52  ;;  %v8001_v12 = vpop.eup %8000 }
 0x5aa   : > { %v8003_v15 = vpop.eup %8002  ;;  %v1641_v16 = vmul.f32 0.6931472, %v8001_v12 }
 0x5ab   : > { %7099 = vmatprep.mubr.msk.f32.mxu1 %vm1019_vm3, %v1455_v26  ;;  %v1639_v21 = vmul.f32 0.6931472, %v8003_v15 }
 0x5ac   : > { %7100 = vmatmul.mubr.msk.f32.vlgmr.msra.gmra.mrb[8].mxu1 %vm1019_vm3, %v1457_v2 }
 0x5ad   : > { %7106 = vmatprep.mubr.msk.f32.mxu1 %vm915_vm1, %v1546_v3 }
 0x5b0   : > { %7549 = vmatpush3.bf16.xpose.msk.msra.mxu1 %vm8404_vm2, %v7544_v0 }
 0x5b7   : > { %7107 = vmatmul.mubr.msk.f32.vlgmr.msra.gmra.mrb[10].mxu1 %vm915_vm1, %v1548_v4 }
 0x67f   : > { %v7101_v9 = vpop.f32.mrb[8].mxu1 }
 0x680   : > { %v1536_v10 = vpop.f32.mrb[9].mxu1 }
 0x68a   : > { %v7108_v22 = vpop.f32.mrb[10].mxu1 }
 0x68b   : > { %v1643_v24 = vadd.f32 %v7108_v22, %v1641_v16  ;;  %v1627_v25 = vpop.f32.mrb[11].mxu1 }
 0x68c   : > { %v1642_v30 = vadd.f32 %v1639_v21, %v1627_v25 }
 0x68d   : > { %v1645_v31 = vadd.f32 %v8457_v57, %v1643_v24 }
 0x68e   : > { %v1644_v32 = vadd.f32 %v8457_v57, %v1642_v30 }
 0x68f   : > { %v1649_v33 = vsel %vm1019_vm3, %v1645_v31, -inf }
 0x690   : > { %1650 = vmax.xlane.f32.xlu0 %v1649_v33  ;;  %v1646_v36 = vsel %vm1019_vm3, %v1644_v32, -inf }
 0x691   : > { %1647 = vmax.xlane.f32.xlu1 %v1646_v36 }
 0x71d   : > { %v1651_v37 = vpop.xlane.xlu0 %1650 }
 0x71e   : > { %v1653_v38 = vsub.f32 %v1645_v31, %v1651_v37  ;;  %v1648_v39 = vpop.xlane.xlu1 %1647 }
 0x71f   : > { %v1652_v40 = vsub.f32 %v1644_v32, %v1648_v39 }
 0x720   : > { %v1656_v41 = vmul.f32 1.442695, %v1653_v38 }
 0x721   : > { %v1654_v42 = vmul.f32 1.442695, %v1652_v40 }
 0x722   : > { %8004 = vpow2.f32 %v1656_v41 }
 0x723   : > { %8006 = vpow2.f32 %v1654_v42 }
 0x72c   : > { %v8005_v44 = vpop.eup %8004 }
 0x72d   : > { %v8007_v45 = vpop.eup %8006  ;;  %v1661_v46 = vsel %vm1019_vm3, %v8005_v44, 0.0 }
 0x72e   : > { %1662 = vadd.xlane.f32.xlu1 %v1661_v46  ;;  %v1658_v57 = vsel %vm1019_vm3, %v8007_v45, 0.0 }
 0x72f   : > { %1659 = vadd.xlane.f32.xlu0 %v1658_v57 }
 0x73f   : > { %1757 = vrot.lane.b32.xlu1 %v8504_v29, %s9487_s18 }
 0x743   : > { %1759 = vrot.lane.b32.xlu1 %v8502_v27, %s9487_s18  ;;  %s593_s18 = scalar_lea.vmem %s9481_s9, %s9523_s22 }
 0x745   : > { %7870 = vrot.lane.b32.xlu0 %v8474_v43, %s9491_s16  ;;  %v1786_v43 = vld [vmem:[%s9483_s11 + $0x60] sm:$0xff]  ;;  %s585_s16 = scalar_lea.vmem %s9479_s7, %s8333_s17 }
 0x746   : > { %v7554_v58 = vpack.c.bf16 %v1787_v55, %v1786_v43  ;;  %v6619_v55 = vld [vmem:[%s9483_s11 + $0x120] ss:$0 sm:$0xff] }
 0x747   : > { %1767 = vrot.lane.b32.xlu1 %v7101_v9, %s9485_s23 }
 0x749   : > { %1765 = vrot.lane.b32.xlu0 %v1536_v10, %s9485_s23  ;;  %s9497_s23 = smov 88  }
 0x7bb   : > { %v1663_v47 = vpop.xlane.xlu1 %1662 }
 0x7bc   : > { %8008 = vrcp.f32 %v1663_v47  ;;  %v1660_v48 = vpop.xlane.xlu0 %1659 }
 0x7bd   : > { %8010 = vrcp.f32 %v1660_v48 }
 0x7bf   : > { %v1758_v63 = vpop.permute.xlu1 %1757 }
 0x7c0   : > { %v7871_v49 = vpop.permute.xlu0 %7870  ;;  %v1779_v1 = vsel %vm915_vm1, %v8498_v19, %v1758_v63  ;;  %v6614_v19 = vld [vmem:[%s9483_s11 + $0x118] ss:$0 sm:$0xff] }
 0x7c1   : > { %v7873_v50 = vunpack.i.h.bf16 %v7871_v49  ;;  %v7872_v51 = vunpack.i.l.bf16 %v7871_v49 }
 0x7c3   : > { %v7550_v52 = vpack.c.bf16 %v7873_v50, %v7872_v51  ;;  %v1760_v35 = vpop.permute.xlu1 %1759 }
 0x7c4   : > { %v1766_v28 = vpop.permute.xlu0 %1765  ;;  %v1780_v2 = vsel %vm915_vm1, %v8496_v18, %v1760_v35 }
 0x7c5   : > { %7551 = vmatprep.subr.bf16.mxu0 %v7550_v52  ;;  %v1781_v3 = vsel %vm1019_vm3, %v1779_v1, %v1766_v28 }
 0x7c6   : > { %v8009_v29 = vpop.eup %8008  ;;  %7553 = vmatpush3.bf16.msra.mxu0 %v7550_v52 }
 0x7c7   : > { %v8011_v27 = vpop.eup %8010  ;;  %v1667_v54 = vmul.f32 %v8009_v29, %v8005_v44  ;;  %7555 = vmatprep.subr.bf16.mxu0 %v7554_v58  ;;  %v1768_v0 = vpop.permute.xlu1 %1767 }
 0x7c8   : > { %v1665_v53 = vmul.f32 %v8011_v27, %v8007_v45  ;;  %v1782_v5 = vsel %vm1019_vm3, %v1780_v2, %v1768_v0 }
 0x7ca   : > { %7113 = vmatprep.mubr.msk.f32.mxu0 %vm1019_vm3, %v1665_v53 }
 0x7cb   : > { %7114 = vmatmul.mubr.msk.f32.vlgmr.msra.gmra.mrb[8].mxu0 %vm1019_vm3, %v1667_v54 }
 0x7cc   : > { %7557 = vmatpush3.bf16.msra.mxu0 %v7554_v58  ;;  %v6620_v58 = vld [vmem:[%s9483_s11 + $0x128] ss:$0 sm:$0xff] }
 0x7cd   : > { %7559 = vmatprep.subr.bf16.mxu0 %v7558_v60 }
 0x7d0   : > { %7561 = vmatpush3.bf16.msra.mxu0 %v7558_v60 }
 0x89e   : > { %v7115_v61 = vpop.f32.mrb[8].mxu0 }
 0x89f   : > { %1775 = vrot.lane.b32.xlu1 %v7115_v61, %s9489_s25  ;;  %v1746_v62 = vpop.f32.mrb[9].mxu0 }
 0x8a0   : > { %1773 = vrot.lane.b32.xlu0 %v1746_v62, %s9489_s25  ;;  %s590_s25 = scalar_lea.vmem %s9480_s8, %s8333_s17  ;;  %s9521_s17 = smov 80  }
 0x911   : > { %v1776_v26 = vpop.permute.xlu1 %1775 }
 0x912   : > { %v1774_v4 = vpop.permute.xlu0 %1773  ;;  %v1785_v7 = vsel %vm1783_vm4, %v1782_v5, %v1776_v26 }
 0x913   : > { %v1784_v6 = vsel %vm1783_vm4, %v1781_v3, %v1774_v4 }
 0x914   : > { %7124 = vmatprep.mubr.msk.f32.mxu0 %vm653_vm0, %v1784_v6 }
 0x915   : > { %7125 = vmatmul.mubr.msk.f32.vlgmr.msra.gmra.mrb[10].mxu0 %vm653_vm0, %v1785_v7 }
 0x9e8   : > { %v7126_v8 = vpop.f32.mrb[10].mxu0 }
 0x9e9   : > { %v1873_v9 = vadd.f32 %v7126_v8, %v6614_v19  ;;  %v1867_v18 = vpop.f32.mrb[11].mxu0 }
 0x9ea   : > { %v1868_v10 = vadd.f32 %v6614_v19, %v1867_v18  ;;  %v1984_v18 = vld [vmem:[%s9483_s11 + $0x88] sm:$0xff] }
 0x9eb   : > { %v6618_v12 = vmul.f32 -1.442695, %v1873_v9 }
 0x9ec   : > { %v6617_v15 = vmul.f32 -1.442695, %v1868_v10 }
 0x9ed   : > { %8012 = vpow2.f32 %v6618_v12 }
 0x9ee   : > { %8014 = vpow2.f32 %v6617_v15  ;;  %v1986_v15 = vld [vmem:[%s9483_s11 + $0x98] sm:$0xff] }
 0x9f7   : > { %v8013_v16 = vpop.eup %8012 }
 0x9f8   : > { %v8015_v21 = vpop.eup %8014  ;;  %v1883_v22 = vadd.f32 1.0, %v8013_v16 }
 0x9f9   : > { %v1882_v24 = vadd.f32 1.0, %v8015_v21  ;;  %v1988_v21 = vld [vmem:[%s9483_s11 + $0xa0] sm:$0xff] }
 0x9fa   : > { %8016 = vrcp.f32 %v1883_v22  ;;  %v1989_v22 = vld [vmem:[%s9483_s11 + $0xa8] sm:$0xff] }
 0x9fb   : > { %8018 = vrcp.f32 %v1882_v24  ;;  %v1990_v24 = vld [vmem:[%s9483_s11 + $0xb0] sm:$0xff] }
 0xa04   : > { %v8017_v25 = vpop.eup %8016 }
 0xa05   : > { %v8019_v30 = vpop.eup %8018  ;;  %1892 = vrot.lane.b32.xlu1 %v8017_v25, %s9498_s26  ;;  %v7570_v25 = vpack.c.bf16 %v1989_v22, %v1988_v21  ;;  %v2214_v21 = vld [vmem:[%s9483_s11 + $0xf0] sm:$0xff] }
 0xa06   : > { %1890 = vrot.lane.b32.xlu0 %v8019_v30, %s9498_s26  ;;  %v1991_v30 = vld [vmem:[%s9483_s11 + $0xb8] sm:$0xff] }
 0xa07   : > { %7571 = vmatprep.subr.bf16.mxu0 %v7570_v25 }
 0xa08   : > { %7573 = vmatpush3.bf16.msra.mxu0 %v7570_v25 }
 0xa77   : > { %v1893_v31 = vpop.permute.xlu1 %1892 }
 0xa78   : > { %v1897_v32 = vmul.f32 %v1893_v31, %v1873_v9  ;;  %v1891_v33 = vpop.permute.xlu0 %1890  ;;  %v7574_v31 = vpack.c.bf16 %v1991_v30, %v1990_v24  ;;  %v2215_v24 = vld [vmem:[%s9483_s11 + $0xf8] sm:$0xff] }
 0xa79   : > { %v1896_v36 = vmul.f32 %v1891_v33, %v1868_v10  ;;  %v1985_v10 = vld [vmem:[%s9483_s11 + $0x90] sm:$0xff]  ;;  %v1993_v33 = vld [vmem:[%s9483_s11 + $0xc8] sm:$0xff]  ;;  %v7590_v25 = vpack.c.bf16 %v2215_v24, %v2214_v21 }
 0xa7a   : > { %v1899_v37 = vadd.f32 %v1897_v32, %v8374_v17  ;;  %v7566_v16 = vpack.c.bf16 %v1986_v15, %v1985_v10  ;;  %v1992_v32 = vld [vmem:[%s9483_s11 + $0xc0] sm:$0xff]  ;;  %7575 = vmatprep.subr.bf16.mxu0 %v7574_v31 }
 0xa7b   : > { %v1898_v38 = vadd.f32 %v1896_v36, %v8358_v14  ;;  %v7578_v36 = vpack.c.bf16 %v1993_v33, %v1992_v32  ;;  %7577 = vmatpush3.bf16.msra.mxu0 %v7574_v31  ;;  %v2212_v15 = vld [vmem:[%s9483_s11 + $0xe0] sm:$0xff] }
 0xa7c   : > { %v1905_v39 = vsel %vm653_vm0, %v1899_v37, 0.0 }
 0xa7d   : > { %1906 = vadd.xlane.f32.xlu1 %v1905_v39  ;;  %v1902_v40 = vsel %vm653_vm0, %v1898_v38, 0.0  ;;  %7579 = vmatprep.subr.bf16.mxu0 %v7578_v36 }
 0xa7e   : > { %1903 = vadd.xlane.f32.xlu0 %v1902_v40 }
 0xa7f   : > { %7581 = vmatpush3.bf16.msra.mxu0 %v7578_v36 }
 0xb0a   : > { %v1907_v41 = vpop.xlane.xlu1 %1906 }
 0xb0b   : > { %v1910_v42 = vmul.f32 0.03125, %v1907_v41  ;;  %v1904_v44 = vpop.xlane.xlu0 %1903 }
 0xb0c   : > { %v1909_v45 = vmul.f32 0.03125, %v1904_v44 }
 0xb0d   : > { %v1912_v46 = vsub.f32 %v1899_v37, %v1910_v42 }
 0xb0e   : > { %v1911_v57 = vsub.f32 %v1898_v38, %v1909_v45  ;;  %v6621_v45 = vld [vmem:[%s9483_s11 + $0x130] ss:$0 sm:$0xff] }
 0xb0f   : > { %v1914_v49 = vmul.f32 %v1912_v46, %v1912_v46 }
 0xb10   : > { %v1913_v47 = vmul.f32 %v1911_v57, %v1911_v57 }
 0xb11   : > { %v1918_v50 = vsel %vm653_vm0, %v1914_v49, 0.0 }
 0xb12   : > { %v1915_v48 = vsel %vm653_vm0, %v1913_v47, 0.0 }
 0xb13   : > { %1916 = vadd.xlane.f32.xlu0 %v1915_v48 }
 0xb17   : > { %1919 = vadd.xlane.f32.xlu0 %v1918_v50 }
 0xba0   : > { %v1917_v51 = vpop.xlane.xlu0 %1916 }
 0xba1   : > { %v1921_v52 = vmul.f32 0.03125, %v1917_v51 }
 0xba3   : > { %v1923_v29 = vadd.f32 1e-05, %v1921_v52 }
 0xba4   : > { %v1920_v27 = vpop.xlane.xlu0 %1919 }
 0xba5   : > { %8020 = vrsqrt.f32 %v1923_v29  ;;  %v1922_v53 = vmul.f32 0.03125, %v1920_v27  ;;  %v640_v29 = vld [vmem:[%s585_s16] sm:$0xff]  ;;  %v641_v27 = vld [vmem:[%s585_s16 + $0x8] sm:$0xff]  ;;  %s9518_s16 = smov 24  }
 0xba7   : > { %v1924_v54 = vadd.f32 1e-05, %v1922_v53  ;;  %v1994_v53 = vld [vmem:[%s9483_s11 + $0xd0] sm:$0xff] }
 0xba9   : > { %8022 = vrsqrt.f32 %v1924_v54  ;;  %v1995_v54 = vld [vmem:[%s9483_s11 + $0xd8] sm:$0xff] }
 0xbaf   : > { %v8021_v43 = vpop.eup %8020 }
 0xbb0   : > { %v1927_v56 = vmul.f32 %v8021_v43, %v1911_v57  ;;  %v6622_v57 = vld [vmem:[%s9483_s11 + $0x138] ss:$0 sm:$0xff]  ;;  %v8641_v43 = vpack.c.bf16 %v641_v27, %v640_v29 }
 0xbb2   : > { %v1933_v59 = vmul.f32 %v6619_v55, %v1927_v56  ;;  %v6623_v56 = vld [vmem:[%s9483_s11 + $0x140] ss:$0 sm:$0xff] }
 0xbb3   : > { %v8023_v60 = vpop.eup %8022 }
 0xbb4   : > { %v1939_v61 = vadd.f32 %v6620_v58, %v1933_v59  ;;  %v1928_v62 = vmul.f32 %v8023_v60, %v1912_v46 }
 0xbb6   : > { %v1941_v63 = vadd.f32 %v1939_v61, %v8352_v11  ;;  %v1934_v35 = vmul.f32 %v6619_v55, %v1928_v62  ;;  %v7582_v55 = vpack.c.bf16 %v1995_v54, %v1994_v53 }
 0xbb8   : > { %v1945_v0 = vsel %vm653_vm0, %v1941_v63, 0.0  ;;  %v1940_v28 = vadd.f32 %v6620_v58, %v1934_v35  ;;  %7583 = vmatprep.subr.bf16.mxu0 %v7582_v55  ;;  %v6626_v35 = vld [vmem:[%s9483_s11 + $0x148] ss:$0 sm:$0xff] }
 0xbb9   : > { %1946 = vadd.xlane.f32.xlu1 %v1945_v0  ;;  %7585 = vmatpush3.bf16.msra.mxu0 %v7582_v55 }
 0xbba   : > { %v1942_v1 = vadd.f32 %v1940_v28, %v8355_v13  ;;  %v1983_v13 = vld [vmem:[%s9483_s11 + $0x80] sm:$0xff]  ;;  %7601 = vmatprep.subr.bf16.mxu0 %v8641_v43 }
 0xbbb   : > { %v7562_v12 = vpack.c.bf16 %v1984_v18, %v1983_v13 }
 0xbbc   : > { %v1948_v26 = vsel %vm653_vm0, %v1942_v1, 0.0 }
 0xbbd   : > { %1949 = vadd.xlane.f32.xlu0 %v1948_v26  ;;  %7563 = vmatprep.subr.bf16.mxu1 %v7562_v12 }
 0xbbe   : > { %7565 = vmatpush3.bf16.msra.mxu1 %v7562_v12 }
 0xbbf   : > { %7567 = vmatprep.subr.bf16.mxu1 %v7566_v16 }
 0xbc2   : > { %7569 = vmatpush3.bf16.msra.mxu1 %v7566_v16  ;;  %v2213_v16 = vld [vmem:[%s9483_s11 + $0xe8] sm:$0xff] }
 0xbc3   : > { %v7586_v22 = vpack.c.bf16 %v2213_v16, %v2212_v15 }
 0xbc5   : > { %7587 = vmatprep.subr.bf16.mxu1 %v7586_v22 }
 0xc46   : > { %v1947_v2 = vpop.xlane.xlu1 %1946 }
 0xc47   : > { %v1951_v3 = vmul.f32 0.03125, %v1947_v2 }
 0xc49   : > { %v1953_v4 = vsub.f32 %v1941_v63, %v1951_v3 }
 0xc4a   : > { %v1950_v5 = vpop.xlane.xlu0 %1949 }
 0xc4b   : > { %v1952_v6 = vmul.f32 0.03125, %v1950_v5  ;;  %v1955_v7 = vmul.f32 %v1953_v4, %v1953_v4 }
 0xc4d   : > { %v1954_v19 = vsub.f32 %v1942_v1, %v1952_v6  ;;  %v1957_v8 = vsel %vm653_vm0, %v1955_v7, 0.0 }
 0xc4e   : > { %1958 = vadd.xlane.f32.xlu1 %v1957_v8 }
 0xc4f   : > { %v1956_v11 = vmul.f32 %v1954_v19, %v1954_v19 }
 0xc51   : > { %v1960_v9 = vsel %vm653_vm0, %v1956_v11, 0.0 }
 0xc52   : > { %1961 = vadd.xlane.f32.xlu0 %v1960_v9 }
 0xcdb   : > { %v1959_v37 = vpop.xlane.xlu1 %1958 }
 0xcdc   : > { %v1963_v38 = vmul.f32 0.03125, %v1959_v37 }
 0xcde   : > { %v1965_v39 = vadd.f32 1e-05, %v1963_v38 }
 0xcdf   : > { %v1962_v40 = vpop.xlane.xlu0 %1961 }
 0xce0   : > { %8024 = vrsqrt.f32 %v1965_v39  ;;  %v1964_v41 = vmul.f32 0.03125, %v1962_v40  ;;  %v6629_v39 = vld [vmem:[%s9483_s11 + $0x150] ss:$0 sm:$0xff] }
 0xce2   : > { %v1966_v42 = vadd.f32 1e-05, %v1964_v41 }
 0xce4   : > { %8026 = vrsqrt.f32 %v1966_v42 }
 0xcea   : > { %v8025_v44 = vpop.eup %8024 }
 0xceb   : > { %v1969_v46 = vmul.f32 %v8025_v44, %v1953_v4  ;;  %v6630_v44 = vld [vmem:[%s9483_s11 + $0x158] ss:$0 sm:$0xff] }
 0xced   : > { %v1975_v47 = vmul.f32 %v6621_v45, %v1969_v46 }
 0xcee   : > { %v8027_v48 = vpop.eup %8026 }
 0xcef   : > { %v1970_v49 = vmul.f32 %v8027_v48, %v1954_v19  ;;  %v1981_v50 = vadd.f32 %v6622_v57, %v1975_v47  ;;  %v6631_v48 = vld [vmem:[%s9483_s11 + $0x160] ss:$0 sm:$0xff] }
 0xcf1   : > { %v1976_v51 = vmul.f32 %v6621_v45, %v1970_v49  ;;  %7135 = vmatprep.mubr.msk.f32.mxu1 %vm653_vm0, %v1981_v50 }
 0xcf3   : > { %v1982_v52 = vadd.f32 %v6622_v57, %v1976_v51 }
 0xcf5   : > { %7136 = vmatmul.mubr.msk.f32.vlgmr.msra.gmra.mrb[12].mxu1 %vm653_vm0, %v1982_v52 }
 0xcf6   : > { %7589 = vmatpush3.bf16.msra.mxu1 %v7586_v22 }
 0xcf7   : > { %7591 = vmatprep.subr.bf16.mxu1 %v7590_v25 }
 0xcfa   : > { %7593 = vmatpush3.bf16.msra.mxu1 %v7590_v25 }
 0xdc8   : > { %v7137_v58 = vpop.f32.mrb[12].mxu1 }
 0xdc9   : > { %v2081_v59 = vadd.f32 %v7137_v58, %v6623_v56  ;;  %v2075_v60 = vpop.f32.mrb[13].mxu1 }
 0xdca   : > { %v2076_v61 = vadd.f32 %v6623_v56, %v2075_v60 }
 0xdcb   : > { %v2085_v63 = vmax.f32 %v2081_v59, 0.0 }
 0xdcc   : > { %v2084_v62 = vmax.f32 %v2076_v61, 0.0  ;;  %v625_v61 = vld [vmem:[%s8714_s13 + $0x8] sm:$0xff] }
 0xdce   : > { %7154 = vmatprep.mubr.msk.f32.mxu0 %vm2090_vm5, %v2084_v62  ;;  %v624_v62 = vld [vmem:[%s8714_s13] sm:$0xff] }
 0xdcf   : > { %7155 = vmatmul.mubr.msk.f32.vlgmr.msra.gmra.mrb[12].mxu0 %vm2090_vm5, %v2085_v63  ;;  %v2392_v63 = vmax.f32 %v625_v61, 1e-06 }
 0xdd0   : > { %7603 = vmatpush3.bf16.msra.mxu0 %v8641_v43 }
 0xea2   : > { %v7156_v0 = vpop.f32.mrb[12].mxu0 }
 0xea3   : > { %v2169_v28 = vadd.f32 %v7156_v0, %v6626_v35  ;;  %v2163_v1 = vpop.f32.mrb[13].mxu0 }
 0xea4   : > { %v2164_v26 = vadd.f32 %v6626_v35, %v2163_v1  ;;  %v2391_v35 = vmax.f32 %v624_v62, 1e-06 }
 0xea5   : > { %v2173_v2 = vadd.f32 %v2169_v28, %v1982_v52 }
 0xea6   : > { %v2172_v3 = vadd.f32 %v2164_v26, %v1981_v50 }
 0xea7   : > { %v2177_v4 = vsel %vm653_vm0, %v2173_v2, 0.0 }
 0xea8   : > { %2178 = vadd.xlane.f32.xlu0 %v2177_v4  ;;  %v2174_v5 = vsel %vm653_vm0, %v2172_v3, 0.0 }
 0xea9   : > { %2175 = vadd.xlane.f32.xlu1 %v2174_v5 }
 0xf35   : > { %v2179_v6 = vpop.xlane.xlu0 %2178 }
 0xf36   : > { %v2181_v7 = vmul.f32 0.03125, %v2179_v6  ;;  %v2176_v19 = vpop.xlane.xlu1 %2175 }
 0xf37   : > { %v2180_v8 = vmul.f32 0.03125, %v2176_v19 }
 0xf38   : > { %v2183_v11 = vsub.f32 %v2173_v2, %v2181_v7 }
 0xf39   : > { %v2182_v9 = vsub.f32 %v2172_v3, %v2180_v8  ;;  %v8726_v3 = vld [vmem:[%s593_s18] ss:$0 sm:$0xff]  ;;  %s9499_s18 = smov 72  }
 0xf3a   : > { %v2185_v13 = vmul.f32 %v2183_v11, %v2183_v11 }
 0xf3b   : > { %v2184_v18 = vmul.f32 %v2182_v9, %v2182_v9 }
 0xf3c   : > { %v2189_v10 = vsel %vm653_vm0, %v2185_v13, 0.0 }
 0xf3d   : > { %2190 = vadd.xlane.f32.xlu0 %v2189_v10  ;;  %v2186_v12 = vsel %vm653_vm0, %v2184_v18, 0.0 }
 0xf3e   : > { %2187 = vadd.xlane.f32.xlu1 %v2186_v12 }
 0xfca   : > { %v2191_v30 = vpop.xlane.xlu0 %2190 }
 0xfcb   : > { %v2193_v31 = vmul.f32 0.03125, %v2191_v30  ;;  %v2188_v32 = vpop.xlane.xlu1 %2187 }
 0xfcc   : > { %v2192_v33 = vmul.f32 0.03125, %v2188_v32 }
 0xfcd   : > { %v2195_v36 = vadd.f32 1e-05, %v2193_v31 }
 0xfce   : > { %v2194_v37 = vadd.f32 1e-05, %v2192_v33 }
 0xfcf   : > { %8028 = vrsqrt.f32 %v2195_v36 }
 0xfd0   : > { %8030 = vrsqrt.f32 %v2194_v37 }
 0xfd1   : > { %8032 = vlog2.f32 %v2392_v63 }
 0xfd2   : > { %8034 = vlog2.f32 %v2391_v35 }
 0xfd9   : > { %v8029_v38 = vpop.eup %8028 }
 0xfda   : > { %v8031_v40 = vpop.eup %8030  ;;  %v2199_v41 = vmul.f32 %v8029_v38, %v2183_v11 }
 0xfdb   : > { %v2198_v42 = vmul.f32 %v8031_v40, %v2182_v9  ;;  %v8033_v0 = vpop.eup %8032 }
 0xfdc   : > { %v2205_v45 = vmul.f32 %v6629_v39, %v2199_v41  ;;  %v8035_v28 = vpop.eup %8034  ;;  %v8722_v1 = vmul.f32 0.6931472, %v8033_v0 }
 0xfdd   : > { %v2204_v46 = vmul.f32 %v6629_v39, %v2198_v42  ;;  %v8724_v26 = vmul.f32 0.6931472, %v8035_v28 }
 0xfde   : > { %v2211_v47 = vadd.f32 %v6630_v44, %v2205_v45 }
 0xfdf   : > { %v2210_v57 = vadd.f32 %v6630_v44, %v2204_v46  ;;  %v627_v46 = vld [vmem:[%s8714_s13 + $0x18] sm:$0xff] }
 0xfe1   : > { %7165 = vmatprep.mubr.msk.f32.mxu1 %vm653_vm0, %v2210_v57  ;;  %v626_v57 = vld [vmem:[%s8714_s13 + $0x10] sm:$0xff] }
 0xfe2   : > { %7166 = vmatmul.mubr.msk.f32.vlgmr.msra.gmra.mrb[14].mxu1 %vm653_vm0, %v2211_v47  ;;  %v2705_v47 = vmax.f32 %v627_v46, 1e-06 }
0x10b5   : > { %v7167_v49 = vpop.f32.mrb[14].mxu1 }
0x10b6   : > { %v8680_v50 = vadd.f32 %v7167_v49, %v6631_v48  ;;  %v2293_v51 = vpop.f32.mrb[15].mxu1 }
0x10b7   : > { %v8682_v52 = vadd.f32 %v6631_v48, %v2293_v51  ;;  %v2704_v48 = vmax.f32 %v626_v57, 1e-06 }
0x10b9   : > { %7172 = vmatprep.mubr.msk.f32.mxu1 %vm915_vm1, %v8682_v52  ;;  %v8688_v29 = vpack.i.bf16 %v8680_v50, %v8682_v52 }
0x10bb   : > { %7875 = vrot.lane.b32.xlu1 %v8688_v29, %s9498_s26 }
0x10bf   : > { %7880 = vrot.lane.b32.xlu1 %v8688_v29, %s9497_s23 }
0x10c3   : > { %2615 = vrot.lane.b32.xlu1 %v8680_v50, %s9512_s24 }
0x10c7   : > { %7885 = vrot.lane.b32.xlu1 %v8688_v29, %s9501_s15 }
0x10cb   : > { %2914 = vrot.lane.b32.xlu1 %v8682_v52, %s9513_s27 }
0x10cf   : > { %2916 = vrot.lane.b32.xlu1 %v8680_v50, %s9513_s27 }
0x112d   : > { %v7876_v27 = vpop.permute.xlu1 %7875 }
0x112e   : > { %v7878_v53 = vunpack.i.h.bf16 %v7876_v27  ;;  %v7877_v54 = vunpack.i.l.bf16 %v7876_v27 }
0x1130   : > { %v7594_v55 = vpack.c.bf16 %v7878_v53, %v7877_v54 }
0x1131   : > { %v7881_v56 = vpop.permute.xlu1 %7880 }
0x1132   : > { %v7883_v58 = vunpack.i.h.bf16 %v7881_v56  ;;  %v7882_v59 = vunpack.i.l.bf16 %v7881_v56  ;;  %7596 = vmatprep.subr.msk.bf16.mxu1 %vm8404_vm2, %v7594_v55 }
0x1133   : > { %7599 = vmatpush3.bf16.xpose.msk.msra.mxu1 %vm8404_vm2, %v7594_v55 }
0x1134   : > { %v7608_v60 = vpack.c.bf16 %v7883_v58, %v7882_v59 }
0x1135   : > { %v2616_v31 = vpop.permute.xlu1 %2615 }
0x1136   : > { %7610 = vmatprep.subr.msk.bf16.mxu0 %vm8404_vm2, %v7608_v60 }
0x1139   : > { %v7886_v33 = vpop.permute.xlu1 %7885 }
0x113a   : > { %7173 = vmatmul.mubr.msk.f32.vlgmr.msra.gmra.mrb[16].mxu1 %vm915_vm1, %v8680_v50  ;;  %v7888_v37 = vunpack.i.h.bf16 %v7886_v33  ;;  %v7887_v38 = vunpack.i.l.bf16 %v7886_v33 }
0x113c   : > { %v7622_v41 = vpack.c.bf16 %v7888_v37, %v7887_v38 }
0x113d   : > { %v2915_v44 = vpop.permute.xlu1 %2914 }
0x1141   : > { %v2917_v45 = vpop.permute.xlu1 %2916 }
0x120d   : > { %v7174_v2 = vpop.f32.mrb[16].mxu1 }
0x120e   : > { %v2382_v4 = vpop.f32.mrb[17].mxu1  ;;  %v2398_v5 = vadd.f32 %v7174_v2, %v8722_v1 }
0x120f   : > { %v2397_v6 = vadd.f32 %v8724_v26, %v2382_v4 }
0x1210   : > { %v2406_v8 = vadd.f32 %v8726_v3, %v2398_v5 }
0x1211   : > { %v2405_v7 = vadd.f32 %v8726_v3, %v2397_v6 }
0x1212   : > { %v2410_v11 = vsel %vm1019_vm3, %v2406_v8, -inf }
0x1213   : > { %v2407_v19 = vsel %vm1019_vm3, %v2405_v7, -inf }
0x1214   : > { %2408 = vmax.xlane.f32.xlu0 %v2407_v19 }
0x1218   : > { %2411 = vmax.xlane.f32.xlu0 %v2410_v11 }
0x12a1   : > { %v2409_v9 = vpop.xlane.xlu0 %2408 }
0x12a2   : > { %v2413_v13 = vsub.f32 %v2405_v7, %v2409_v9 }
0x12a4   : > { %v2415_v18 = vmul.f32 1.442695, %v2413_v13 }
0x12a5   : > { %v2412_v10 = vpop.xlane.xlu0 %2411 }
0x12a6   : > { %8036 = vpow2.f32 %v2415_v18  ;;  %v2414_v12 = vsub.f32 %v2406_v8, %v2412_v10  ;;  %v628_v10 = vld [vmem:[%s8714_s13 + $0x20] sm:$0xff] }
0x12a8   : > { %v2417_v15 = vmul.f32 1.442695, %v2414_v12  ;;  %v8776_v12 = vld [vmem:[%s590_s25] sm:$0xff] }
0x12a9   : > { %7186 = vmatprep.mubr.msk.f32.mxu1 %vm1019_vm3, %v8776_v12 }
0x12aa   : > { %8038 = vpow2.f32 %v2417_v15  ;;  %v8778_v15 = vld [vmem:[%s590_s25 + $0x8] sm:$0xff] }
0x12b0   : > { %v8037_v16 = vpop.eup %8036 }
0x12b1   : > { %v2419_v21 = vsel %vm1019_vm3, %v8037_v16, 0.0 }
0x12b2   : > { %2420 = vadd.xlane.f32.xlu0 %v2419_v21  ;;  %v3005_v21 = vmax.f32 %v628_v10, 1e-06 }
0x12b4   : > { %v8039_v22 = vpop.eup %8038 }
0x12b5   : > { %v2422_v24 = vsel %vm1019_vm3, %v8039_v22, 0.0 }
0x12b6   : > { %2423 = vadd.xlane.f32.xlu0 %v2422_v24 }
0x12cc   : > { %2613 = vrot.lane.b32.xlu0 %v8682_v52, %s9512_s24 }
0x133f   : > { %v2421_v25 = vpop.xlane.xlu0 %2420 }
0x1340   : > { %8040 = vrcp.f32 %v2421_v25 }
0x1343   : > { %v2424_v30 = vpop.xlane.xlu0 %2423 }
0x1344   : > { %8042 = vrcp.f32 %v2424_v30 }
0x1345   : > { %8044 = vlog2.f32 %v2705_v47 }
0x1346   : > { %8046 = vlog2.f32 %v2704_v48 }
0x1347   : > { %v2614_v42 = vpop.permute.xlu0 %2613 }
0x134a   : > { %v8041_v32 = vpop.eup %8040 }
0x134b   : > { %v2426_v36 = vmul.f32 %v8041_v32, %v8037_v16  ;;  %v629_v16 = vld [vmem:[%s8714_s13 + $0x28] sm:$0xff] }
0x134d   : > { %7179 = vmatprep.mubr.msk.f32.mxu0 %vm1019_vm3, %v2426_v36 }
0x134e   : > { %v8043_v39 = vpop.eup %8042 }
0x134f   : > { %v2428_v40 = vmul.f32 %v8043_v39, %v8039_v22  ;;  %v8045_v27 = vpop.eup %8044 }
0x1350   : > { %v8047_v54 = vpop.eup %8046  ;;  %v8752_v55 = vmul.f32 0.6931472, %v8045_v27  ;;  %v3519_v27 = vld [vmem:[%s9483_s11 + $0x180] sm:$0xff] }
0x1351   : > { %7180 = vmatmul.mubr.msk.f32.vlgmr.msra.gmra.mrb[14].mxu0 %vm1019_vm3, %v2428_v40  ;;  %v8754_v56 = vmul.f32 0.6931472, %v8047_v54 }
0x1352   : > { %7613 = vmatpush3.bf16.xpose.msk.msra.mxu0 %vm8404_vm2, %v7608_v60  ;;  %7193 = vmatprep.mubr.msk.f32.mxu0 %vm915_vm1, %v2614_v42  ;;  %v3517_v42 = vld [vmem:[%s9483_s11 + $0x170] sm:$0xff] }
0x1353   : > { %7624 = vmatprep.subr.msk.bf16.mxu0 %vm8404_vm2, %v7622_v41 }
0x1359   : > { %7194 = vmatmul.mubr.msk.f32.vlgmr.msra.gmra.mrb[16].mxu0 %vm915_vm1, %v2616_v31 }
0x135a   : > { %7627 = vmatpush3.bf16.xpose.msk.msra.mxu0 %vm8404_vm2, %v7622_v41  ;;  %7214 = vmatprep.mubr.msk.f32.mxu0 %vm915_vm1, %v2915_v44  ;;  %v3516_v41 = vld [vmem:[%s9483_s11 + $0x168] sm:$0xff] }
0x135b   : > { %v7650_v57 = vpack.c.bf16 %v3517_v42, %v3516_v41 }
0x1361   : > { %7215 = vmatmul.mubr.msk.f32.vlgmr.msra.gmra.mrb[18].mxu0 %vm915_vm1, %v2917_v45 }
0x1424   : > { %v7181_v49 = vpop.f32.mrb[14].mxu0 }
0x1425   : > { %v2501_v51 = vpop.f32.mrb[15].mxu0 }
0x1426   : > { %v7604_v53 = vpack.c.bf16 %v7181_v49, %v2501_v51  ;;  %v3518_v51 = vld [vmem:[%s9483_s11 + $0x178] sm:$0xff] }
0x1427   : > { %v7654_v54 = vpack.c.bf16 %v3519_v27, %v3518_v51 }
0x1428   : > { %7605 = vmatprep.subr.bf16.mxu1 %v7604_v53 }
0x1429   : > { %7607 = vmatpush3.bf16.msra.mxu1 %v7604_v53 }
0x142a   : > { %7615 = vmatprep.subr.bf16.mxu1 %v8641_v43 }
0x142c   : > { %v7195_v58 = vpop.f32.mrb[16].mxu0  ;;  %7187 = vmatmul.mubr.msk.f32.vlgmr.msra.gmra.mrb[18].mxu1 %vm1019_vm3, %v8778_v15 }
0x142d   : > { %v2711_v59 = vadd.f32 %v7195_v58, %v8752_v55  ;;  %v2695_v60 = vpop.f32.mrb[17].mxu0  ;;  %7617 = vmatpush3.bf16.msra.mxu1 %v8641_v43 }
0x142e   : > { %v2710_v61 = vadd.f32 %v8754_v56, %v2695_v60 }
0x142f   : > { %v2713_v62 = vadd.f32 %v8726_v3, %v2711_v59 }
0x1430   : > { %v2712_v63 = vadd.f32 %v8726_v3, %v2710_v61 }
0x1431   : > { %v2717_v35 = vsel %vm1019_vm3, %v2713_v62, -inf }
0x1432   : > { %2718 = vmax.xlane.f32.xlu0 %v2717_v35  ;;  %v2714_v0 = vsel %vm1019_vm3, %v2712_v63, -inf }
0x1433   : > { %2715 = vmax.xlane.f32.xlu1 %v2714_v0 }
0x1434   : > { %v7216_v28 = vpop.f32.mrb[18].mxu0 }
0x1435   : > { %v2996_v2 = vpop.f32.mrb[19].mxu0 }
0x14bf   : > { %v2719_v4 = vpop.xlane.xlu0 %2718 }
0x14c0   : > { %v2721_v5 = vsub.f32 %v2713_v62, %v2719_v4  ;;  %v2716_v6 = vpop.xlane.xlu1 %2715 }
0x14c1   : > { %v2720_v7 = vsub.f32 %v2712_v63, %v2716_v6 }
0x14c2   : > { %v2724_v19 = vmul.f32 1.442695, %v2721_v5 }
0x14c3   : > { %v2722_v8 = vmul.f32 1.442695, %v2720_v7  ;;  %v631_v7 = vld [vmem:[%s8714_s13 + $0x38] sm:$0xff] }
0x14c4   : > { %8048 = vpow2.f32 %v2724_v19  ;;  %v630_v19 = vld [vmem:[%s8714_s13 + $0x30] sm:$0xff]  ;;  %s9197_s13 = scalar_lea.vmem %s9478_s6, %s8440_s19 }
0x14c5   : > { %8050 = vpow2.f32 %v2722_v8  ;;  %v3307_v8 = vmax.f32 %v631_v7, 1e-06 }
0x14c6   : > { %8052 = vlog2.f32 %v3005_v21 }
0x14ce   : > { %v8049_v11 = vpop.eup %8048 }
0x14cf   : > { %v8051_v9 = vpop.eup %8050  ;;  %v2729_v13 = vsel %vm1019_vm3, %v8049_v11, 0.0 }
0x14d0   : > { %2730 = vadd.xlane.f32.xlu1 %v2729_v13  ;;  %v2726_v18 = vsel %vm1019_vm3, %v8051_v9, 0.0 }
0x14d1   : > { %2727 = vadd.xlane.f32.xlu0 %v2726_v18 }
0x14e1   : > { %3215 = vrot.lane.b32.xlu1 %v8682_v52, %s9514_s28  ;;  %v8053_v52 = vpop.eup %8052 }
0x14e5   : > { %3217 = vrot.lane.b32.xlu1 %v8680_v50, %s9514_s28  ;;  %v3006_v50 = vmax.f32 %v629_v16, 1e-06 }
0x14e7   : > { %7890 = vrot.lane.b32.xlu0 %v8688_v29, %s9499_s18  ;;  %8054 = vlog2.f32 %v3006_v50  ;;  %v8786_v29 = vmul.f32 0.6931472, %v8053_v52  ;;  %s9516_s18 = smov 8  }
0x14e9   : > { %v3011_v25 = vadd.f32 %v8786_v29, %v2996_v2 }
0x14eb   : > { %v3013_v31 = vadd.f32 %v8726_v3, %v3011_v25 }
0x14ed   : > { %v3015_v33 = vsel %vm1019_vm3, %v3013_v31, -inf }
0x14f1   : > { %v8055_v22 = vpop.eup %8054 }
0x14f2   : > { %v8788_v24 = vmul.f32 0.6931472, %v8055_v22 }
0x14f4   : > { %v3012_v30 = vadd.f32 %v7216_v28, %v8788_v24 }
0x14f6   : > { %v3014_v32 = vadd.f32 %v8726_v3, %v3012_v30 }
0x14f8   : > { %v3018_v36 = vsel %vm1019_vm3, %v3014_v32, -inf }
0x14ff   : > { %v8824_v5 = vpop.f32.mrb[18].mxu1 }
0x1500   : > { %v8826_v6 = vpop.f32.mrb[19].mxu1 }
0x1506   : > { %3016 = vmax.xlane.f32.xlu0 %v3015_v33 }
0x1509   : > { %3019 = vmax.xlane.f32.xlu1 %v3018_v36 }
0x155d   : > { %v2731_v37 = vpop.xlane.xlu1 %2730 }
0x155e   : > { %8056 = vrcp.f32 %v2731_v37  ;;  %v2728_v38 = vpop.xlane.xlu0 %2727 }
0x155f   : > { %8058 = vrcp.f32 %v2728_v38 }
0x1561   : > { %v3216_v39 = vpop.permute.xlu1 %3215 }
0x1562   : > { %v7891_v40 = vpop.permute.xlu0 %7890  ;;  %7235 = vmatprep.mubr.msk.f32.mxu0 %vm915_vm1, %v3216_v39 }
0x1563   : > { %v7893_v44 = vunpack.i.h.bf16 %v7891_v40  ;;  %v7892_v45 = vunpack.i.l.bf16 %v7891_v40 }
0x1565   : > { %v7636_v46 = vpack.c.bf16 %v7893_v44, %v7892_v45  ;;  %v3218_v58 = vpop.permute.xlu1 %3217  ;;  %v6667_v45 = vld [vmem:[%s9483_s11 + $0x228] ss:$0 sm:$0xff] }
0x1567   : > { %7638 = vmatprep.subr.msk.bf16.mxu0 %vm8404_vm2, %v7636_v46 }
0x1568   : > { %v8057_v47 = vpop.eup %8056  ;;  %7641 = vmatpush3.bf16.xpose.msk.msra.mxu0 %vm8404_vm2, %v7636_v46 }
0x1569   : > { %v8059_v48 = vpop.eup %8058  ;;  %7651 = vmatprep.subr.bf16.mxu0 %v7650_v57  ;;  %v2735_v53 = vmul.f32 %v8057_v47, %v8049_v11  ;;  %v3306_v11 = vmax.f32 %v630_v19, 1e-06 }
0x156a   : > { %v2733_v49 = vmul.f32 %v8059_v48, %v8051_v9 }
0x156c   : > { %7200 = vmatprep.mubr.msk.f32.mxu1 %vm1019_vm3, %v2733_v49 }
0x156d   : > { %7201 = vmatmul.mubr.msk.f32.vlgmr.msra.gmra.mrb[20].mxu1 %vm1019_vm3, %v2735_v53 }
0x156e   : > { %7207 = vmatprep.mubr.msk.f32.mxu1 %vm1019_vm3, %v8776_v12 }
0x156f   : > { %7236 = vmatmul.mubr.msk.f32.vlgmr.msra.gmra.mrb[20].mxu0 %vm915_vm1, %v3218_v58 }
0x1570   : > { %7653 = vmatpush3.bf16.msra.mxu0 %v7650_v57  ;;  %7260 = vmatprep.mubr.msk.f32.mxu0 %vm653_vm0, %v8358_v14 }
0x1571   : > { %7655 = vmatprep.subr.bf16.mxu0 %v7654_v54 }
0x1574   : > { %7657 = vmatpush3.bf16.msra.mxu0 %v7654_v54 }
0x1577   : > { %7261 = vmatmul.mubr.msk.f32.vlgmr.msra.gmra.mrb[22].mxu0 %vm653_vm0, %v8374_v17 }
0x1593   : > { %v3017_v59 = vpop.xlane.xlu0 %3016 }
0x1594   : > { %v3021_v60 = vsub.f32 %v3013_v31, %v3017_v59 }
0x1596   : > { %v3023_v61 = vmul.f32 1.442695, %v3021_v60  ;;  %v3020_v62 = vpop.xlane.xlu1 %3019 }
0x1597   : > { %v3022_v63 = vsub.f32 %v3014_v32, %v3020_v62 }
0x1598   : > { %8060 = vpow2.f32 %v3023_v61 }
0x1599   : > { %v3025_v35 = vmul.f32 1.442695, %v3022_v63 }
0x159b   : > { %8062 = vpow2.f32 %v3025_v35 }
0x159c   : > { %8064 = vlog2.f32 %v3307_v8 }
0x159d   : > { %8066 = vlog2.f32 %v3306_v11 }
0x15a2   : > { %v8061_v0 = vpop.eup %8060 }
0x15a3   : > { %v3027_v28 = vsel %vm1019_vm3, %v8061_v0, 0.0 }
0x15a4   : > { %3028 = vadd.xlane.f32.xlu0 %v3027_v28 }
0x15a5   : > { %v8063_v2 = vpop.eup %8062 }
0x15a6   : > { %v3030_v4 = vsel %vm1019_vm3, %v8063_v2, 0.0  ;;  %v8065_v18 = vpop.eup %8064 }
0x15a7   : > { %v8067_v10 = vpop.eup %8066  ;;  %v8830_v16 = vmul.f32 0.6931472, %v8065_v18 }
0x15a8   : > { %3031 = vadd.xlane.f32.xlu0 %v3030_v4  ;;  %v8832_v50 = vmul.f32 0.6931472, %v8067_v10 }
0x1631   : > { %v3029_v9 = vpop.xlane.xlu0 %3028 }
0x1632   : > { %8068 = vrcp.f32 %v3029_v9 }
0x1635   : > { %v3032_v13 = vpop.xlane.xlu0 %3031 }
0x1636   : > { %8070 = vrcp.f32 %v3032_v13 }
0x163c   : > { %v8069_v32 = vpop.eup %8068 }
0x163d   : > { %v3034_v40 = vmul.f32 %v8069_v32, %v8061_v0 }
0x1640   : > { %v7202_v21 = vpop.f32.mrb[20].mxu1  ;;  %v8071_v38 = vpop.eup %8070 }
0x1641   : > { %v2808_v52 = vpop.f32.mrb[21].mxu1  ;;  %v3036_v42 = vmul.f32 %v8071_v38, %v8063_v2  ;;  %v3603_v38 = vld [vmem:[%s9483_s11 + $0x1a0] sm:$0xff] }
0x1642   : > { %v7618_v22 = vpack.c.bf16 %v7202_v21, %v2808_v52  ;;  %v7237_v25 = vpop.f32.mrb[20].mxu0 }
0x1643   : > { %v3313_v30 = vadd.f32 %v7237_v25, %v8830_v16  ;;  %v3297_v31 = vpop.f32.mrb[21].mxu0  ;;  %v3601_v25 = vld [vmem:[%s9483_s11 + $0x190] sm:$0xff] }
0x1644   : > { %v3312_v33 = vadd.f32 %v8832_v50, %v3297_v31  ;;  %7619 = vmatprep.subr.bf16.mxu1 %v7618_v22 }
0x1645   : > { %7621 = vmatpush3.bf16.msra.mxu1 %v7618_v22  ;;  %v3315_v36 = vadd.f32 %v8726_v3, %v3313_v30  ;;  %v3600_v22 = vld [vmem:[%s9483_s11 + $0x188] sm:$0xff] }
0x1646   : > { %7629 = vmatprep.subr.bf16.mxu1 %v8641_v43  ;;  %v3314_v37 = vadd.f32 %v8726_v3, %v3312_v33 }
0x1647   : > { %v3319_v39 = vsel %vm1019_vm3, %v3315_v36, -inf }
0x1648   : > { %7208 = vmatmul.mubr.msk.f32.vlgmr.msra.gmra.mrb[22].mxu1 %vm1019_vm3, %v8778_v15  ;;  %3320 = vmax.xlane.f32.xlu0 %v3319_v39  ;;  %v3316_v41 = vsel %vm1019_vm3, %v3314_v37, -inf }
0x1649   : > { %7631 = vmatpush3.bf16.msra.mxu1 %v8641_v43  ;;  %7221 = vmatprep.mubr.msk.f32.mxu1 %vm1019_vm3, %v3034_v40 }
0x164a   : > { %3317 = vmax.xlane.f32.xlu1 %v3316_v41  ;;  %v7262_v44 = vpop.f32.mrb[22].mxu0 }
0x164b   : > { %v8851_v46 = vadd.f32 %v7262_v44, %v6667_v45  ;;  %v3591_v57 = vpop.f32.mrb[23].mxu0 }
0x164c   : > { %7222 = vmatmul.mubr.msk.f32.vlgmr.msra.gmra.mrb[24].mxu1 %vm1019_vm3, %v3036_v42  ;;  %v8853_v47 = vadd.f32 %v6667_v45, %v3591_v57  ;;  %v8917_v57 = vld [vmem:[%s8339_s20 + $0x8] sm:$0xff] }
0x164d   : > { %7228 = vmatprep.mubr.msk.f32.mxu1 %vm1019_vm3, %v8776_v12 }
0x164e   : > { %7278 = vmatprep.mubr.msk.f32.mxu0 %vm915_vm1, %v8853_v47  ;;  %v8861_v62 = vpack.i.bf16 %v8851_v46, %v8853_v47 }
0x16d5   : > { %v3321_v48 = vpop.xlane.xlu0 %3320 }
0x16d6   : > { %v3323_v49 = vsub.f32 %v3315_v36, %v3321_v48 }
0x16d7   : > { %v3318_v51 = vpop.xlane.xlu1 %3317 }
0x16d8   : > { %v3326_v27 = vmul.f32 1.442695, %v3323_v49  ;;  %v3322_v53 = vsub.f32 %v3314_v37, %v3318_v51  ;;  %v3602_v37 = vld [vmem:[%s9483_s11 + $0x198] sm:$0xff] }
0x16d9   : > { %v7662_v42 = vpack.c.bf16 %v3603_v38, %v3602_v37 }
0x16da   : > { %8072 = vpow2.f32 %v3326_v27  ;;  %v3324_v54 = vmul.f32 1.442695, %v3322_v53 }
0x16dc   : > { %8074 = vpow2.f32 %v3324_v54 }
0x16e4   : > { %v8073_v58 = vpop.eup %8072 }
0x16e5   : > { %v3331_v59 = vsel %vm1019_vm3, %v8073_v58, 0.0 }
0x16e6   : > { %v8075_v60 = vpop.eup %8074  ;;  %3332 = vadd.xlane.f32.xlu0 %v3331_v59 }
0x16e7   : > { %v3328_v61 = vsel %vm1019_vm3, %v8075_v60, 0.0 }
0x16e8   : > { %3329 = vadd.xlane.f32.xlu1 %v3328_v61 }
0x16f9   : > { %7895 = vrot.lane.b32.xlu1 %v8861_v62, %s9498_s26 }
0x16fd   : > { %7900 = vrot.lane.b32.xlu1 %v8861_v62, %s9497_s23  ;;  %s9515_s23 = smov 72  }
0x1701   : > { %3888 = vrot.lane.b32.xlu1 %v8851_v46, %s9512_s24 }
0x171b   : > { %v8869_v63 = vpop.f32.mrb[22].mxu1 }
0x171c   : > { %v8871_v35 = vpop.f32.mrb[23].mxu1 }
0x171f   : > { %v7223_v0 = vpop.f32.mrb[24].mxu1 }
0x1720   : > { %v3109_v28 = vpop.f32.mrb[25].mxu1 }
0x1721   : > { %v7632_v2 = vpack.c.bf16 %v7223_v0, %v3109_v28  ;;  %v6670_v28 = vld [vmem:[%s9483_s11 + $0x230] ss:$0 sm:$0xff] }
0x1723   : > { %7633 = vmatprep.subr.bf16.mxu1 %v7632_v2 }
0x1724   : > { %7635 = vmatpush3.bf16.msra.mxu1 %v7632_v2 }
0x1725   : > { %7643 = vmatprep.subr.bf16.mxu1 %v8641_v43 }
0x1727   : > { %7229 = vmatmul.mubr.msk.f32.vlgmr.msra.gmra.mrb[26].mxu1 %vm1019_vm3, %v8778_v15 }
0x1728   : > { %7645 = vmatpush3.bf16.msra.mxu1 %v8641_v43 }
0x1773   : > { %v3333_v4 = vpop.xlane.xlu0 %3332 }
0x1774   : > { %8076 = vrcp.f32 %v3333_v4 }
0x1775   : > { %v3330_v7 = vpop.xlane.xlu1 %3329 }
0x1776   : > { %8078 = vrcp.f32 %v3330_v7 }
0x1779   : > { %v7896_v19 = vpop.permute.xlu1 %7895 }
0x177a   : > { %v7898_v8 = vunpack.i.h.bf16 %v7896_v19  ;;  %v7897_v11 = vunpack.i.l.bf16 %v7896_v19 }
0x177c   : > { %v7666_v9 = vpack.c.bf16 %v7898_v8, %v7897_v11 }
0x177d   : > { %v7901_v2 = vpop.permute.xlu1 %7900 }
0x177e   : > { %7668 = vmatprep.subr.msk.bf16.mxu0 %vm8404_vm2, %v7666_v9  ;;  %v8077_v13 = vpop.eup %8076  ;;  %v7903_v8 = vunpack.i.h.bf16 %v7901_v2  ;;  %v7902_v11 = vunpack.i.l.bf16 %v7901_v2 }
0x177f   : > { %7671 = vmatpush3.bf16.xpose.msk.msra.mxu0 %vm8404_vm2, %v7666_v9  ;;  %v3337_v21 = vmul.f32 %v8077_v13, %v8073_v58 }
0x1780   : > { %v8079_v18 = vpop.eup %8078 }
0x1781   : > { %v3335_v10 = vmul.f32 %v8079_v18, %v8075_v60 }
0x1783   : > { %7242 = vmatprep.mubr.msk.f32.mxu1 %vm1019_vm3, %v3335_v10  ;;  %v7676_v10 = vpack.c.bf16 %v7903_v8, %v7902_v11 }
0x1784   : > { %7243 = vmatmul.mubr.msk.f32.vlgmr.msra.gmra.mrb[28].mxu1 %vm1019_vm3, %v3337_v21 }
0x1785   : > { %7249 = vmatprep.mubr.msk.f32.mxu1 %vm1019_vm3, %v8776_v12  ;;  %v7658_v12 = vpack.c.bf16 %v3601_v25, %v3600_v22 }
0x1786   : > { %7279 = vmatmul.mubr.msk.f32.vlgmr.msra.gmra.mrb[24].mxu0 %vm915_vm1, %v8851_v46 }
0x17fa   : > { %v8887_v43 = vpop.f32.mrb[26].mxu1 }
0x17fb   : > { %v8889_v52 = vpop.f32.mrb[27].mxu1 }
0x1857   : > { %v7244_v30 = vpop.f32.mrb[28].mxu1 }
0x1858   : > { %v3410_v31 = vpop.f32.mrb[29].mxu1 }
0x1859   : > { %v7646_v32 = vpack.c.bf16 %v7244_v30, %v3410_v31  ;;  %v7280_v33 = vpop.f32.mrb[24].mxu0 }
0x185a   : > { %v3770_v36 = vpop.f32.mrb[25].mxu0  ;;  %v3780_v39 = vadd.f32 %v7280_v33, %v8722_v1  ;;  %v8911_v1 = vld [vmem:[%s8339_s20] sm:$0xff] }
0x185b   : > { %v3779_v40 = vadd.f32 %v3770_v36, %v8724_v26  ;;  %7647 = vmatprep.subr.bf16.mxu1 %v7646_v32 }
0x185c   : > { %7649 = vmatpush3.bf16.msra.mxu1 %v7646_v32  ;;  %v3782_v45 = vadd.f32 %v8726_v3, %v3780_v39 }
0x185d   : > { %7659 = vmatprep.subr.bf16.mxu1 %v7658_v12  ;;  %v3781_v41 = vadd.f32 %v8726_v3, %v3779_v40 }
0x185e   : > { %v3786_v26 = vsel %vm1019_vm3, %v3782_v45, -inf }
0x185f   : > { %7250 = vmatmul.mubr.msk.f32.vlgmr.msra.gmra.mrb[30].mxu1 %vm1019_vm3, %v8778_v15  ;;  %v3783_v44 = vsel %vm1019_vm3, %v3781_v41, -inf }
0x1860   : > { %7661 = vmatpush3.bf16.msra.mxu1 %v7658_v12  ;;  %3784 = vmax.xlane.f32.xlu0 %v3783_v44  ;;  %v3889_v12 = vpop.permute.xlu1 %3888 }
0x1861   : > { %7663 = vmatprep.subr.bf16.mxu1 %v7662_v42  ;;  %7271 = vmatprep.mubr.msk.f32.mxu1 %vm653_vm0, %v8911_v1 }
0x1864   : > { %7665 = vmatpush3.bf16.msra.mxu1 %v7662_v42  ;;  %3787 = vmax.xlane.f32.xlu0 %v3786_v26 }
0x1867   : > { %7272 = vmatmul.mubr.msk.f32.vlgmr.msra.gmra.mrb[32].mxu1 %vm653_vm0, %v8917_v57 }
0x18ed   : > { %v3785_v15 = vpop.xlane.xlu0 %3784 }
0x18ee   : > { %v3789_v48 = vsub.f32 %v3781_v41, %v3785_v15 }
0x18f0   : > { %v3791_v49 = vmul.f32 1.442695, %v3789_v48 }
0x18f1   : > { %v3788_v51 = vpop.xlane.xlu0 %3787 }
0x18f2   : > { %8080 = vpow2.f32 %v3791_v49  ;;  %v3790_v27 = vsub.f32 %v3782_v45, %v3788_v51 }
0x18f4   : > { %v3793_v53 = vmul.f32 1.442695, %v3790_v27 }
0x18f6   : > { %8082 = vpow2.f32 %v3793_v53 }
0x18fc   : > { %v8081_v54 = vpop.eup %8080 }
0x18fd   : > { %v3795_v58 = vsel %vm1019_vm3, %v8081_v54, 0.0 }
0x18fe   : > { %3796 = vadd.xlane.f32.xlu0 %v3795_v58 }
0x1900   : > { %v8083_v59 = vpop.eup %8082 }
0x1901   : > { %v3798_v60 = vsel %vm1019_vm3, %v8083_v59, 0.0 }
0x1902   : > { %3799 = vadd.xlane.f32.xlu0 %v3798_v60 }
0x1918   : > { %3886 = vrot.lane.b32.xlu0 %v8853_v47, %s9512_s24 }
0x1932   : > { %v8925_v61 = vpop.f32.mrb[30].mxu1 }
0x1933   : > { %v8927_v0 = vpop.f32.mrb[31].mxu1 }
0x193a   : > { %v7273_v4 = vpop.f32.mrb[32].mxu1 }
0x193b   : > { %v3687_v7 = vadd.f32 %v7273_v4, %v6670_v28  ;;  %v3681_v19 = vpop.f32.mrb[33].mxu1 }
0x193c   : > { %v3682_v9 = vadd.f32 %v6670_v28, %v3681_v19 }
0x193e   : > { %v7672_v13 = vpack.c.bf16 %v3687_v7, %v3682_v9  ;;  %v8932_v18 = vpack.i.bf16 %v3687_v7, %v3682_v9 }
0x1940   : > { %7673 = vmatprep.subr.bf16.mxu1 %v7672_v13 }
0x1941   : > { %7675 = vmatpush3.bf16.msra.mxu1 %v7672_v13 }
0x1942   : > { %7678 = vmatprep.subr.msk.bf16.mxu1 %vm8404_vm2, %v7676_v10 }
0x198b   : > { %v3797_v21 = vpop.xlane.xlu0 %3796 }
0x198c   : > { %8084 = vrcp.f32 %v3797_v21 }
0x198f   : > { %v3800_v22 = vpop.xlane.xlu0 %3799 }
0x1990   : > { %8086 = vrcp.f32 %v3800_v22 }
0x1993   : > { %v3887_v33 = vpop.permute.xlu0 %3886 }
0x1996   : > { %v8085_v25 = vpop.eup %8084 }
0x1997   : > { %v3802_v30 = vmul.f32 %v8085_v25, %v8081_v54 }
0x1999   : > { %7285 = vmatprep.mubr.msk.f32.mxu1 %vm1019_vm3, %v3802_v30 }
0x199a   : > { %v8087_v31 = vpop.eup %8086 }
0x199b   : > { %v3804_v32 = vmul.f32 %v8087_v31, %v8083_v59 }
0x199d   : > { %7286 = vmatmul.mubr.msk.f32.vlgmr.msra.gmra.mrb[34].mxu1 %vm1019_vm3, %v3804_v32 }
0x199e   : > { %7681 = vmatpush3.bf16.xpose.msk.msra.mxu1 %vm8404_vm2, %v7676_v10  ;;  %7292 = vmatprep.mubr.msk.f32.mxu1 %vm915_vm1, %v3887_v33 }
0x19a5   : > { %7293 = vmatmul.mubr.msk.f32.vlgmr.msra.gmra.mrb[36].mxu1 %vm915_vm1, %v3889_v12 }
0x1a70   : > { %v8942_v36 = vpop.f32.mrb[34].mxu1 }
0x1a71   : > { %v8944_v37 = vpop.f32.mrb[35].mxu1 }
0x1a78   : > { %v7294_v38 = vpop.f32.mrb[36].mxu1 }
0x1a79   : > { %v3978_v39 = vadd.f32 %v7294_v38, %v8752_v55  ;;  %v3968_v40 = vpop.f32.mrb[37].mxu1 }
0x1a7a   : > { %v3977_v41 = vadd.f32 %v3968_v40, %v8754_v56 }
0x1a7b   : > { %v3980_v42 = vadd.f32 %v8726_v3, %v3978_v39 }
0x1a7c   : > { %v3979_v44 = vadd.f32 %v8726_v3, %v3977_v41 }
0x1a7d   : > { %v3984_v45 = vsel %vm1019_vm3, %v3980_v42, -inf }
0x1a7e   : > { %3985 = vmax.xlane.f32.xlu0 %v3984_v45  ;;  %v3981_v26 = vsel %vm1019_vm3, %v3979_v44, -inf }
0x1a7f   : > { %3982 = vmax.xlane.f32.xlu1 %v3981_v26 }
0x1a90   : > { %7905 = vrot.lane.b32.xlu1 %v8932_v18, %s9512_s24 }
0x1a94   : > { %7910 = vrot.lane.b32.xlu0 %v8861_v62, %s9501_s15  ;;  %4092 = vrot.lane.b32.xlu1 %v8853_v47, %s9513_s27 }
0x1b0b   : > { %v3986_v55 = vpop.xlane.xlu0 %3985 }
0x1b0c   : > { %v3988_v56 = vsub.f32 %v3980_v42, %v3986_v55  ;;  %v3983_v15 = vpop.xlane.xlu1 %3982 }
0x1b0d   : > { %v3987_v48 = vsub.f32 %v3979_v44, %v3983_v15 }
0x1b0e   : > { %v3991_v49 = vmul.f32 1.442695, %v3988_v56 }
0x1b0f   : > { %v3989_v51 = vmul.f32 1.442695, %v3987_v48  ;;  %v7911_v27 = vpop.permute.xlu0 %7910 }
0x1b10   : > { %8088 = vpow2.f32 %v3991_v49  ;;  %v7906_v53 = vpop.permute.xlu1 %7905  ;;  %v7913_v54 = vunpack.i.h.bf16 %v7911_v27  ;;  %v7912_v58 = vunpack.i.l.bf16 %v7911_v27 }
0x1b11   : > { %v7908_v59 = vunpack.i.h.bf16 %v7906_v53  ;;  %v7907_v60 = vunpack.i.l.bf16 %v7906_v53  ;;  %8090 = vpow2.f32 %v3989_v51 }
0x1b12   : > { %v7686_v2 = vpack.c.bf16 %v7913_v54, %v7912_v58 }
0x1b13   : > { %v7682_v28 = vpack.c.bf16 %v7908_v59, %v7907_v60 }
0x1b14   : > { %v4093_v11 = vpop.permute.xlu1 %4092 }
0x1b15   : > { %7683 = vmatprep.subr.bf16.mxu0 %v7682_v28 }
0x1b16   : > { %7685 = vmatpush3.bf16.msra.mxu0 %v7682_v28 }
0x1b17   : > { %7688 = vmatprep.subr.msk.bf16.mxu0 %vm8404_vm2, %v7686_v2 }
0x1b1a   : > { %v8089_v4 = vpop.eup %8088 }
0x1b1b   : > { %v3996_v7 = vsel %vm1019_vm3, %v8089_v4, 0.0  ;;  %v8091_v19 = vpop.eup %8090 }
0x1b1c   : > { %3997 = vadd.xlane.f32.xlu1 %v3996_v7  ;;  %v3993_v8 = vsel %vm1019_vm3, %v8091_v19, 0.0 }
0x1b20   : > { %3994 = vadd.xlane.f32.xlu1 %v3993_v8 }
0x1b31   : > { %4094 = vrot.lane.b32.xlu1 %v8851_v46, %s9513_s27 }
0x1ba9   : > { %v3998_v9 = vpop.xlane.xlu1 %3997 }
0x1baa   : > { %8092 = vrcp.f32 %v3998_v9 }
0x1bad   : > { %v3995_v13 = vpop.xlane.xlu1 %3994 }
0x1bae   : > { %8094 = vrcp.f32 %v3995_v13 }
0x1bb1   : > { %v4095_v30 = vpop.permute.xlu1 %4094 }
0x1bb4   : > { %v8093_v10 = vpop.eup %8092 }
0x1bb5   : > { %v4002_v25 = vmul.f32 %v8093_v10, %v8089_v4 }
0x1bb8   : > { %v8095_v21 = vpop.eup %8094 }
0x1bb9   : > { %v4000_v22 = vmul.f32 %v8095_v21, %v8091_v19 }
0x1bbb   : > { %7299 = vmatprep.mubr.msk.f32.mxu0 %vm1019_vm3, %v4000_v22 }
0x1bbc   : > { %7300 = vmatmul.mubr.msk.f32.vlgmr.msra.gmra.mrb[26].mxu0 %vm1019_vm3, %v4002_v25 }
0x1bbd   : > { %7691 = vmatpush3.bf16.xpose.msk.msra.mxu0 %vm8404_vm2, %v7686_v2  ;;  %7306 = vmatprep.mubr.msk.f32.mxu0 %vm915_vm1, %v4093_v11 }
0x1bc4   : > { %7307 = vmatmul.mubr.msk.f32.vlgmr.msra.gmra.mrb[28].mxu0 %vm915_vm1, %v4095_v30 }
0x1c8f   : > { %v8970_v31 = vpop.f32.mrb[26].mxu0 }
0x1c90   : > { %v8972_v32 = vpop.f32.mrb[27].mxu0 }
0x1c97   : > { %v7308_v33 = vpop.f32.mrb[28].mxu0 }
0x1c98   : > { %v4184_v12 = vadd.f32 %v7308_v33, %v8788_v24  ;;  %v4174_v38 = vpop.f32.mrb[29].mxu0 }
0x1c99   : > { %v4183_v39 = vadd.f32 %v4174_v38, %v8786_v29 }
0x1c9a   : > { %v4186_v40 = vadd.f32 %v8726_v3, %v4184_v12 }
0x1c9b   : > { %v4185_v41 = vadd.f32 %v8726_v3, %v4183_v39 }
0x1c9c   : > { %v4190_v42 = vsel %vm1019_vm3, %v4186_v40, -inf }
0x1c9d   : > { %4191 = vmax.xlane.f32.xlu1 %v4190_v42  ;;  %v4187_v44 = vsel %vm1019_vm3, %v4185_v41, -inf }
0x1c9e   : > { %4188 = vmax.xlane.f32.xlu0 %v4187_v44 }
0x1cae   : > { %7915 = vrot.lane.b32.xlu1 %v8932_v18, %s9513_s27 }
0x1cb2   : > { %4296 = vrot.lane.b32.xlu1 %v8853_v47, %s9514_s28 }
0x1cb6   : > { %4298 = vrot.lane.b32.xlu1 %v8851_v46, %s9514_s28 }
0x1d2a   : > { %v4192_v29 = vpop.xlane.xlu1 %4191 }
0x1d2b   : > { %v4194_v24 = vsub.f32 %v4186_v40, %v4192_v29  ;;  %v4189_v45 = vpop.xlane.xlu0 %4188 }
0x1d2c   : > { %v4193_v26 = vsub.f32 %v4185_v41, %v4189_v45 }
0x1d2d   : > { %v4197_v55 = vmul.f32 1.442695, %v4194_v24 }
0x1d2e   : > { %v4195_v56 = vmul.f32 1.442695, %v4193_v26  ;;  %v7916_v15 = vpop.permute.xlu1 %7915 }
0x1d2f   : > { %8096 = vpow2.f32 %v4197_v55  ;;  %v7918_v48 = vunpack.i.h.bf16 %v7916_v15  ;;  %v7917_v49 = vunpack.i.l.bf16 %v7916_v15 }
0x1d30   : > { %8098 = vpow2.f32 %v4195_v56 }
0x1d31   : > { %v7692_v51 = vpack.c.bf16 %v7918_v48, %v7917_v49 }
0x1d32   : > { %v4297_v11 = vpop.permute.xlu1 %4296 }
0x1d33   : > { %7693 = vmatprep.subr.bf16.mxu1 %v7692_v51 }
0x1d34   : > { %7695 = vmatpush3.bf16.msra.mxu1 %v7692_v51 }
0x1d39   : > { %v8097_v27 = vpop.eup %8096 }
0x1d3a   : > { %v4202_v47 = vsel %vm1019_vm3, %v8097_v27, 0.0  ;;  %v8099_v53 = vpop.eup %8098 }
0x1d3b   : > { %4203 = vadd.xlane.f32.xlu0 %v4202_v47  ;;  %v4199_v46 = vsel %vm1019_vm3, %v8099_v53, 0.0  ;;  %v4532_v47 = vld [vmem:[%s9483_s11 + $0x1b8] sm:$0xff] }
0x1d3f   : > { %4200 = vadd.xlane.f32.xlu0 %v4199_v46  ;;  %v4533_v46 = vld [vmem:[%s9483_s11 + $0x1c0] sm:$0xff] }
0x1d55   : > { %7920 = vrot.lane.b32.xlu0 %v8861_v62, %s9515_s23  ;;  %v4299_v62 = vpop.permute.xlu1 %4298 }
0x1dc8   : > { %v4204_v54 = vpop.xlane.xlu0 %4203 }
0x1dc9   : > { %8100 = vrcp.f32 %v4204_v54  ;;  %v7710_v54 = vpack.c.bf16 %v4533_v46, %v4532_v47 }
0x1dcc   : > { %v4201_v58 = vpop.xlane.xlu0 %4200 }
0x1dcd   : > { %8102 = vrcp.f32 %v4201_v58 }
0x1dd0   : > { %v7921_v59 = vpop.permute.xlu0 %7920 }
0x1dd1   : > { %v7923_v60 = vunpack.i.h.bf16 %v7921_v59  ;;  %v7922_v28 = vunpack.i.l.bf16 %v7921_v59 }
0x1dd3   : > { %v7696_v2 = vpack.c.bf16 %v7923_v60, %v7922_v28  ;;  %v8101_v4 = vpop.eup %8100 }
0x1dd4   : > { %v4208_v8 = vmul.f32 %v8101_v4, %v8097_v27  ;;  %v4530_v27 = vld [vmem:[%s9483_s11 + $0x1a8] sm:$0xff] }
0x1dd5   : > { %7698 = vmatprep.subr.msk.bf16.mxu1 %vm8404_vm2, %v7696_v2 }
0x1dd7   : > { %v8103_v7 = vpop.eup %8102 }
0x1dd8   : > { %v4206_v19 = vmul.f32 %v8103_v7, %v8099_v53 }
0x1dda   : > { %7313 = vmatprep.mubr.msk.f32.mxu1 %vm1019_vm3, %v4206_v19 }
0x1ddb   : > { %7314 = vmatmul.mubr.msk.f32.vlgmr.msra.gmra.mrb[38].mxu1 %vm1019_vm3, %v4208_v8 }
0x1ddc   : > { %7701 = vmatpush3.bf16.xpose.msk.msra.mxu1 %vm8404_vm2, %v7696_v2  ;;  %7320 = vmatprep.mubr.msk.f32.mxu1 %vm915_vm1, %v4297_v11 }
0x1de3   : > { %7321 = vmatmul.mubr.msk.f32.vlgmr.msra.gmra.mrb[40].mxu1 %vm915_vm1, %v4299_v62 }
0x1eae   : > { %v7315_v9 = vpop.f32.mrb[38].mxu1 }
0x1eaf   : > { %v4287_v13 = vpop.f32.mrb[39].mxu1 }
0x1eb6   : > { %v7322_v10 = vpop.f32.mrb[40].mxu1 }
0x1eb7   : > { %v4388_v21 = vadd.f32 %v7322_v10, %v8830_v16  ;;  %v4378_v22 = vpop.f32.mrb[41].mxu1 }
0x1eb8   : > { %v4387_v25 = vadd.f32 %v4378_v22, %v8832_v50 }
0x1eb9   : > { %v4390_v30 = vadd.f32 %v8726_v3, %v4388_v21 }
0x1eba   : > { %v4389_v33 = vadd.f32 %v8726_v3, %v4387_v25 }
0x1ebb   : > { %v4394_v12 = vsel %vm1019_vm3, %v4390_v30, -inf }
0x1ebc   : > { %4395 = vmax.xlane.f32.xlu1 %v4394_v12  ;;  %v4391_v38 = vsel %vm1019_vm3, %v4389_v33, -inf }
0x1ebd   : > { %4392 = vmax.xlane.f32.xlu0 %v4391_v38 }
0x1ecd   : > { %7925 = vrot.lane.b32.xlu1 %v8932_v18, %s9514_s28 }
0x1ed1   : > { %4504 = vrot.lane.b32.xlu1 %v8970_v31, %s9516_s18 }
0x1ed5   : > { %4510 = vrot.lane.b32.xlu1 %v4287_v13, %s9517_s30 }
0x1f49   : > { %v4396_v16 = vpop.xlane.xlu1 %4395 }
0x1f4a   : > { %v4398_v50 = vsub.f32 %v4390_v30, %v4396_v16  ;;  %v4393_v39 = vpop.xlane.xlu0 %4392 }
0x1f4b   : > { %v4397_v40 = vsub.f32 %v4389_v33, %v4393_v39 }
0x1f4c   : > { %v4401_v41 = vmul.f32 1.442695, %v4398_v50 }
0x1f4d   : > { %v4399_v3 = vmul.f32 1.442695, %v4397_v40  ;;  %v7926_v42 = vpop.permute.xlu1 %7925 }
0x1f4e   : > { %v7928_v44 = vunpack.i.h.bf16 %v7926_v42  ;;  %v7927_v29 = vunpack.i.l.bf16 %v7926_v42 }
0x1f4f   : > { %8104 = vpow2.f32 %v4399_v3 }
0x1f50   : > { %v7702_v24 = vpack.c.bf16 %v7928_v44, %v7927_v29  ;;  %8106 = vpow2.f32 %v4401_v41 }
0x1f51   : > { %v4505_v28 = vpop.permute.xlu1 %4504 }
0x1f52   : > { %7703 = vmatprep.subr.bf16.mxu0 %v7702_v24  ;;  %v4525_v8 = vsel %vm915_vm1, %v8942_v36, %v4505_v28 }
0x1f53   : > { %7705 = vmatpush3.bf16.msra.mxu0 %v7702_v24 }
0x1f55   : > { %v4511_v4 = vpop.permute.xlu1 %4510 }
0x1f59   : > { %v8105_v18 = vpop.eup %8104 }
0x1f5a   : > { %v4403_v45 = vsel %vm1019_vm3, %v8105_v18, 0.0  ;;  %v8107_v31 = vpop.eup %8106 }
0x1f5b   : > { %4404 = vadd.xlane.f32.xlu0 %v4403_v45  ;;  %v4406_v26 = vsel %vm1019_vm3, %v8107_v31, 0.0 }
0x1f5f   : > { %4407 = vadd.xlane.f32.xlu0 %v4406_v26 }
0x1f75   : > { %4502 = vrot.lane.b32.xlu0 %v8972_v32, %s9516_s18  ;;  %v4531_v32 = vld [vmem:[%s9483_s11 + $0x1b0] sm:$0xff] }
0x1f76   : > { %v7706_v53 = vpack.c.bf16 %v4531_v32, %v4530_v27 }
0x1f78   : > { %7707 = vmatprep.subr.bf16.mxu0 %v7706_v53 }
0x1f79   : > { %4512 = vrot.lane.b32.xlu0 %v7315_v9, %s9517_s30 }
0x1fe8   : > { %v4405_v55 = vpop.xlane.xlu0 %4404 }
0x1fe9   : > { %8108 = vrcp.f32 %v4405_v55 }
0x1fec   : > { %v4408_v56 = vpop.xlane.xlu0 %4407 }
0x1fed   : > { %8110 = vrcp.f32 %v4408_v56  ;;  %v6700_v56 = vld [vmem:[%s9483_s11 + $0x240] ss:$0 sm:$0xff] }
0x1ff0   : > { %v4503_v60 = vpop.permute.xlu0 %4502 }
0x1ff1   : > { %v4524_v7 = vsel %vm915_vm1, %v8944_v37, %v4503_v60  ;;  %v6697_v37 = vld [vmem:[%s9483_s11 + $0x238] ss:$0 sm:$0xff] }
0x1ff2   : > { %v4526_v62 = vsel %vm1019_vm3, %v4524_v7, %v4511_v4 }
0x1ff3   : > { %v8109_v15 = vpop.eup %8108 }
0x1ff4   : > { %v4410_v48 = vmul.f32 %v8109_v15, %v8105_v18  ;;  %v4513_v2 = vpop.permute.xlu0 %4512 }
0x1ff5   : > { %v4527_v9 = vsel %vm1019_vm3, %v4525_v8, %v4513_v2 }
0x1ff6   : > { %7327 = vmatprep.mubr.msk.f32.mxu0 %vm1019_vm3, %v4410_v48 }
0x1ff7   : > { %v8111_v49 = vpop.eup %8110 }
0x1ff8   : > { %v4412_v51 = vmul.f32 %v8111_v49, %v8107_v31  ;;  %v6701_v49 = vld [vmem:[%s9483_s11 + $0x248] ss:$0 sm:$0xff] }
0x1ffa   : > { %7328 = vmatmul.mubr.msk.f32.vlgmr.msra.gmra.mrb[30].mxu0 %vm1019_vm3, %v4412_v51 }
0x1ffb   : > { %7709 = vmatpush3.bf16.msra.mxu0 %v7706_v53 }
0x1ffc   : > { %7711 = vmatprep.subr.bf16.mxu0 %v7710_v54 }
0x1fff   : > { %7713 = vmatpush3.bf16.msra.mxu0 %v7710_v54 }
0x20cd   : > { %v7329_v58 = vpop.f32.mrb[30].mxu0 }
0x20ce   : > { %4520 = vrot.lane.b32.xlu0 %v7329_v58, %s9518_s16  ;;  %v4491_v59 = vpop.f32.mrb[31].mxu0 }
0x20cf   : > { %4518 = vrot.lane.b32.xlu1 %v4491_v59, %s9518_s16 }
0x2140   : > { %v4521_v19 = vpop.permute.xlu0 %4520 }
0x2141   : > { %v4519_v11 = vpop.permute.xlu1 %4518  ;;  %v4529_v10 = vsel %vm1783_vm4, %v4527_v9, %v4521_v19  ;;  %v2594_v9 = vsel %vm1019_vm3, %v8824_v5, -inf }
0x2142   : > { %v4528_v13 = vsel %vm1783_vm4, %v4526_v62, %v4519_v11 }
0x2143   : > { %7338 = vmatprep.mubr.msk.f32.mxu0 %vm653_vm0, %v4528_v13  ;;  %v4704_v13 = vld [vmem:[%s9483_s11 + $0x1c8] sm:$0xff] }
0x2144   : > { %7339 = vmatmul.mubr.msk.f32.vlgmr.msra.gmra.mrb[32].mxu0 %vm653_vm0, %v4529_v10  ;;  %v4705_v10 = vld [vmem:[%s9483_s11 + $0x1d0] sm:$0xff] }
0x2217   : > { %v7340_v21 = vpop.f32.mrb[32].mxu0 }
0x2218   : > { %v4617_v22 = vadd.f32 %v7340_v21, %v6697_v37  ;;  %v4611_v36 = vpop.f32.mrb[33].mxu0  ;;  %v4706_v21 = vld [vmem:[%s9483_s11 + $0x1d8] sm:$0xff] }
0x2219   : > { %v4612_v25 = vadd.f32 %v6697_v37, %v4611_v36  ;;  %v7714_v37 = vpack.c.bf16 %v4705_v10, %v4704_v13 }
0x221a   : > { %v4621_v30 = vadd.f32 %v4617_v22, %v8374_v17  ;;  %v4707_v22 = vld [vmem:[%s9483_s11 + $0x1e0] sm:$0xff] }
0x221b   : > { %v4620_v33 = vadd.f32 %v4612_v25, %v8358_v14  ;;  %7715 = vmatprep.subr.bf16.mxu1 %v7714_v37  ;;  %v7718_v36 = vpack.c.bf16 %v4707_v22, %v4706_v21  ;;  %v4932_v25 = vld [vmem:[%s9483_s11 + $0x280] sm:$0xff] }
0x221c   : > { %v4627_v12 = vsel %vm653_vm0, %v4621_v30, 0.0  ;;  %7717 = vmatpush3.bf16.msra.mxu1 %v7714_v37  ;;  %v6712_v21 = vld [vmem:[%s9483_s11 + $0x340] ss:$0 sm:$0xff] }
0x221d   : > { %4628 = vadd.xlane.f32.xlu0 %v4627_v12  ;;  %v4624_v38 = vsel %vm653_vm0, %v4620_v33, 0.0  ;;  %7719 = vmatprep.subr.bf16.mxu1 %v7718_v36 }
0x221e   : > { %4625 = vadd.xlane.f32.xlu1 %v4624_v38 }
0x2220   : > { %7721 = vmatpush3.bf16.msra.mxu1 %v7718_v36 }
0x22aa   : > { %v4629_v16 = vpop.xlane.xlu0 %4628 }
0x22ab   : > { %v4631_v50 = vmul.f32 0.03125, %v4629_v16  ;;  %v4626_v39 = vpop.xlane.xlu1 %4625 }
0x22ac   : > { %v4630_v40 = vmul.f32 0.03125, %v4626_v39 }
0x22ad   : > { %v4633_v41 = vsub.f32 %v4621_v30, %v4631_v50  ;;  %v4933_v30 = vld [vmem:[%s9483_s11 + $0x288] sm:$0xff] }
0x22ae   : > { %v4632_v3 = vsub.f32 %v4620_v33, %v4630_v40  ;;  %v7738_v33 = vpack.c.bf16 %v4933_v30, %v4932_v25 }
0x22af   : > { %v4635_v42 = vmul.f32 %v4633_v41, %v4633_v41 }
0x22b0   : > { %v4634_v44 = vmul.f32 %v4632_v3, %v4632_v3  ;;  %7739 = vmatprep.subr.bf16.mxu1 %v7738_v33 }
0x22b1   : > { %v4639_v29 = vsel %vm653_vm0, %v4635_v42, 0.0 }
0x22b2   : > { %4640 = vadd.xlane.f32.xlu1 %v4639_v29  ;;  %v4636_v17 = vsel %vm653_vm0, %v4634_v44, 0.0 }
0x22b3   : > { %4637 = vadd.xlane.f32.xlu0 %v4636_v17 }
0x233f   : > { %v4641_v14 = vpop.xlane.xlu1 %4640 }
0x2340   : > { %v4643_v24 = vmul.f32 0.03125, %v4641_v14  ;;  %v4638_v18 = vpop.xlane.xlu0 %4637 }
0x2341   : > { %v4642_v45 = vmul.f32 0.03125, %v4638_v18 }
0x2342   : > { %v4645_v31 = vadd.f32 1e-05, %v4643_v24  ;;  %v6702_v24 = vld [vmem:[%s9483_s11 + $0x250] ss:$0 sm:$0xff] }
0x2343   : > { %v4644_v26 = vadd.f32 1e-05, %v4642_v45 }
0x2344   : > { %8112 = vrsqrt.f32 %v4645_v31 }
0x2345   : > { %8114 = vrsqrt.f32 %v4644_v26 }
0x234e   : > { %v8113_v55 = vpop.eup %8112 }
0x234f   : > { %v8115_v15 = vpop.eup %8114  ;;  %v4649_v48 = vmul.f32 %v8113_v55, %v4633_v41 }
0x2350   : > { %v4648_v51 = vmul.f32 %v8115_v15, %v4632_v3  ;;  %v4935_v15 = vld [vmem:[%s9483_s11 + $0x298] sm:$0xff] }
0x2351   : > { %v4655_v27 = vmul.f32 %v6700_v56, %v4649_v48 }
0x2352   : > { %v4654_v32 = vmul.f32 %v6700_v56, %v4648_v51 }
0x2353   : > { %v4661_v47 = vadd.f32 %v6701_v49, %v4655_v27 }
0x2354   : > { %v4660_v53 = vadd.f32 %v6701_v49, %v4654_v32 }
0x2355   : > { %v4663_v46 = vadd.f32 %v8917_v57, %v4661_v47 }
0x2356   : > { %v4662_v54 = vadd.f32 %v8911_v1, %v4660_v53  ;;  %v2591_v1 = vsel %vm1019_vm3, %v8826_v6, -inf  ;;  %v9118_v53 = vld [vmem:[%s8364_s14] sm:$0xff] }
0x2357   : > { %v4669_v58 = vsel %vm653_vm0, %v4663_v46, 0.0 }
0x2358   : > { %4670 = vadd.xlane.f32.xlu1 %v4669_v58  ;;  %v4666_v59 = vsel %vm653_vm0, %v4662_v54, 0.0  ;;  %v4711_v58 = vld [vmem:[%s9483_s11 + $0x1f8] sm:$0xff] }
0x2359   : > { %4667 = vadd.xlane.f32.xlu0 %v4666_v59 }
0x23e5   : > { %v4671_v60 = vpop.xlane.xlu1 %4670 }
0x23e6   : > { %v4673_v28 = vmul.f32 0.03125, %v4671_v60  ;;  %v4668_v2 = vpop.xlane.xlu0 %4667  ;;  %v4712_v60 = vld [vmem:[%s9483_s11 + $0x200] sm:$0xff] }
0x23e7   : > { %v4672_v4 = vmul.f32 0.03125, %v4668_v2  ;;  %v4713_v2 = vld [vmem:[%s9483_s11 + $0x208] sm:$0xff] }
0x23e8   : > { %v4675_v7 = vsub.f32 %v4663_v46, %v4673_v28  ;;  %v4709_v46 = vld [vmem:[%s9483_s11 + $0x1e8] sm:$0xff]  ;;  %v7726_v28 = vpack.c.bf16 %v4712_v60, %v4711_v58 }
0x23e9   : > { %v4674_v19 = vsub.f32 %v4662_v54, %v4672_v4  ;;  %v4710_v54 = vld [vmem:[%s9483_s11 + $0x1f0] sm:$0xff] }
0x23ea   : > { %v4677_v8 = vmul.f32 %v4675_v7, %v4675_v7  ;;  %v7722_v59 = vpack.c.bf16 %v4710_v54, %v4709_v46  ;;  %v4714_v4 = vld [vmem:[%s9483_s11 + $0x210] sm:$0xff] }
0x23eb   : > { %v4676_v11 = vmul.f32 %v4674_v19, %v4674_v19 }
0x23ec   : > { %v4681_v62 = vsel %vm653_vm0, %v4677_v8, 0.0  ;;  %7723 = vmatprep.subr.bf16.mxu0 %v7722_v59  ;;  %v4716_v8 = vld [vmem:[%s9483_s11 + $0x220] sm:$0xff] }
0x23ed   : > { %4682 = vadd.xlane.f32.xlu1 %v4681_v62  ;;  %v4678_v57 = vsel %vm653_vm0, %v4676_v11, 0.0  ;;  %7725 = vmatpush3.bf16.msra.mxu0 %v7722_v59  ;;  %v6704_v62 = vld [vmem:[%s9483_s11 + $0x260] ss:$0 sm:$0xff] }
0x23ee   : > { %4679 = vadd.xlane.f32.xlu0 %v4678_v57  ;;  %7727 = vmatprep.subr.bf16.mxu0 %v7726_v28 }
0x23f1   : > { %2592 = vmax.xlane.f32.xlu1 %v2591_v1  ;;  %7729 = vmatpush3.bf16.msra.mxu0 %v7726_v28 }
0x23f5   : > { %2595 = vmax.xlane.f32.xlu1 %v2594_v9 }
0x247a   : > { %v4683_v12 = vpop.xlane.xlu1 %4682 }
0x247b   : > { %v4685_v38 = vmul.f32 0.03125, %v4683_v12  ;;  %v4680_v16 = vpop.xlane.xlu0 %4679 }
0x247c   : > { %v4684_v50 = vmul.f32 0.03125, %v4680_v16 }
0x247d   : > { %v4687_v39 = vadd.f32 1e-05, %v4685_v38 }
0x247e   : > { %v4686_v40 = vadd.f32 1e-05, %v4684_v50  ;;  %v2593_v41 = vpop.xlane.xlu1 %2592 }
0x247f   : > { %8116 = vrsqrt.f32 %v4687_v39  ;;  %v2597_v3 = vsub.f32 %v8826_v6, %v2593_v41  ;;  %v6703_v6 = vld [vmem:[%s9483_s11 + $0x258] ss:$0 sm:$0xff]  ;;  %v5016_v41 = vld [vmem:[%s9483_s11 + $0x2a0] sm:$0xff] }
0x2480   : > { %8118 = vrsqrt.f32 %v4686_v40 }
0x2481   : > { %v2599_v42 = vmul.f32 1.442695, %v2597_v3  ;;  %v5017_v3 = vld [vmem:[%s9483_s11 + $0x2a8] sm:$0xff] }
0x2482   : > { %v2596_v44 = vpop.xlane.xlu1 %2595 }
0x2483   : > { %8120 = vpow2.f32 %v2599_v42  ;;  %v2598_v29 = vsub.f32 %v8824_v5, %v2596_v44  ;;  %v4934_v5 = vld [vmem:[%s9483_s11 + $0x290] sm:$0xff]  ;;  %v7746_v44 = vpack.c.bf16 %v5017_v3, %v5016_v41 }
0x2484   : > { %v7742_v27 = vpack.c.bf16 %v4935_v15, %v4934_v5  ;;  %v5018_v42 = vld [vmem:[%s9483_s11 + $0x2b0] sm:$0xff]  ;;  %v633_v5 = vld [vmem:[%s9197_s13 + $0x8] sm:$0xff] }
0x2485   : > { %v2601_v17 = vmul.f32 1.442695, %v2598_v29  ;;  %v5019_v29 = vld [vmem:[%s9483_s11 + $0x2b8] sm:$0xff] }
0x2487   : > { %8122 = vpow2.f32 %v2601_v17  ;;  %v7750_v17 = vpack.c.bf16 %v5019_v29, %v5018_v42 }
0x2489   : > { %v8117_v14 = vpop.eup %8116 }
0x248a   : > { %v8119_v18 = vpop.eup %8118  ;;  %v4691_v45 = vmul.f32 %v8117_v14, %v4675_v7  ;;  %v7730_v7 = vpack.c.bf16 %v4714_v4, %v4713_v2  ;;  %v9189_v14 = vld [vmem:[%s8364_s14 + $0x8] sm:$0xff] }
0x248b   : > { %v4690_v31 = vmul.f32 %v8119_v18, %v4674_v19  ;;  %v4715_v19 = vld [vmem:[%s9483_s11 + $0x218] sm:$0xff] }
0x248c   : > { %v4697_v26 = vmul.f32 %v6702_v24, %v4691_v45  ;;  %7731 = vmatprep.subr.bf16.mxu0 %v7730_v7  ;;  %v7734_v11 = vpack.c.bf16 %v4716_v8, %v4715_v19 }
0x248d   : > { %v9091_v55 = vpop.eup %8120  ;;  %v4696_v56 = vmul.f32 %v6702_v24, %v4690_v31  ;;  %7733 = vmatpush3.bf16.msra.mxu0 %v7730_v7 }
0x248e   : > { %v2603_v48 = vsel %vm1019_vm3, %v9091_v55, 0.0  ;;  %v9103_v51 = vadd.f32 %v6703_v6, %v4697_v26  ;;  %7735 = vmatprep.subr.bf16.mxu0 %v7734_v11 }
0x248f   : > { %2604 = vadd.xlane.f32.xlu1 %v2603_v48  ;;  %v9101_v49 = vadd.f32 %v6703_v6, %v4696_v56  ;;  %v632_v56 = vld [vmem:[%s9197_s13] sm:$0xff] }
0x2490   : > { %v5189_v15 = vmax.f32 %v632_v56, 1e-06 }
0x2491   : > { %v9105_v32 = vpop.eup %8122  ;;  %7349 = vmatprep.mubr.msk.f32.mxu1 %vm653_vm0, %v9101_v49  ;;  %7737 = vmatpush3.bf16.msra.mxu0 %v7734_v11 }
0x2492   : > { %7350 = vmatmul.mubr.msk.f32.vlgmr.msra.gmra.mrb[42].mxu1 %vm653_vm0, %v9103_v51  ;;  %v2606_v47 = vsel %vm1019_vm3, %v9105_v32, 0.0 }
0x2493   : > { %7741 = vmatpush3.bf16.msra.mxu1 %v7738_v33  ;;  %2607 = vadd.xlane.f32.xlu1 %v2606_v47 }
0x2494   : > { %7743 = vmatprep.subr.bf16.mxu1 %v7742_v27  ;;  %7379 = vmatprep.mubr.msk.f32.mxu1 %vm653_vm0, %v8376_v20 }
0x2497   : > { %7745 = vmatpush3.bf16.msra.mxu1 %v7742_v27  ;;  %v5190_v27 = vmax.f32 %v633_v5, 1e-06 }
0x2498   : > { %7747 = vmatprep.subr.bf16.mxu1 %v7746_v44 }
0x249a   : > { %7380 = vmatmul.mubr.msk.f32.vlgmr.msra.gmra.mrb[44].mxu1 %vm653_vm0, %v8384_v23 }
0x249b   : > { %7390 = vmatprep.mubr.msk.f32.mxu1 %vm653_vm0, %v9118_v53  ;;  %7749 = vmatpush3.bf16.msra.mxu1 %v7746_v44 }
0x249c   : > { %7751 = vmatprep.subr.bf16.mxu1 %v7750_v17 }
0x249f   : > { %7753 = vmatpush3.bf16.msra.mxu1 %v7750_v17  ;;  %v2895_v17 = vsel %vm1019_vm3, %v8869_v63, -inf }
0x24a2   : > { %7391 = vmatmul.mubr.msk.f32.vlgmr.msra.gmra.mrb[46].mxu1 %vm653_vm0, %v9189_v14 }
0x251c   : > { %v2605_v24 = vpop.xlane.xlu1 %2604 }
0x251d   : > { %8124 = vrcp.f32 %v2605_v24  ;;  %v3193_v24 = vsel %vm1019_vm3, %v8889_v52, -inf }
0x2520   : > { %v2608_v18 = vpop.xlane.xlu1 %2607 }
0x2521   : > { %8126 = vrcp.f32 %v2608_v18 }
0x2527   : > { %v8125_v45 = vpop.eup %8124 }
0x2528   : > { %v2610_v6 = vmul.f32 %v8125_v45, %v9091_v55 }
0x252a   : > { %v5191_v48 = vmax.f32 %v2610_v6, 1e-06 }
0x252b   : > { %v8127_v31 = vpop.eup %8126 }
0x252c   : > { %v2612_v26 = vmul.f32 %v8127_v31, %v9105_v32  ;;  %v5193_v46 = vmul.f32 %v5191_v48, %v5189_v15  ;;  %v9204_v32 = vld [vmem:[%s8454_s29] ss:$0 sm:$0xff]  ;;  %s9520_s29 = smov 88  }
0x252e   : > { %v5192_v47 = vmax.f32 %v2612_v26, 1e-06  ;;  %8128 = vlog2.f32 %v5193_v46 }
0x2530   : > { %v5194_v54 = vmul.f32 %v5192_v47, %v5190_v27 }
0x2532   : > { %8130 = vlog2.f32 %v5194_v54 }
0x2538   : > { %v8129_v58 = vpop.eup %8128 }
0x2539   : > { %v5196_v2 = vmul.f32 0.6931472, %v8129_v58 }
0x253c   : > { %v8131_v59 = vpop.eup %8130 }
0x253d   : > { %v5198_v28 = vmul.f32 0.6931472, %v8131_v59 }
0x2565   : > { %v7351_v57 = vpop.f32.mrb[42].mxu1 }
0x2566   : > { %v4802_v1 = vadd.f32 %v7351_v57, %v6704_v62  ;;  %v4796_v9 = vpop.f32.mrb[43].mxu1 }
0x2567   : > { %v4797_v13 = vadd.f32 %v6704_v62, %v4796_v9 }
0x2568   : > { %v4806_v37 = vmax.f32 %v4802_v1, 0.0 }
0x2569   : > { %v4805_v10 = vmax.f32 %v4797_v13, 0.0 }
0x256b   : > { %7368 = vmatprep.mubr.msk.f32.mxu0 %vm2090_vm5, %v4805_v10 }
0x256c   : > { %7369 = vmatmul.mubr.msk.f32.vlgmr.msra.gmra.mrb[34].mxu0 %vm2090_vm5, %v4806_v37 }
0x256d   : > { %v7381_v22 = vpop.f32.mrb[44].mxu1 }
0x256e   : > { %v9154_v36 = vadd.f32 %v7381_v22, %v6712_v21  ;;  %v5007_v25 = vpop.f32.mrb[45].mxu1 }
0x256f   : > { %v9156_v30 = vadd.f32 %v6712_v21, %v5007_v25 }
0x2571   : > { %7397 = vmatprep.mubr.msk.f32.mxu0 %vm915_vm1, %v9156_v30  ;;  %v9162_v33 = vpack.i.bf16 %v9154_v36, %v9156_v30 }
0x2573   : > { %7930 = vrot.lane.b32.xlu0 %v9162_v33, %s9519_s1 }
0x25e5   : > { %v7931_v12 = vpop.permute.xlu0 %7930 }
0x25e6   : > { %v7933_v38 = vunpack.i.h.bf16 %v7931_v12  ;;  %v7932_v16 = vunpack.i.l.bf16 %v7931_v12  ;;  %v2892_v12 = vsel %vm1019_vm3, %v8871_v35, -inf }
0x25e8   : > { %v7754_v50 = vpack.c.bf16 %v7933_v38, %v7932_v16  ;;  %v7392_v16 = vpop.f32.mrb[46].mxu1 }
0x25e9   : > { %v5091_v3 = vpop.f32.mrb[47].mxu1 }
0x25ea   : > { %7756 = vmatprep.subr.msk.bf16.mxu0 %vm8404_vm2, %v7754_v50 }
0x25eb   : > { %7759 = vmatpush3.bf16.xpose.msk.msra.mxu0 %vm8404_vm2, %v7754_v50  ;;  %v6715_v50 = vld [vmem:[%s9483_s11 + $0x348] ss:$0 sm:$0xff] }
0x25ec   : > { %v5097_v41 = vadd.f32 %v7392_v16, %v6715_v50  ;;  %v5092_v42 = vadd.f32 %v6715_v50, %v5091_v3 }
0x25ee   : > { %v7760_v44 = vpack.c.bf16 %v5097_v41, %v5092_v42  ;;  %v9223_v29 = vpack.i.bf16 %v5097_v41, %v5092_v42 }
0x25f0   : > { %7761 = vmatprep.subr.bf16.mxu1 %v7760_v44 }
0x25f1   : > { %7763 = vmatpush3.bf16.msra.mxu1 %v7760_v44 }
0x25f2   : > { %7398 = vmatmul.mubr.msk.f32.vlgmr.msra.gmra.mrb[36].mxu0 %vm915_vm1, %v9154_v36 }
0x263f   : > { %v9172_v39 = vpop.f32.mrb[34].mxu0 }
0x2640   : > { %v9174_v40 = vpop.f32.mrb[35].mxu0 }
0x26c5   : > { %v7399_v60 = vpop.f32.mrb[36].mxu0 }
0x26c6   : > { %v5180_v4 = vpop.f32.mrb[37].mxu0  ;;  %v5200_v55 = vadd.f32 %v7399_v60, %v5198_v28 }
0x26c7   : > { %v5199_v7 = vadd.f32 %v5196_v2, %v5180_v4 }
0x26c8   : > { %v5202_v8 = vadd.f32 %v9204_v32, %v5200_v55 }
0x26c9   : > { %v5201_v19 = vadd.f32 %v9204_v32, %v5199_v7 }
0x26ca   : > { %v5206_v62 = vsel %vm1019_vm3, %v5202_v8, -inf }
0x26cb   : > { %v5203_v11 = vsel %vm1019_vm3, %v5201_v19, -inf }
0x26cc   : > { %5204 = vmax.xlane.f32.xlu1 %v5203_v11 }
0x26d0   : > { %5207 = vmax.xlane.f32.xlu1 %v5206_v62  ;;  %v634_v62 = vld [vmem:[%s9197_s13 + $0x10] sm:$0xff] }
0x2759   : > { %v5205_v57 = vpop.xlane.xlu1 %5204 }
0x275a   : > { %v5209_v1 = vsub.f32 %v5201_v19, %v5205_v57  ;;  %v5397_v57 = vmax.f32 %v634_v62, 1e-06  ;;  %v3196_v62 = vsel %vm1019_vm3, %v8887_v43, -inf }
0x275c   : > { %v5211_v9 = vmul.f32 1.442695, %v5209_v1 }
0x275d   : > { %v5208_v13 = vpop.xlane.xlu1 %5207 }
0x275e   : > { %8132 = vpow2.f32 %v5211_v9  ;;  %v5210_v10 = vsub.f32 %v5202_v8, %v5208_v13 }
0x2760   : > { %v5213_v37 = vmul.f32 1.442695, %v5210_v10 }
0x2762   : > { %8134 = vpow2.f32 %v5213_v37  ;;  %v635_v37 = vld [vmem:[%s9197_s13 + $0x18] sm:$0xff] }
0x2768   : > { %v8133_v21 = vpop.eup %8132 }
0x2769   : > { %v5215_v22 = vsel %vm1019_vm3, %v8133_v21, 0.0 }
0x276a   : > { %5216 = vadd.xlane.f32.xlu0 %v5215_v22 }
0x276c   : > { %v8135_v25 = vpop.eup %8134 }
0x276d   : > { %v5218_v38 = vsel %vm1019_vm3, %v8135_v25, 0.0 }
0x276e   : > { %2893 = vmax.xlane.f32.xlu0 %v2892_v12  ;;  %5219 = vadd.xlane.f32.xlu1 %v5218_v38  ;;  %v5398_v12 = vmax.f32 %v635_v37, 1e-06 }
0x277f   : > { %7935 = vrot.lane.b32.xlu1 %v9162_v33, %s9520_s29 }
0x2783   : > { %5306 = vrot.lane.b32.xlu1 %v9156_v30, %s9512_s24 }
0x2787   : > { %5308 = vrot.lane.b32.xlu1 %v9154_v36, %s9512_s24 }
0x27ab   : > { %2896 = vmax.xlane.f32.xlu1 %v2895_v17 }
0x27bc   : > { %7945 = vrot.lane.b32.xlu1 %v9162_v33, %s9521_s17 }
0x27e0   : > { %3194 = vmax.xlane.f32.xlu1 %v3193_v24 }
0x27f7   : > { %v5217_v18 = vpop.xlane.xlu0 %5216 }
0x27f8   : > { %8136 = vrcp.f32 %v5217_v18 }
0x27fb   : > { %v2894_v45 = vpop.xlane.xlu0 %2893  ;;  %v5220_v31 = vpop.xlane.xlu1 %5219 }
0x27fc   : > { %v2898_v6 = vsub.f32 %v8871_v35, %v2894_v45  ;;  %8138 = vrcp.f32 %v5220_v31 }
0x27fe   : > { %v2900_v26 = vmul.f32 1.442695, %v2898_v6 }
0x27ff   : > { %v7936_v56 = vpop.permute.xlu1 %7935 }
0x2800   : > { %8140 = vpow2.f32 %v2900_v26  ;;  %v7938_v5 = vunpack.i.h.bf16 %v7936_v56  ;;  %v7937_v15 = vunpack.i.l.bf16 %v7936_v56 }
0x2802   : > { %v8137_v48 = vpop.eup %8136  ;;  %v7764_v27 = vpack.c.bf16 %v7938_v5, %v7937_v15 }
0x2803   : > { %v5222_v47 = vmul.f32 %v8137_v48, %v8133_v21  ;;  %v5307_v58 = vpop.permute.xlu1 %5306 }
0x2804   : > { %7766 = vmatprep.subr.msk.bf16.mxu1 %vm8404_vm2, %v7764_v27 }
0x2805   : > { %7404 = vmatprep.mubr.msk.f32.mxu1 %vm1019_vm3, %v5222_v47 }
0x2806   : > { %v8139_v46 = vpop.eup %8138 }
0x2807   : > { %v5224_v54 = vmul.f32 %v8139_v46, %v8135_v25  ;;  %v5309_v60 = vpop.permute.xlu1 %5308 }
0x2809   : > { %7405 = vmatmul.mubr.msk.f32.vlgmr.msra.gmra.mrb[48].mxu1 %vm1019_vm3, %v5224_v54 }
0x280a   : > { %v8141_v35 = vpop.eup %8140  ;;  %7769 = vmatpush3.bf16.xpose.msk.msra.mxu1 %vm8404_vm2, %v7764_v27  ;;  %7411 = vmatprep.mubr.msk.f32.mxu1 %vm915_vm1, %v5307_v58 }
0x280b   : > { %v2904_v59 = vsel %vm1019_vm3, %v8141_v35, 0.0 }
0x280c   : > { %2905 = vadd.xlane.f32.xlu0 %v2904_v59 }
0x2811   : > { %7412 = vmatmul.mubr.msk.f32.vlgmr.msra.gmra.mrb[50].mxu1 %vm915_vm1, %v5309_v60 }
0x2838   : > { %v2897_v28 = vpop.xlane.xlu1 %2896 }
0x2839   : > { %v2899_v2 = vsub.f32 %v8869_v63, %v2897_v28 }
0x283b   : > { %v2902_v4 = vmul.f32 1.442695, %v2899_v2 }
0x283c   : > { %v7946_v15 = vpop.permute.xlu1 %7945 }
0x283d   : > { %8142 = vpow2.f32 %v2902_v4  ;;  %v7948_v46 = vunpack.i.h.bf16 %v7946_v15  ;;  %v7947_v58 = vunpack.i.l.bf16 %v7946_v15 }
0x283f   : > { %v7774_v28 = vpack.c.bf16 %v7948_v46, %v7947_v58 }
0x2847   : > { %v8143_v55 = vpop.eup %8142 }
0x2848   : > { %v2907_v7 = vsel %vm1019_vm3, %v8143_v55, 0.0 }
0x2849   : > { %2908 = vadd.xlane.f32.xlu0 %v2907_v7 }
0x2899   : > { %v2906_v19 = vpop.xlane.xlu0 %2905 }
0x289a   : > { %8144 = vrcp.f32 %v2906_v19  ;;  %v3195_v19 = vpop.xlane.xlu1 %3194 }
0x28a4   : > { %v8145_v8 = vpop.eup %8144 }
0x28a5   : > { %v2911_v11 = vmul.f32 %v8145_v8, %v8141_v35  ;;  %v3199_v8 = vsub.f32 %v8889_v52, %v3195_v19 }
0x28a7   : > { %v5399_v1 = vmax.f32 %v2911_v11, 1e-06  ;;  %v3201_v11 = vmul.f32 1.442695, %v3199_v8 }
0x28a9   : > { %v5401_v9 = vmul.f32 %v5399_v1, %v5397_v57 }
0x28ab   : > { %8146 = vlog2.f32 %v5401_v9 }
0x28b5   : > { %v8147_v21 = vpop.eup %8146 }
0x28b6   : > { %v5404_v50 = vmul.f32 0.6931472, %v8147_v21 }
0x28d6   : > { %v2909_v13 = vpop.xlane.xlu0 %2908 }
0x28d7   : > { %8148 = vrcp.f32 %v2909_v13 }
0x28dc   : > { %v9244_v10 = vpop.f32.mrb[48].mxu1 }
0x28dd   : > { %v9246_v63 = vpop.f32.mrb[49].mxu1 }
0x28e1   : > { %v8149_v22 = vpop.eup %8148 }
0x28e2   : > { %v2913_v25 = vmul.f32 %v8149_v22, %v8143_v55 }
0x28e4   : > { %v7413_v38 = vpop.f32.mrb[50].mxu1  ;;  %v5400_v16 = vmax.f32 %v2913_v25, 1e-06 }
0x28e5   : > { %v5388_v41 = vpop.f32.mrb[51].mxu1 }
0x28e6   : > { %v5402_v3 = vmul.f32 %v5400_v16, %v5398_v12  ;;  %v5407_v42 = vadd.f32 %v5404_v50, %v5388_v41 }
0x28e8   : > { %8150 = vlog2.f32 %v5402_v3  ;;  %v5409_v44 = vadd.f32 %v9204_v32, %v5407_v42 }
0x28ea   : > { %v5411_v17 = vsel %vm1019_vm3, %v5409_v44, -inf }
0x28eb   : > { %5412 = vmax.xlane.f32.xlu0 %v5411_v17 }
0x28f2   : > { %v8151_v24 = vpop.eup %8150 }
0x28f3   : > { %v5406_v18 = vmul.f32 0.6931472, %v8151_v24  ;;  %v636_v24 = vld [vmem:[%s9197_s13 + $0x20] sm:$0xff] }
0x28f5   : > { %v5408_v45 = vadd.f32 %v7413_v38, %v5406_v18  ;;  %v5613_v18 = vmax.f32 %v636_v24, 1e-06 }
0x28f7   : > { %v5410_v31 = vadd.f32 %v9204_v32, %v5408_v45 }
0x28f9   : > { %v5414_v6 = vsel %vm1019_vm3, %v5410_v31, -inf }
0x28fa   : > { %5415 = vmax.xlane.f32.xlu0 %v5414_v6 }
0x2910   : > { %7940 = vrot.lane.b32.xlu0 %v9223_v29, %s9512_s24 }
0x2978   : > { %v5413_v26 = vpop.xlane.xlu0 %5412 }
0x2979   : > { %v5417_v56 = vsub.f32 %v5409_v44, %v5413_v26  ;;  %v637_v26 = vld [vmem:[%s9197_s13 + $0x28] sm:$0xff] }
0x297b   : > { %v5419_v27 = vmul.f32 1.442695, %v5417_v56 }
0x2987   : > { %v5416_v5 = vpop.xlane.xlu0 %5415 }
0x2988   : > { %v5418_v48 = vsub.f32 %v5410_v31, %v5416_v5 }
0x298a   : > { %v5421_v47 = vmul.f32 1.442695, %v5418_v48  ;;  %v5614_v48 = vmax.f32 %v637_v26, 1e-06 }
0x298b   : > { %v7941_v54 = vpop.permute.xlu0 %7940 }
0x298c   : > { %8152 = vpow2.f32 %v5421_v47  ;;  %v7943_v35 = vunpack.i.h.bf16 %v7941_v54  ;;  %v7942_v59 = vunpack.i.l.bf16 %v7941_v54 }
0x298d   : > { %8154 = vpow2.f32 %v5419_v27 }
0x298e   : > { %v7770_v60 = vpack.c.bf16 %v7943_v35, %v7942_v59  ;;  %8156 = vpow2.f32 %v3201_v11 }
0x2990   : > { %7771 = vmatprep.subr.bf16.mxu0 %v7770_v60 }
0x2991   : > { %7773 = vmatpush3.bf16.msra.mxu0 %v7770_v60 }
0x2992   : > { %7776 = vmatprep.subr.msk.bf16.mxu0 %vm8404_vm2, %v7774_v28 }
0x2996   : > { %v8153_v2 = vpop.eup %8152 }
0x2997   : > { %v5426_v4 = vsel %vm1019_vm3, %v8153_v2, 0.0  ;;  %v8155_v55 = vpop.eup %8154 }
0x2998   : > { %5427 = vadd.xlane.f32.xlu0 %v5426_v4  ;;  %v5423_v7 = vsel %vm1019_vm3, %v8155_v55, 0.0  ;;  %v8157_v57 = vpop.eup %8156 }
0x2999   : > { %v3205_v1 = vsel %vm1019_vm3, %v8157_v57, 0.0 }
0x299c   : > { %5424 = vadd.xlane.f32.xlu0 %v5423_v7 }
0x29b2   : > { %5522 = vrot.lane.b32.xlu0 %v9156_v30, %s9513_s27 }
0x29b6   : > { %5524 = vrot.lane.b32.xlu0 %v9154_v36, %s9513_s27 }
0x29d5   : > { %3197 = vmax.xlane.f32.xlu0 %v3196_v62 }
0x29d9   : > { %3206 = vadd.xlane.f32.xlu0 %v3205_v1 }
0x2a25   : > { %v5428_v9 = vpop.xlane.xlu0 %5427 }
0x2a26   : > { %8158 = vrcp.f32 %v5428_v9 }
0x2a29   : > { %v5425_v13 = vpop.xlane.xlu0 %5424 }
0x2a2a   : > { %8160 = vrcp.f32 %v5425_v13 }
0x2a2d   : > { %v5523_v52 = vpop.permute.xlu0 %5522 }
0x2a30   : > { %v8159_v37 = vpop.eup %8158 }
0x2a31   : > { %v5432_v25 = vmul.f32 %v8159_v37, %v8153_v2  ;;  %v5525_v12 = vpop.permute.xlu0 %5524 }
0x2a34   : > { %v8161_v21 = vpop.eup %8160 }
0x2a35   : > { %v5430_v22 = vmul.f32 %v8161_v21, %v8155_v55 }
0x2a37   : > { %7418 = vmatprep.mubr.msk.f32.mxu0 %vm1019_vm3, %v5430_v22 }
0x2a38   : > { %7419 = vmatmul.mubr.msk.f32.vlgmr.msra.gmra.mrb[38].mxu0 %vm1019_vm3, %v5432_v25  ;;  %v3497_v25 = vsel %vm1019_vm3, %v8925_v61, -inf }
0x2a39   : > { %7779 = vmatpush3.bf16.xpose.msk.msra.mxu0 %vm8404_vm2, %v7774_v28  ;;  %7425 = vmatprep.mubr.msk.f32.mxu0 %vm915_vm1, %v5523_v52  ;;  %v3494_v52 = vsel %vm1019_vm3, %v8927_v0, -inf }
0x2a40   : > { %7426 = vmatmul.mubr.msk.f32.vlgmr.msra.gmra.mrb[40].mxu0 %vm915_vm1, %v5525_v12 }
0x2a62   : > { %v3198_v38 = vpop.xlane.xlu0 %3197 }
0x2a63   : > { %v3200_v16 = vsub.f32 %v8887_v43, %v3198_v38 }
0x2a65   : > { %v3203_v50 = vmul.f32 1.442695, %v3200_v16 }
0x2a66   : > { %v3207_v42 = vpop.xlane.xlu0 %3206 }
0x2a67   : > { %8162 = vpow2.f32 %v3203_v50 }
0x2a68   : > { %8164 = vrcp.f32 %v3207_v42 }
0x2a71   : > { %v8163_v41 = vpop.eup %8162 }
0x2a72   : > { %v3208_v3 = vsel %vm1019_vm3, %v8163_v41, 0.0  ;;  %v8165_v44 = vpop.eup %8164 }
0x2a73   : > { %3209 = vadd.xlane.f32.xlu1 %v3208_v3  ;;  %v3212_v17 = vmul.f32 %v8165_v44, %v8157_v57 }
0x2a75   : > { %v5615_v45 = vmax.f32 %v3212_v17, 1e-06 }
0x2a77   : > { %v5617_v6 = vmul.f32 %v5615_v45, %v5613_v18 }
0x2b00   : > { %v3210_v31 = vpop.xlane.xlu1 %3209 }
0x2b01   : > { %8166 = vrcp.f32 %v3210_v31 }
0x2b02   : > { %8168 = vlog2.f32 %v5617_v6 }
0x2b0b   : > { %v8167_v43 = vpop.eup %8166  ;;  %v9277_v56 = vpop.f32.mrb[38].mxu0 }
0x2b0c   : > { %v9279_v5 = vpop.f32.mrb[39].mxu0  ;;  %v3214_v15 = vmul.f32 %v8167_v43, %v8163_v41  ;;  %v8169_v47 = vpop.eup %8168 }
0x2b0d   : > { %v5620_v58 = vmul.f32 0.6931472, %v8169_v47 }
0x2b0e   : > { %v5616_v27 = vmax.f32 %v3214_v15, 1e-06 }
0x2b10   : > { %v5618_v46 = vmul.f32 %v5616_v27, %v5614_v48 }
0x2b12   : > { %8170 = vlog2.f32 %v5618_v46 }
0x2b13   : > { %v7427_v54 = vpop.f32.mrb[40].mxu0 }
0x2b14   : > { %v5604_v35 = vpop.f32.mrb[41].mxu0 }
0x2b15   : > { %v5623_v59 = vadd.f32 %v5620_v58, %v5604_v35  ;;  %v639_v35 = vld [vmem:[%s9197_s13 + $0x38] sm:$0xff] }
0x2b17   : > { %v5625_v60 = vadd.f32 %v9204_v32, %v5623_v59 }
0x2b19   : > { %v5627_v28 = vsel %vm1019_vm3, %v5625_v60, -inf }
0x2b1a   : > { %5628 = vmax.xlane.f32.xlu0 %v5627_v28  ;;  %v5828_v28 = vmax.f32 %v639_v35, 1e-06 }
0x2b1c   : > { %v8171_v2 = vpop.eup %8170 }
0x2b1d   : > { %v5622_v4 = vmul.f32 0.6931472, %v8171_v2 }
0x2b1f   : > { %v5624_v55 = vadd.f32 %v7427_v54, %v5622_v4  ;;  %v638_v4 = vld [vmem:[%s9197_s13 + $0x30] sm:$0xff]  ;;  %s601_s13 = scalar_lea.vmem %s9484_s12, %s6768_s2 }
0x2b21   : > { %v5626_v7 = vadd.f32 %v9204_v32, %v5624_v55 }
0x2b23   : > { %v5630_v19 = vsel %vm1019_vm3, %v5626_v7, -inf }
0x2b24   : > { %5631 = vmax.xlane.f32.xlu1 %v5630_v19 }
0x2ba7   : > { %v5629_v8 = vpop.xlane.xlu0 %5628 }
0x2ba8   : > { %v5633_v11 = vsub.f32 %v5625_v60, %v5629_v8 }
0x2baa   : > { %v5635_v62 = vmul.f32 1.442695, %v5633_v11  ;;  %v5827_v11 = vmax.f32 %v638_v4, 1e-06 }
0x2bac   : > { %8172 = vpow2.f32 %v5635_v62 }
0x2bb1   : > { %v5632_v57 = vpop.xlane.xlu1 %5631 }
0x2bb2   : > { %v5634_v1 = vsub.f32 %v5626_v7, %v5632_v57 }
0x2bb4   : > { %v5637_v9 = vmul.f32 1.442695, %v5634_v1 }
0x2bb6   : > { %v8173_v13 = vpop.eup %8172  ;;  %8174 = vpow2.f32 %v5637_v9 }
0x2bb7   : > { %v5639_v37 = vsel %vm1019_vm3, %v8173_v13, 0.0 }
0x2bb8   : > { %5640 = vadd.xlane.f32.xlu0 %v5639_v37 }
0x2bc0   : > { %v8175_v21 = vpop.eup %8174 }
0x2bc1   : > { %v5642_v22 = vsel %vm1019_vm3, %v8175_v21, 0.0 }
0x2bc2   : > { %5643 = vadd.xlane.f32.xlu1 %v5642_v22 }
0x2bce   : > { %7950 = vrot.lane.b32.xlu0 %v9223_v29, %s9513_s27 }
0x2bd2   : > { %5738 = vrot.lane.b32.xlu0 %v9154_v36, %s9514_s28 }
0x2bd3   : > { %7955 = vrot.lane.b32.xlu1 %v9162_v33, %s9515_s23 }
0x2bd7   : > { %5736 = vrot.lane.b32.xlu1 %v9156_v30, %s9514_s28 }
0x2bf1   : > { %3498 = vmax.xlane.f32.xlu0 %v3497_v25 }
0x2bfb   : > { %3495 = vmax.xlane.f32.xlu1 %v3494_v52 }
0x2c45   : > { %v5641_v12 = vpop.xlane.xlu0 %5640 }
0x2c46   : > { %8176 = vrcp.f32 %v5641_v12 }
0x2c49   : > { %v7951_v38 = vpop.permute.xlu0 %7950 }
0x2c4a   : > { %v7953_v16 = vunpack.i.h.bf16 %v7951_v38  ;;  %v7952_v50 = vunpack.i.l.bf16 %v7951_v38 }
0x2c4c   : > { %v7780_v36 = vpack.c.bf16 %v7953_v16, %v7952_v50 }
0x2c4d   : > { %v5739_v31 = vpop.permute.xlu0 %5738 }
0x2c4e   : > { %7781 = vmatprep.subr.bf16.mxu1 %v7780_v36 }
0x2c4f   : > { %7783 = vmatpush3.bf16.msra.mxu1 %v7780_v36  ;;  %v5644_v33 = vpop.xlane.xlu1 %5643 }
0x2c50   : > { %v8177_v41 = vpop.eup %8176  ;;  %8178 = vrcp.f32 %v5644_v33 }
0x2c51   : > { %v5646_v30 = vmul.f32 %v8177_v41, %v8173_v13 }
0x2c53   : > { %7432 = vmatprep.mubr.msk.f32.mxu1 %vm1019_vm3, %v5646_v30  ;;  %v7956_v3 = vpop.permute.xlu1 %7955 }
0x2c54   : > { %v7958_v42 = vunpack.i.h.bf16 %v7956_v3  ;;  %v7957_v44 = vunpack.i.l.bf16 %v7956_v3 }
0x2c56   : > { %v7784_v17 = vpack.c.bf16 %v7958_v42, %v7957_v44 }
0x2c57   : > { %v5737_v45 = vpop.permute.xlu1 %5736 }
0x2c58   : > { %7786 = vmatprep.subr.msk.bf16.mxu1 %vm8404_vm2, %v7784_v17 }
0x2c5a   : > { %v8179_v24 = vpop.eup %8178 }
0x2c5b   : > { %v5648_v18 = vmul.f32 %v8179_v24, %v8175_v21 }
0x2c5d   : > { %7433 = vmatmul.mubr.msk.f32.vlgmr.msra.gmra.mrb[52].mxu1 %vm1019_vm3, %v5648_v18 }
0x2c5e   : > { %7789 = vmatpush3.bf16.xpose.msk.msra.mxu1 %vm8404_vm2, %v7784_v17  ;;  %7439 = vmatprep.mubr.msk.f32.mxu1 %vm915_vm1, %v5737_v45 }
0x2c65   : > { %7440 = vmatmul.mubr.msk.f32.vlgmr.msra.gmra.mrb[54].mxu1 %vm915_vm1, %v5739_v31 }
0x2c7e   : > { %v3499_v6 = vpop.xlane.xlu0 %3498 }
0x2c7f   : > { %v3501_v26 = vsub.f32 %v8925_v61, %v3499_v6 }
0x2c81   : > { %v3504_v43 = vmul.f32 1.442695, %v3501_v26 }
0x2c83   : > { %8180 = vpow2.f32 %v3504_v43 }
0x2c88   : > { %v3496_v15 = vpop.xlane.xlu1 %3495 }
0x2c89   : > { %v3500_v48 = vsub.f32 %v8927_v0, %v3496_v15 }
0x2c8b   : > { %v3502_v27 = vmul.f32 1.442695, %v3500_v48 }
0x2c8d   : > { %v8181_v47 = vpop.eup %8180  ;;  %8182 = vpow2.f32 %v3502_v27  ;;  %v5981_v27 = vld [vmem:[%s9483_s11 + $0x2c8] sm:$0xff] }
0x2c8e   : > { %v3509_v34 = vsel %vm1019_vm3, %v8181_v47, 0.0 }
0x2c8f   : > { %3510 = vadd.xlane.f32.xlu1 %v3509_v34 }
0x2c97   : > { %v8183_v46 = vpop.eup %8182 }
0x2c98   : > { %v3506_v54 = vsel %vm1019_vm3, %v8183_v46, 0.0 }
0x2c99   : > { %3507 = vadd.xlane.f32.xlu0 %v3506_v54 }
0x2d1c   : > { %v3511_v58 = vpop.xlane.xlu1 %3510 }
0x2d1d   : > { %8184 = vrcp.f32 %v3511_v58 }
0x2d26   : > { %v3508_v61 = vpop.xlane.xlu0 %3507 }
0x2d27   : > { %v8185_v59 = vpop.eup %8184  ;;  %8186 = vrcp.f32 %v3508_v61 }
0x2d28   : > { %v3515_v60 = vmul.f32 %v8185_v59, %v8181_v47  ;;  %v5982_v47 = vld [vmem:[%s9483_s11 + $0x2d0] sm:$0xff] }
0x2d2a   : > { %v5830_v0 = vmax.f32 %v3515_v60, 1e-06 }
0x2d2c   : > { %v5832_v2 = vmul.f32 %v5830_v0, %v5828_v28 }
0x2d2e   : > { %8188 = vlog2.f32 %v5832_v2 }
0x2d30   : > { %v7434_v55 = vpop.f32.mrb[52].mxu1 }
0x2d31   : > { %v8187_v7 = vpop.eup %8186  ;;  %v5727_v19 = vpop.f32.mrb[53].mxu1 }
0x2d32   : > { %v3513_v8 = vmul.f32 %v8187_v7, %v8183_v46  ;;  %v5983_v46 = vld [vmem:[%s9483_s11 + $0x2d8] sm:$0xff] }
0x2d33   : > { %v7798_v54 = vpack.c.bf16 %v5983_v46, %v5982_v47 }
0x2d34   : > { %v5829_v62 = vmax.f32 %v3513_v8, 1e-06 }
0x2d36   : > { %v5831_v57 = vmul.f32 %v5829_v62, %v5827_v11 }
0x2d38   : > { %v8189_v1 = vpop.eup %8188  ;;  %v7441_v9 = vpop.f32.mrb[54].mxu1  ;;  %8190 = vlog2.f32 %v5831_v57 }
0x2d39   : > { %v5836_v13 = vmul.f32 0.6931472, %v8189_v1  ;;  %v5818_v37 = vpop.f32.mrb[55].mxu1 }
0x2d3b   : > { %v5838_v21 = vadd.f32 %v7441_v9, %v5836_v13 }
0x2d3d   : > { %v5840_v22 = vadd.f32 %v9204_v32, %v5838_v21 }
0x2d3f   : > { %v5844_v25 = vsel %vm1019_vm3, %v5840_v22, -inf }
0x2d40   : > { %5845 = vmax.xlane.f32.xlu1 %v5844_v25 }
0x2d42   : > { %v8191_v52 = vpop.eup %8190 }
0x2d43   : > { %v5834_v12 = vmul.f32 0.6931472, %v8191_v52 }
0x2d45   : > { %v5837_v38 = vadd.f32 %v5834_v12, %v5818_v37 }
0x2d47   : > { %v5839_v16 = vadd.f32 %v9204_v32, %v5837_v38 }
0x2d49   : > { %v5841_v50 = vsel %vm1019_vm3, %v5839_v16, -inf }
0x2d4a   : > { %5842 = vmax.xlane.f32.xlu0 %v5841_v50 }
0x2dcd   : > { %v5846_v36 = vpop.xlane.xlu1 %5845 }
0x2dce   : > { %v5848_v33 = vsub.f32 %v5840_v22, %v5846_v36 }
0x2dd0   : > { %v5851_v41 = vmul.f32 1.442695, %v5848_v33 }
0x2dd2   : > { %8192 = vpow2.f32 %v5851_v41 }
0x2dd7   : > { %v5843_v30 = vpop.xlane.xlu0 %5842 }
0x2dd8   : > { %v5847_v3 = vsub.f32 %v5839_v16, %v5843_v30 }
0x2dda   : > { %v5849_v42 = vmul.f32 1.442695, %v5847_v3 }
0x2ddc   : > { %v8193_v44 = vpop.eup %8192  ;;  %8194 = vpow2.f32 %v5849_v42 }
0x2ddd   : > { %v5856_v17 = vsel %vm1019_vm3, %v8193_v44, 0.0 }
0x2dde   : > { %5857 = vadd.xlane.f32.xlu1 %v5856_v17 }
0x2de6   : > { %v8195_v24 = vpop.eup %8194 }
0x2de7   : > { %v5853_v18 = vsel %vm1019_vm3, %v8195_v24, 0.0 }
0x2de8   : > { %5854 = vadd.xlane.f32.xlu0 %v5853_v18 }
0x2def   : > { %5952 = vrot.lane.b32.xlu1 %v9279_v5, %s9516_s18 }
0x2df3   : > { %5954 = vrot.lane.b32.xlu1 %v9277_v56, %s9516_s18 }
0x2df7   : > { %5962 = vrot.lane.b32.xlu1 %v7434_v55, %s9517_s30 }
0x2dfe   : > { %7960 = vrot.lane.b32.xlu0 %v9223_v29, %s9514_s28  ;;  %v5980_v29 = vld [vmem:[%s9483_s11 + $0x2c0] sm:$0xff] }
0x2dff   : > { %v7794_v34 = vpack.c.bf16 %v5981_v27, %v5980_v29  ;;  %v6707_v27 = vld [vmem:[%s9483_s11 + $0x268] ss:$0 sm:$0xff] }
0x2e00   : > { %v4884_v46 = vadd.f32 %v6707_v27, %v9174_v40 }
0x2e02   : > { %5960 = vrot.lane.b32.xlu0 %v5727_v19, %s9517_s30 }
0x2e6b   : > { %v5858_v32 = vpop.xlane.xlu1 %5857 }
0x2e6c   : > { %8196 = vrcp.f32 %v5858_v32  ;;  %v6746_v32 = vld [vmem:[%s9483_s11 + $0x360] ss:$0 sm:$0xff] }
0x2e6f   : > { %v5953_v61 = vpop.permute.xlu1 %5952 }
0x2e70   : > { %v5974_v0 = vsel %vm915_vm1, %v9246_v63, %v5953_v61  ;;  %v6742_v63 = vld [vmem:[%s9483_s11 + $0x350] ss:$0 sm:$0xff]  ;;  %v4889_v61 = vadd.f32 %v9172_v39, %v6707_v27 }
0x2e73   : > { %v5955_v59 = vpop.permute.xlu1 %5954 }
0x2e74   : > { %v5975_v4 = vsel %vm915_vm1, %v9244_v10, %v5955_v59  ;;  %v9378_v59 = vadd.f32 %v4884_v46, %v9101_v49  ;;  %v6154_v49 = vld [vmem:[%s9483_s11 + $0x2e0] sm:$0xff] }
0x2e75   : > { %v5855_v45 = vpop.xlane.xlu0 %5854 }
0x2e76   : > { %8198 = vrcp.f32 %v5855_v45  ;;  %v8197_v5 = vpop.eup %8196  ;;  %v4894_v40 = vsel %vm653_vm0, %v9378_v59, 0.0 }
0x2e77   : > { %v5862_v48 = vmul.f32 %v8197_v5, %v8193_v44  ;;  %v5963_v60 = vpop.permute.xlu1 %5962 }
0x2e78   : > { %v5977_v19 = vsel %vm1019_vm3, %v5975_v4, %v5963_v60 }
0x2e79   : > { %v7961_v31 = vpop.permute.xlu0 %7960 }
0x2e7a   : > { %v7963_v6 = vunpack.i.h.bf16 %v7961_v31  ;;  %v7962_v26 = vunpack.i.l.bf16 %v7961_v31 }
0x2e7c   : > { %v7790_v43 = vpack.c.bf16 %v7963_v6, %v7962_v26 }
0x2e7d   : > { %v5961_v28 = vpop.permute.xlu0 %5960 }
0x2e7e   : > { %7791 = vmatprep.subr.bf16.mxu0 %v7790_v43  ;;  %v5976_v55 = vsel %vm1019_vm3, %v5974_v0, %v5961_v28  ;;  %v9382_v0 = vadd.f32 %v4889_v61, %v9103_v51  ;;  %v6155_v51 = vld [vmem:[%s9483_s11 + $0x2e8] sm:$0xff] }
0x2e7f   : > { %7793 = vmatpush3.bf16.msra.mxu0 %v7790_v43  ;;  %v7802_v4 = vpack.c.bf16 %v6155_v51, %v6154_v49 }
0x2e80   : > { %v8199_v15 = vpop.eup %8198  ;;  %7795 = vmatprep.subr.bf16.mxu0 %v7794_v34  ;;  %v4897_v39 = vsel %vm653_vm0, %v9382_v0, 0.0 }
0x2e81   : > { %v5860_v56 = vmul.f32 %v8199_v15, %v8195_v24  ;;  %v6745_v24 = vld [vmem:[%s9483_s11 + $0x358] ss:$0 sm:$0xff]  ;;  %7803 = vmatprep.subr.bf16.mxu1 %v7802_v4 }
0x2e82   : > { %7805 = vmatpush3.bf16.msra.mxu1 %v7802_v4 }
0x2e83   : > { %7446 = vmatprep.mubr.msk.f32.mxu0 %vm1019_vm3, %v5860_v56 }
0x2e84   : > { %7447 = vmatmul.mubr.msk.f32.vlgmr.msra.gmra.mrb[42].mxu0 %vm1019_vm3, %v5862_v48 }
0x2e85   : > { %7797 = vmatpush3.bf16.msra.mxu0 %v7794_v34 }
0x2e86   : > { %7799 = vmatprep.subr.bf16.mxu0 %v7798_v54 }
0x2e89   : > { %7801 = vmatpush3.bf16.msra.mxu0 %v7798_v54 }
0x2f57   : > { %v7448_v58 = vpop.f32.mrb[42].mxu0 }
0x2f58   : > { %5970 = vrot.lane.b32.xlu1 %v7448_v58, %s9518_s16  ;;  %v5941_v35 = vpop.f32.mrb[43].mxu0 }
0x2f59   : > { %5968 = vrot.lane.b32.xlu0 %v5941_v35, %s9518_s16 }
0x2fca   : > { %v5971_v2 = vpop.permute.xlu1 %5970 }
0x2fcb   : > { %v5969_v7 = vpop.permute.xlu0 %5968  ;;  %v5979_v11 = vsel %vm1783_vm4, %v5977_v19, %v5971_v2 }
0x2fcc   : > { %v5978_v8 = vsel %vm1783_vm4, %v5976_v55, %v5969_v7  ;;  %v6156_v55 = vld [vmem:[%s9483_s11 + $0x2f0] sm:$0xff]  ;;  %v6157_v7 = vld [vmem:[%s9483_s11 + $0x2f8] sm:$0xff] }
0x2fcd   : > { %7457 = vmatprep.mubr.msk.f32.mxu0 %vm653_vm0, %v5978_v8  ;;  %v7806_v19 = vpack.c.bf16 %v6157_v7, %v6156_v55  ;;  %v6159_v8 = vld [vmem:[%s9483_s11 + $0x300] sm:$0xff] }
0x2fce   : > { %7458 = vmatmul.mubr.msk.f32.vlgmr.msra.gmra.mrb[44].mxu0 %vm653_vm0, %v5979_v11  ;;  %v6160_v11 = vld [vmem:[%s9483_s11 + $0x308] sm:$0xff] }
0x2fcf   : > { %7807 = vmatprep.subr.bf16.mxu1 %v7806_v19 }
0x2fd0   : > { %7809 = vmatpush3.bf16.msra.mxu1 %v7806_v19 }
0x30a1   : > { %v7459_v62 = vpop.f32.mrb[44].mxu0 }
0x30a2   : > { %v6067_v57 = vadd.f32 %v7459_v62, %v6742_v63  ;;  %v6061_v10 = vpop.f32.mrb[45].mxu0  ;;  %v7810_v62 = vpack.c.bf16 %v6160_v11, %v6159_v8 }
0x30a3   : > { %v6062_v1 = vadd.f32 %v6742_v63, %v6061_v10  ;;  %v6161_v63 = vld [vmem:[%s9483_s11 + $0x310] sm:$0xff] }
0x30a4   : > { %v6071_v9 = vadd.f32 %v6067_v57, %v8384_v23  ;;  %v6162_v57 = vld [vmem:[%s9483_s11 + $0x318] sm:$0xff]  ;;  %7811 = vmatprep.subr.bf16.mxu0 %v7810_v62 }
0x30a5   : > { %v6070_v13 = vadd.f32 %v6062_v1, %v8376_v20  ;;  %v7814_v10 = vpack.c.bf16 %v6162_v57, %v6161_v63  ;;  %v6163_v1 = vld [vmem:[%s9483_s11 + $0x320] sm:$0xff]  ;;  %7813 = vmatpush3.bf16.msra.mxu0 %v7810_v62 }
0x30a6   : > { %v6077_v37 = vsel %vm653_vm0, %v6071_v9, 0.0 }
0x30a7   : > { %6078 = vadd.xlane.f32.xlu1 %v6077_v37  ;;  %v6074_v21 = vsel %vm653_vm0, %v6070_v13, 0.0  ;;  %7815 = vmatprep.subr.bf16.mxu0 %v7814_v10 }
0x30a8   : > { %6075 = vadd.xlane.f32.xlu0 %v6074_v21 }
0x30a9   : > { %7817 = vmatpush3.bf16.msra.mxu0 %v7814_v10 }
0x3134   : > { %v6079_v22 = vpop.xlane.xlu1 %6078 }
0x3135   : > { %v6081_v25 = vmul.f32 0.03125, %v6079_v22  ;;  %v6076_v52 = vpop.xlane.xlu0 %6075 }
0x3136   : > { %v6080_v12 = vmul.f32 0.03125, %v6076_v52 }
0x3137   : > { %v6083_v38 = vsub.f32 %v6071_v9, %v6081_v25  ;;  %v6164_v9 = vld [vmem:[%s9483_s11 + $0x328] sm:$0xff] }
0x3138   : > { %v6082_v16 = vsub.f32 %v6070_v13, %v6080_v12  ;;  %v7818_v13 = vpack.c.bf16 %v6164_v9, %v6163_v1  ;;  %v6710_v9 = vld [vmem:[%s9483_s11 + $0x270] ss:$0 sm:$0xff] }
0x3139   : > { %v6085_v33 = vmul.f32 %v6083_v38, %v6083_v38 }
0x313a   : > { %v6084_v50 = vmul.f32 %v6082_v16, %v6082_v16  ;;  %7819 = vmatprep.subr.bf16.mxu0 %v7818_v13 }
0x313b   : > { %v6089_v23 = vsel %vm653_vm0, %v6085_v33, 0.0  ;;  %7821 = vmatpush3.bf16.msra.mxu0 %v7818_v13 }
0x313c   : > { %v6086_v36 = vsel %vm653_vm0, %v6084_v50, 0.0 }
0x313d   : > { %6087 = vadd.xlane.f32.xlu0 %v6086_v36  ;;  %v6748_v36 = vld [vmem:[%s9483_s11 + $0x370] ss:$0 sm:$0xff] }
0x3141   : > { %6090 = vadd.xlane.f32.xlu0 %v6089_v23 }
0x31ca   : > { %v6088_v20 = vpop.xlane.xlu0 %6087 }
0x31cb   : > { %v6092_v41 = vmul.f32 0.03125, %v6088_v20 }
0x31cd   : > { %v6094_v30 = vadd.f32 1e-05, %v6092_v41 }
0x31ce   : > { %v6091_v3 = vpop.xlane.xlu0 %6090 }
0x31cf   : > { %8200 = vrsqrt.f32 %v6094_v30  ;;  %v6093_v42 = vmul.f32 0.03125, %v6091_v3 }
0x31d1   : > { %v6095_v44 = vadd.f32 1e-05, %v6093_v42  ;;  %v6165_v42 = vld [vmem:[%s9483_s11 + $0x330] sm:$0xff] }
0x31d3   : > { %8202 = vrsqrt.f32 %v6095_v44  ;;  %v6166_v44 = vld [vmem:[%s9483_s11 + $0x338] sm:$0xff] }
0x31d9   : > { %v8201_v17 = vpop.eup %8200 }
0x31da   : > { %v6098_v18 = vmul.f32 %v8201_v17, %v6082_v16  ;;  %v6747_v16 = vld [vmem:[%s9483_s11 + $0x368] ss:$0 sm:$0xff]  ;;  %v7822_v17 = vpack.c.bf16 %v6166_v44, %v6165_v42  ;;  %v6756_v44 = vld [vmem:[%s9483_s11 + $0x390] ss:$0 sm:$0xff] }
0x31dc   : > { %v6104_v45 = vmul.f32 %v6745_v24, %v6098_v18  ;;  %7823 = vmatprep.subr.bf16.mxu0 %v7822_v17 }
0x31dd   : > { %v8203_v31 = vpop.eup %8202  ;;  %7825 = vmatpush3.bf16.msra.mxu0 %v7822_v17 }
0x31de   : > { %v6110_v6 = vadd.f32 %v6746_v32, %v6104_v45  ;;  %v6099_v26 = vmul.f32 %v8203_v31, %v6083_v38 }
0x31e0   : > { %v6112_v43 = vadd.f32 %v9118_v53, %v6110_v6  ;;  %v6105_v5 = vmul.f32 %v6745_v24, %v6099_v26  ;;  %v6749_v24 = vld [vmem:[%s9483_s11 + $0x378] ss:$0 sm:$0xff] }
0x31e2   : > { %v6116_v15 = vsel %vm653_vm0, %v6112_v43, 0.0  ;;  %v6111_v56 = vadd.f32 %v6746_v32, %v6105_v5 }
0x31e3   : > { %6117 = vadd.xlane.f32.xlu1 %v6116_v15 }
0x31e4   : > { %v6113_v48 = vadd.f32 %v9189_v14, %v6111_v56 }
0x31e6   : > { %v6119_v29 = vsel %vm653_vm0, %v6113_v48, 0.0 }
0x31e7   : > { %6120 = vadd.xlane.f32.xlu0 %v6119_v29 }
0x3270   : > { %v6118_v47 = vpop.xlane.xlu1 %6117 }
0x3271   : > { %v6122_v34 = vmul.f32 0.03125, %v6118_v47 }
0x3273   : > { %v6124_v54 = vsub.f32 %v6112_v43, %v6122_v34 }
0x3274   : > { %v6121_v53 = vpop.xlane.xlu0 %6120 }
0x3275   : > { %v6123_v58 = vmul.f32 0.03125, %v6121_v53  ;;  %v6126_v35 = vmul.f32 %v6124_v54, %v6124_v54 }
0x3277   : > { %v6125_v14 = vsub.f32 %v6113_v48, %v6123_v58  ;;  %v6128_v60 = vsel %vm653_vm0, %v6126_v35, 0.0  ;;  %v6752_v48 = vld [vmem:[%s9483_s11 + $0x380] ss:$0 sm:$0xff] }
0x3278   : > { %6129 = vadd.xlane.f32.xlu1 %v6128_v60 }
0x3279   : > { %v6127_v28 = vmul.f32 %v6125_v14, %v6125_v14 }
0x327b   : > { %v6131_v2 = vsel %vm653_vm0, %v6127_v28, 0.0 }
0x327c   : > { %4895 = vadd.xlane.f32.xlu1 %v4894_v40  ;;  %6132 = vadd.xlane.f32.xlu0 %v6131_v2 }
0x3280   : > { %4898 = vadd.xlane.f32.xlu0 %v4897_v39 }
0x3305   : > { %v6130_v37 = vpop.xlane.xlu1 %6129 }
0x3306   : > { %v6134_v21 = vmul.f32 0.03125, %v6130_v37 }
0x3308   : > { %v6136_v22 = vadd.f32 1e-05, %v6134_v21  ;;  %v6711_v21 = vld [vmem:[%s9483_s11 + $0x278] ss:$0 sm:$0xff] }
0x3309   : > { %v6133_v25 = vpop.xlane.xlu0 %6132  ;;  %v4896_v5 = vpop.xlane.xlu1 %4895 }
0x330a   : > { %8204 = vrsqrt.f32 %v6136_v22  ;;  %v6135_v52 = vmul.f32 0.03125, %v6133_v25  ;;  %v4900_v56 = vmul.f32 0.03125, %v4896_v5 }
0x330c   : > { %v6137_v12 = vadd.f32 1e-05, %v6135_v52  ;;  %v4902_v46 = vsub.f32 %v9378_v59, %v4900_v56 }
0x330d   : > { %v4899_v43 = vpop.xlane.xlu0 %4898 }
0x330e   : > { %8206 = vrsqrt.f32 %v6137_v12  ;;  %v4901_v15 = vmul.f32 0.03125, %v4899_v43  ;;  %v4904_v60 = vmul.f32 %v4902_v46, %v4902_v46 }
0x3310   : > { %v4903_v27 = vsub.f32 %v9382_v0, %v4901_v15  ;;  %v4906_v0 = vsel %vm653_vm0, %v4904_v60, 0.0 }
0x3312   : > { %v4905_v61 = vmul.f32 %v4903_v27, %v4903_v27 }
0x3314   : > { %v8205_v38 = vpop.eup %8204  ;;  %v4909_v28 = vsel %vm653_vm0, %v4905_v61, 0.0 }
0x3315   : > { %v6140_v50 = vmul.f32 %v8205_v38, %v6124_v54 }
0x3317   : > { %v6146_v33 = vmul.f32 %v6747_v16, %v6140_v50 }
0x3318   : > { %v8207_v23 = vpop.eup %8206 }
0x3319   : > { %v6141_v20 = vmul.f32 %v8207_v23, %v6125_v14  ;;  %v6152_v41 = vadd.f32 %v6748_v36, %v6146_v33 }
0x331b   : > { %v6147_v30 = vmul.f32 %v6747_v16, %v6141_v20  ;;  %7468 = vmatprep.mubr.msk.f32.mxu1 %vm653_vm0, %v6152_v41 }
0x331d   : > { %v6153_v3 = vadd.f32 %v6748_v36, %v6147_v30  ;;  %v6755_v30 = vld [vmem:[%s9483_s11 + $0x388] ss:$0 sm:$0xff] }
0x331f   : > { %7469 = vmatmul.mubr.msk.f32.vlgmr.msra.gmra.mrb[56].mxu1 %vm653_vm0, %v6153_v3 }
0x33f2   : > { %v7470_v18 = vpop.f32.mrb[56].mxu1 }
0x33f3   : > { %v6252_v32 = vadd.f32 %v7470_v18, %v6749_v24  ;;  %v6246_v45 = vpop.f32.mrb[57].mxu1 }
0x33f4   : > { %v6247_v31 = vadd.f32 %v6749_v24, %v6246_v45 }
0x33f5   : > { %v6256_v26 = vmax.f32 %v6252_v32, 0.0 }
0x33f6   : > { %v6255_v6 = vmax.f32 %v6247_v31, 0.0 }
0x33f8   : > { %7487 = vmatprep.mubr.msk.f32.mxu0 %vm2090_vm5, %v6255_v6 }
0x33f9   : > { %7488 = vmatmul.mubr.msk.f32.vlgmr.msra.gmra.mrb[46].mxu0 %vm2090_vm5, %v6256_v26 }
0x34cc   : > { %v7489_v29 = vpop.f32.mrb[46].mxu0 }
0x34cd   : > { %v6339_v47 = vadd.f32 %v7489_v29, %v6752_v48  ;;  %v6333_v34 = vpop.f32.mrb[47].mxu0 }
0x34ce   : > { %v6334_v54 = vadd.f32 %v6752_v48, %v6333_v34 }
0x34cf   : > { %v6343_v53 = vadd.f32 %v6339_v47, %v6153_v3 }
0x34d0   : > { %v6342_v58 = vadd.f32 %v6334_v54, %v6152_v41 }
0x34d1   : > { %v6347_v35 = vsel %vm653_vm0, %v6343_v53, 0.0 }
0x34d2   : > { %6348 = vadd.xlane.f32.xlu0 %v6347_v35  ;;  %v6344_v14 = vsel %vm653_vm0, %v6342_v58, 0.0 }
0x34d3   : > { %6345 = vadd.xlane.f32.xlu1 %v6344_v14 }
0x34d6   : > { %4910 = vadd.xlane.f32.xlu0 %v4909_v28 }
0x34d7   : > { %4907 = vadd.xlane.f32.xlu1 %v4906_v0 }
0x355f   : > { %v6349_v40 = vpop.xlane.xlu0 %6348 }
0x3560   : > { %v6351_v2 = vmul.f32 0.03125, %v6349_v40  ;;  %v6346_v59 = vpop.xlane.xlu1 %6345 }
0x3561   : > { %v6350_v39 = vmul.f32 0.03125, %v6346_v59 }
0x3562   : > { %v6353_v49 = vsub.f32 %v6343_v53, %v6351_v2 }
0x3563   : > { %v6352_v51 = vsub.f32 %v6342_v58, %v6350_v39  ;;  %v4911_v4 = vpop.xlane.xlu0 %4910 }
0x3564   : > { %v4913_v55 = vmul.f32 0.03125, %v4911_v4  ;;  %v4908_v7 = vpop.xlane.xlu1 %4907  ;;  %v6355_v19 = vmul.f32 %v6353_v49, %v6353_v49 }
0x3565   : > { %v4912_v8 = vmul.f32 0.03125, %v4908_v7  ;;  %v6354_v11 = vmul.f32 %v6352_v51, %v6352_v51 }
0x3566   : > { %v4915_v63 = vadd.f32 1e-05, %v4913_v55  ;;  %v6359_v62 = vsel %vm653_vm0, %v6355_v19, 0.0 }
0x3567   : > { %v4914_v57 = vadd.f32 1e-05, %v4912_v8  ;;  %6360 = vadd.xlane.f32.xlu0 %v6359_v62  ;;  %v6356_v10 = vsel %vm653_vm0, %v6354_v11, 0.0 }
0x3568   : > { %8208 = vrsqrt.f32 %v4915_v63  ;;  %6357 = vadd.xlane.f32.xlu1 %v6356_v10 }
0x3569   : > { %8210 = vrsqrt.f32 %v4914_v57 }
0x3572   : > { %v8209_v1 = vpop.eup %8208 }
0x3573   : > { %v8211_v13 = vpop.eup %8210  ;;  %v4919_v37 = vmul.f32 %v8209_v1, %v4903_v27 }
0x3574   : > { %v4918_v22 = vmul.f32 %v8211_v13, %v4902_v46 }
0x3575   : > { %v4925_v25 = vmul.f32 %v6710_v9, %v4919_v37 }
0x3576   : > { %v4924_v52 = vmul.f32 %v6710_v9, %v4918_v22 }
0x3577   : > { %v4931_v12 = vadd.f32 %v6711_v21, %v4925_v25 }
0x3578   : > { %v4930_v38 = vadd.f32 %v6711_v21, %v4924_v52 }
0x3579   : > { %6383 = vst.msk [vmem:[%s601_s13 + $0x8] sm:$0xff] %vm653_vm0, %v4931_v12 }
0x357a   : > { %6382 = vst.msk [vmem:[%s601_s13] sm:$0xff] %vm653_vm0, %v4930_v38 }
0x35f4   : > { %v6361_v16 = vpop.xlane.xlu0 %6360 }
0x35f5   : > { %v6363_v50 = vmul.f32 0.03125, %v6361_v16  ;;  %v6358_v36 = vpop.xlane.xlu1 %6357 }
0x35f6   : > { %v6362_v33 = vmul.f32 0.03125, %v6358_v36 }
0x35f7   : > { %v6365_v23 = vadd.f32 1e-05, %v6363_v50 }
0x35f8   : > { %v6364_v20 = vadd.f32 1e-05, %v6362_v33 }
0x35f9   : > { %8212 = vrsqrt.f32 %v6365_v23 }
0x35fa   : > { %8214 = vrsqrt.f32 %v6364_v20 }
0x3603   : > { %v8213_v41 = vpop.eup %8212 }
0x3604   : > { %v8215_v3 = vpop.eup %8214  ;;  %v6369_v42 = vmul.f32 %v8213_v41, %v6353_v49 }
0x3605   : > { %v6368_v17 = vmul.f32 %v8215_v3, %v6352_v51 }
0x3606   : > { %v6375_v24 = vmul.f32 %v6755_v30, %v6369_v42 }
0x3607   : > { %v6374_v18 = vmul.f32 %v6755_v30, %v6368_v17 }
0x3608   : > { %v6381_v32 = vadd.f32 %v6756_v44, %v6375_v24 }
0x3609   : > { %v6380_v45 = vadd.f32 %v6756_v44, %v6374_v18 }
0x360a   : > { %6385 = vst.msk [vmem:[%s601_s13 + $0x18] sm:$0xff] %vm653_vm0, %v6381_v32 }
0x360b   : > { %6384 = vst.msk [vmem:[%s601_s13 + $0x10] sm:$0xff] %vm653_vm0, %v6380_v45 }
0x360c PF: > { %s22_s21 = sadd.s32 1, %s8227_s21  }
0x360d   : > { %p19_p4 = scmp.ge.s32.totalorder %s22_s21, 4  }
0x360f   :  { %21 = sbr.rel (!%p19_p4) target bundleno = 5 (0x5), region = 128 }

</bundles_post_ra>
